<compile_context>
chip_gen: v5e
topology: v5e:2x2
jax: 0.10.0
libtpu: 0.0.40
codegen_flags: <defaults>
</compile_context>

<pallas_src>
import jax
import jax.numpy as jnp
from jax.experimental import pallas as pl
from jax.experimental.pallas import tpu as pltpu

_VMEM = pl.BlockSpec(memory_space=pltpu.MemorySpace.VMEM)

_LANES = 128    # Cout / fc1-hidden padded to this -> lane-dense stores
_TILE_M = 256   # pooled-output rows per grid step (4*_TILE_M rows per matmul)


# ------------------------------ Pallas kernels ------------------------------ #

def _conv_relu_pool_kernel(s_ref, w_ref, b_ref, o_ref):
    """Fused 3x3 conv (3 row matmuls) + bias + ReLU + 2x2 maxpool.

    s_ref: (8, TM, 3*Cin) bf16  row slabs: slab[s*2+d][m, kw*Cin+c]
                                 = xpad[n, 2i+s, 2j+d+kw, c]
    w_ref: (3, 3*Cin, 128) bf16 per-kh weights, Cout zero-padded to 128 lanes
    b_ref: (1, 128)        f32
    o_ref: (TM, 128)       bf16 pooled rows (n, i, j) for this tile
    """
    tm = o_ref.shape[0]
    k3 = s_ref.shape[2]
    acc = jnp.zeros((4 * tm, _LANES), jnp.float32)
    for kh in range(3):
        # Slabs 2*kh .. 2*kh+3 are exactly the 4 pooling quadrants
        # (di,dj) = (0,0),(0,1),(1,0),(1,1) for this kernel row -> one
        # contiguous slice, stacked along M (layout no-op reshape).
        lhs = s_ref[2 * kh:2 * kh + 4].reshape(4 * tm, k3)
        acc = acc + jnp.dot(lhs, w_ref[kh], preferred_element_type=jnp.float32)
    q = acc.reshape(4, tm, _LANES)
    pooled = jnp.maximum(jnp.maximum(q[0], q[1]), jnp.maximum(q[2], q[3]))
    o_ref[...] = jnp.maximum(pooled + b_ref[...], 0.0).astype(o_ref.dtype)


def _fc_head_kernel(x_ref, w1_ref, b1_ref, w2_ref, b2_ref, y1h_ref,
                    logits_ref, loss_ref):
    # x: (N, 1024) bf16   w1: (1024, 128) bf16 (hidden zero-padded 25->128)
    # w2: (128, 10) f32   y1h: (N, 10) f32
    h = jnp.dot(x_ref[...], w1_ref[...],
                preferred_element_type=jnp.float32) + b1_ref[...]
    h = jnp.maximum(h, 0.0)
    logits = jnp.dot(h, w2_ref[...],
                     preferred_element_type=jnp.float32) + b2_ref[...]
    logits_ref[...] = logits
    m = jnp.max(logits, axis=-1, keepdims=True)
    lse = m + jnp.log(jnp.sum(jnp.exp(logits - m), axis=-1, keepdims=True))
    nll = lse - jnp.sum(logits * y1h_ref[...], axis=-1, keepdims=True)  # (N,1)
    loss_ref[...] = jnp.sum(nll, axis=0, keepdims=True) / nll.shape[0]


# ----------------------------- kernel wrappers ------------------------------ #

def _conv_relu_pool(slabs, wk, brow, tm):
    _, m_pad, k3 = slabs.shape
    return pl.pallas_call(
        _conv_relu_pool_kernel,
        out_shape=jax.ShapeDtypeStruct((m_pad, _LANES), jnp.bfloat16),
        grid=(m_pad // tm,),
        in_specs=[
            pl.BlockSpec((8, tm, k3), lambda m: (0, m, 0)),
            pl.BlockSpec((3, k3, _LANES), lambda m: (0, 0, 0)),
            pl.BlockSpec((1, _LANES), lambda m: (0, 0)),
        ],
        out_specs=pl.BlockSpec((tm, _LANES), lambda m: (m, 0)),
        compiler_params=pltpu.CompilerParams(
            dimension_semantics=("parallel",)),
    )(slabs, wk, brow)


def _fc_head(x, w1, b1, w2, b2, y1h):
    n = x.shape[0]
    return pl.pallas_call(
        _fc_head_kernel,
        out_shape=(jax.ShapeDtypeStruct((n, 10), jnp.float32),
                   jax.ShapeDtypeStruct((1, 1), jnp.float32)),
        in_specs=[_VMEM] * 6,
        out_specs=(_VMEM, _VMEM),
    )(x, w1, b1, w2, b2, y1h)


# --------------------------------- glue ------------------------------------ #

def _pool_row_slabs(x_nhwc):
    """(N,H,W,C) -> (8, N*(H/2)*(W/2), 3C) bf16 with
    slab[s*2+d][n*(H/2)*(W/2)+i*(W/2)+j, kw*C+c] = pad(x)[n, 2i+s, 2j+d+kw, c].
    6x raw activation size (vs 9x for a full im2col)."""
    n, h, w, c = x_nhwc.shape
    h2, w2 = h // 2, w // 2
    xp = jnp.pad(x_nhwc, ((0, 0), (1, 1), (1, 1), (0, 0)))
    slabs = jnp.stack([
        jnp.concatenate([xp[:, s:s + h:2, d + kw:d + kw + w:2, :]
                         for kw in range(3)], axis=-1)
        for s in range(4) for d in range(2)], axis=0)
    return slabs.reshape(8, n * h2 * w2, 3 * c).astype(jnp.bfloat16)


def _conv_layer(x, w, b):
    n, h, wd, cin = x.shape
    cout = w.shape[0]
    h2, w2 = h // 2, wd // 2
    m_total = n * h2 * w2
    tm = min(_TILE_M, m_total)
    assert tm % 8 == 0
    m_pad = -(-m_total // tm) * tm
    slabs = _pool_row_slabs(x)
    if m_pad != m_total:
        slabs = jnp.pad(slabs, ((0, 0), (0, m_pad - m_total), (0, 0)))
    # torch conv weight (Cout, Cin, kh, kw) -> (kh, kw*Cin+c, 128-padded Cout)
    wk = jnp.transpose(w, (2, 3, 1, 0)).reshape(3, 3 * cin, cout)
    wk = jnp.pad(wk, ((0, 0), (0, 0), (0, _LANES - cout))).astype(jnp.bfloat16)
    brow = jnp.pad(b, (0, _LANES - cout)).reshape(1, _LANES).astype(jnp.float32)
    out = _conv_relu_pool(slabs, wk, brow, tm)                # (m_pad, 128) bf16
    return out[:m_total, :cout].reshape(n, h2, w2, cout)


@jax.jit
def cifar10_cnn_forward(x_nchw, y, params):
    x = jnp.transpose(x_nchw, (0, 2, 3, 1)).astype(jnp.float32)   # NCHW -> NHWC
    x = _conv_layer(x, params["conv1_w"], params["conv1_b"])      # (N,16,16,16)
    x = _conv_layer(x, params["conv2_w"], params["conv2_b"])      # (N, 8, 8,32)
    x = _conv_layer(x, params["conv3_w"], params["conv3_b"])      # (N, 4, 4,64)
    # TODO(synk): nn.Dropout(0.25) implemented as eval-mode identity (no RNG mask).
    n = x.shape[0]
    feats = x.reshape(n, 4 * 4 * 64)                              # NHWC flatten

    # Pre-permute fc1 weight rows to torch's (C,H,W) .view order (no runtime
    # activation transpose) and zero-pad the hidden dim 25 -> 128 (exact).
    hh = jnp.arange(4)[:, None, None] * 4
    ww = jnp.arange(4)[None, :, None]
    cc = jnp.arange(64)[None, None, :] * 16
    perm = (hh + ww + cc).reshape(-1)                             # nhwc -> chw idx
    w1 = params["fc1_w"].T[perm]                                  # (1024, 25)
    w1 = jnp.pad(w1, ((0, 0), (0, _LANES - 25))).astype(jnp.bfloat16)
    b1 = jnp.pad(params["fc1_b"], (0, _LANES - 25)).reshape(1, _LANES)
    b1 = b1.astype(jnp.float32)
    w2 = jnp.pad(params["fc2_w"].T, ((0, _LANES - 25), (0, 0)))   # (128, 10)
    w2 = w2.astype(jnp.float32)
    b2 = params["fc2_b"].reshape(1, 10).astype(jnp.float32)
    y1h = jax.nn.one_hot(y, 10, dtype=jnp.float32)

    logits, loss = _fc_head(feats, w1, b1, w2, b2, y1h)
    return logits, loss[0, 0]


# ------------------------------ init / reference ---------------------------- #

def init_params(key):
    def u(k, shape, fan_in):
        bound = 1.0 / (fan_in ** 0.5)
        return jax.random.uniform(k, shape, jnp.float32, -bound, bound)

    ks = jax.random.split(key, 10)
    return {
        "conv1_w": u(ks[0], (16, 3, 3, 3), 3 * 9),
        "conv1_b": u(ks[1], (16,), 3 * 9),
        "conv2_w": u(ks[2], (32, 16, 3, 3), 16 * 9),
        "conv2_b": u(ks[3], (32,), 16 * 9),
        "conv3_w": u(ks[4], (64, 32, 3, 3), 32 * 9),
        "conv3_b": u(ks[5], (64,), 32 * 9),
        "fc1_w": u(ks[6], (25, 64 * 4 * 4), 64 * 4 * 4),
        "fc1_b": u(ks[7], (25,), 64 * 4 * 4),
        "fc2_w": u(ks[8], (10, 25), 25),
        "fc2_b": u(ks[9], (10,), 25),
    }


def _reference_forward(x_nchw, y, params):
    """Pure-JAX f32 reference mirroring the PyTorch module."""
    x = jnp.transpose(x_nchw, (0, 2, 3, 1)).astype(jnp.float32)

    def conv_relu_pool(x, w, b):
        wf = jnp.transpose(w, (2, 3, 1, 0))                       # HWIO
        out = jax.lax.conv_general_dilated(
            x, wf, window_strides=(1, 1), padding="SAME",
            dimension_numbers=("NHWC", "HWIO", "NHWC")) + b
        out = jnp.maximum(out, 0.0)
        n, h, wd, c = out.shape
        return out.reshape(n, h // 2, 2, wd // 2, 2, c).max(axis=(2, 4))

    x = conv_relu_pool(x, params["conv1_w"], params["conv1_b"])
    x = conv_relu_pool(x, params["conv2_w"], params["conv2_b"])
    x = conv_relu_pool(x, params["conv3_w"], params["conv3_b"])
    feats = jnp.transpose(x, (0, 3, 1, 2)).reshape(x.shape[0], -1)  # torch .view
    h = jnp.maximum(feats @ params["fc1_w"].T + params["fc1_b"], 0.0)
    logits = h @ params["fc2_w"].T + params["fc2_b"]
    logp = jax.nn.log_softmax(logits, axis=-1)
    loss = -jnp.mean(jnp.take_along_axis(logp, y[:, None], axis=1))
    return logits, loss


if __name__ == "__main__":
    key = jax.random.PRNGKey(0)
    kx, ky, kp = jax.random.split(key, 3)
    # CIFAR-10 forward implies 3x32x32 inputs (fc1 expects 64*4*4 after 3 pools)
    x = jax.random.normal(kx, (2, 3, 32, 32), jnp.float32)
    y = jax.random.randint(ky, (2,), 0, 10)
    params = init_params(kp)

    logits, loss = cifar10_cnn_forward(x, y, params)
    jax.block_until_ready((logits, loss))
    assert logits.shape == (2, 10) and loss.shape == ()
    assert bool(jnp.isfinite(loss)) and bool(jnp.all(jnp.isfinite(logits)))

    ref_logits, ref_loss = _reference_forward(x, y, params)
    max_err = float(jnp.max(jnp.abs(logits - ref_logits)))
    assert bool(jnp.allclose(logits, ref_logits, atol=5e-2, rtol=5e-2)), max_err
    assert bool(jnp.allclose(loss, ref_loss, atol=5e-2, rtol=5e-2))
    print("KERNEL_OK")
</pallas_src>

<mosaic_0001>
module attributes {stable_mosaic.version = 11 : i64} {
  func.func @_conv_relu_pool_kernel(%arg0: i32, %arg1: memref<8x256x9xbf16, #tpu.memory_space<vmem>>, %arg2: memref<3x9x128xbf16, #tpu.memory_space<vmem>>, %arg3: memref<1x128xf32, #tpu.memory_space<vmem>>, %arg4: memref<256x128xbf16, #tpu.memory_space<vmem>>) attributes {dimension_semantics = [#tpu.dimension_semantics<parallel>], iteration_bounds = array<i64: 2>, scalar_prefetch = 0 : i64, scratch_operands = 0 : i64, tpu.core_type = #tpu.core_type<tc>, window_params = [{transform_indices = @transform_0, window_bounds = array<i64: 8, 256, 9>}, {pipeline_mode = #tpu.pipeline_mode<synchronous>, transform_indices = @transform_1, window_bounds = array<i64: 3, 9, 128>}, {pipeline_mode = #tpu.pipeline_mode<synchronous>, transform_indices = @transform_2, window_bounds = array<i64: 1, 128>}, {transform_indices = @transform_3, window_bounds = array<i64: 256, 128>}]} {
    %cst = arith.constant 0.000000e+00 : f32
    %0 = vector.broadcast %cst : f32 to vector<1024x128xf32>
    %c0 = arith.constant 0 : index
    %c0_0 = arith.constant 0 : index
    %c0_1 = arith.constant 0 : index
    %1 = vector.load %arg1[%c0, %c0_0, %c0_1] : memref<8x256x9xbf16, #tpu.memory_space<vmem>>, vector<4x256x9xbf16>
    %2 = vector.shape_cast %1 : vector<4x256x9xbf16> to vector<1024x9xbf16>
    %c0_2 = arith.constant 0 : index
    %c0_3 = arith.constant 0 : index
    %c0_4 = arith.constant 0 : index
    %3 = vector.load %arg2[%c0_2, %c0_3, %c0_4] : memref<3x9x128xbf16, #tpu.memory_space<vmem>>, vector<1x9x128xbf16>
    %4 = vector.shape_cast %3 : vector<1x9x128xbf16> to vector<9x128xbf16>
    %cst_5 = arith.constant dense<0.000000e+00> : vector<1024x128xf32>
    %5 = tpu.matmul %2, %4, %cst_5 {dimension_numbers = #tpu.dot_dimension_numbers<[1], [0], [0], [1], [0, 0, 1, 1], [], []>} : vector<1024x9xbf16>, vector<9x128xbf16>, vector<1024x128xf32> -> vector<1024x128xf32>
    %6 = arith.addf %0, %5 : vector<1024x128xf32>
    %c2 = arith.constant 2 : index
    %c0_6 = arith.constant 0 : index
    %c0_7 = arith.constant 0 : index
    %7 = vector.load %arg1[%c2, %c0_6, %c0_7] : memref<8x256x9xbf16, #tpu.memory_space<vmem>>, vector<4x256x9xbf16>
    %8 = vector.shape_cast %7 : vector<4x256x9xbf16> to vector<1024x9xbf16>
    %c1 = arith.constant 1 : index
    %c0_8 = arith.constant 0 : index
    %c0_9 = arith.constant 0 : index
    %9 = vector.load %arg2[%c1, %c0_8, %c0_9] : memref<3x9x128xbf16, #tpu.memory_space<vmem>>, vector<1x9x128xbf16>
    %10 = vector.shape_cast %9 : vector<1x9x128xbf16> to vector<9x128xbf16>
    %cst_10 = arith.constant dense<0.000000e+00> : vector<1024x128xf32>
    %11 = tpu.matmul %8, %10, %cst_10 {dimension_numbers = #tpu.dot_dimension_numbers<[1], [0], [0], [1], [0, 0, 1, 1], [], []>} : vector<1024x9xbf16>, vector<9x128xbf16>, vector<1024x128xf32> -> vector<1024x128xf32>
    %12 = arith.addf %6, %11 : vector<1024x128xf32>
    %c4 = arith.constant 4 : index
    %c0_11 = arith.constant 0 : index
    %c0_12 = arith.constant 0 : index
    %13 = vector.load %arg1[%c4, %c0_11, %c0_12] : memref<8x256x9xbf16, #tpu.memory_space<vmem>>, vector<4x256x9xbf16>
    %14 = vector.shape_cast %13 : vector<4x256x9xbf16> to vector<1024x9xbf16>
    %c2_13 = arith.constant 2 : index
    %c0_14 = arith.constant 0 : index
    %c0_15 = arith.constant 0 : index
    %15 = vector.load %arg2[%c2_13, %c0_14, %c0_15] : memref<3x9x128xbf16, #tpu.memory_space<vmem>>, vector<1x9x128xbf16>
    %16 = vector.shape_cast %15 : vector<1x9x128xbf16> to vector<9x128xbf16>
    %cst_16 = arith.constant dense<0.000000e+00> : vector<1024x128xf32>
    %17 = tpu.matmul %14, %16, %cst_16 {dimension_numbers = #tpu.dot_dimension_numbers<[1], [0], [0], [1], [0, 0, 1, 1], [], []>} : vector<1024x9xbf16>, vector<9x128xbf16>, vector<1024x128xf32> -> vector<1024x128xf32>
    %18 = arith.addf %12, %17 : vector<1024x128xf32>
    %19 = vector.shape_cast %18 : vector<1024x128xf32> to vector<4x256x128xf32>
    %20 = vector.extract_strided_slice %19 {offsets = [0, 0, 0], sizes = [1, 256, 128], strides = [1, 1, 1]} : vector<4x256x128xf32> to vector<1x256x128xf32>
    %21 = vector.shape_cast %20 : vector<1x256x128xf32> to vector<256x128xf32>
    %22 = vector.extract_strided_slice %19 {offsets = [1, 0, 0], sizes = [1, 256, 128], strides = [1, 1, 1]} : vector<4x256x128xf32> to vector<1x256x128xf32>
    %23 = vector.shape_cast %22 : vector<1x256x128xf32> to vector<256x128xf32>
    %24 = arith.maximumf %21, %23 : vector<256x128xf32>
    %25 = vector.extract_strided_slice %19 {offsets = [2, 0, 0], sizes = [1, 256, 128], strides = [1, 1, 1]} : vector<4x256x128xf32> to vector<1x256x128xf32>
    %26 = vector.shape_cast %25 : vector<1x256x128xf32> to vector<256x128xf32>
    %27 = vector.extract_strided_slice %19 {offsets = [3, 0, 0], sizes = [1, 256, 128], strides = [1, 1, 1]} : vector<4x256x128xf32> to vector<1x256x128xf32>
    %28 = vector.shape_cast %27 : vector<1x256x128xf32> to vector<256x128xf32>
    %29 = arith.maximumf %26, %28 : vector<256x128xf32>
    %30 = arith.maximumf %24, %29 : vector<256x128xf32>
    %c0_17 = arith.constant 0 : index
    %c0_18 = arith.constant 0 : index
    %31 = vector.load %arg3[%c0_17, %c0_18] : memref<1x128xf32, #tpu.memory_space<vmem>>, vector<1x128xf32>
    %32 = vector.broadcast %31 : vector<1x128xf32> to vector<256x128xf32>
    %33 = arith.addf %30, %32 : vector<256x128xf32>
    %cst_19 = arith.constant 0.000000e+00 : f32
    %34 = vector.broadcast %cst_19 : f32 to vector<256x128xf32>
    %35 = arith.maximumf %33, %34 : vector<256x128xf32>
    %36 = arith.truncf %35 : vector<256x128xf32> to vector<256x128xbf16>
    %c0_20 = arith.constant 0 : index
    %c0_21 = arith.constant 0 : index
    %37 = vector.load %arg4[%c0_20, %c0_21] : memref<256x128xbf16, #tpu.memory_space<vmem>>, vector<256x128xbf16>
    tpu.vector_store %arg4[%c0_20, %c0_21], %36 {strides = array<i32>} : memref<256x128xbf16, #tpu.memory_space<vmem>>, vector<256x128xbf16>,
    return
  }
  func.func @transform_0(%arg0: i32) -> (i32, i32, i32) {
    %c0_i32 = arith.constant 0 : i32
    %c0_i32_0 = arith.constant 0 : i32
    %c0_i32_1 = arith.constant 0 : i32
    return %c0_i32, %arg0, %c0_i32_0 : i32, i32, i32
  }
  func.func @transform_1(%arg0: i32) -> (i32, i32, i32) {
    %c0_i32 = arith.constant 0 : i32
    %c0_i32_0 = arith.constant 0 : i32
    %c0_i32_1 = arith.constant 0 : i32
    %c0_i32_2 = arith.constant 0 : i32
    return %c0_i32, %c0_i32_0, %c0_i32_1 : i32, i32, i32
  }
  func.func @transform_2(%arg0: i32) -> (i32, i32) {
    %c0_i32 = arith.constant 0 : i32
    %c0_i32_0 = arith.constant 0 : i32
    %c0_i32_1 = arith.constant 0 : i32
    return %c0_i32, %c0_i32_0 : i32, i32
  }
  func.func @transform_3(%arg0: i32) -> (i32, i32) {
    %c0_i32 = arith.constant 0 : i32
    %c0_i32_0 = arith.constant 0 : i32
    return %arg0, %c0_i32 : i32, i32
  }
}

module attributes {stable_mosaic.version = 11 : i64} {
  func.func @_conv_relu_pool_kernel(%arg0: i32, %arg1: memref<8x128x48xbf16, #tpu.memory_space<vmem>>, %arg2: memref<3x48x128xbf16, #tpu.memory_space<vmem>>, %arg3: memref<1x128xf32, #tpu.memory_space<vmem>>, %arg4: memref<128x128xbf16, #tpu.memory_space<vmem>>) attributes {dimension_semantics = [#tpu.dimension_semantics<parallel>], iteration_bounds = array<i64: 1>, scalar_prefetch = 0 : i64, scratch_operands = 0 : i64, tpu.core_type = #tpu.core_type<tc>, window_params = [{transform_indices = @transform_0, window_bounds = array<i64: 8, 128, 48>}, {pipeline_mode = #tpu.pipeline_mode<synchronous>, transform_indices = @transform_1, window_bounds = array<i64: 3, 48, 128>}, {pipeline_mode = #tpu.pipeline_mode<synchronous>, transform_indices = @transform_2, window_bounds = array<i64: 1, 128>}, {transform_indices = @transform_3, window_bounds = array<i64: 128, 128>}]} {
    %cst = arith.constant 0.000000e+00 : f32
    %0 = vector.broadcast %cst : f32 to vector<512x128xf32>
    %c0 = arith.constant 0 : index
    %c0_0 = arith.constant 0 : index
    %c0_1 = arith.constant 0 : index
    %1 = vector.load %arg1[%c0, %c0_0, %c0_1] : memref<8x128x48xbf16, #tpu.memory_space<vmem>>, vector<4x128x48xbf16>
    %2 = vector.shape_cast %1 : vector<4x128x48xbf16> to vector<512x48xbf16>
    %c0_2 = arith.constant 0 : index
    %c0_3 = arith.constant 0 : index
    %c0_4 = arith.constant 0 : index
    %3 = vector.load %arg2[%c0_2, %c0_3, %c0_4] : memref<3x48x128xbf16, #tpu.memory_space<vmem>>, vector<1x48x128xbf16>
    %4 = vector.shape_cast %3 : vector<1x48x128xbf16> to vector<48x128xbf16>
    %cst_5 = arith.constant dense<0.000000e+00> : vector<512x128xf32>
    %5 = tpu.matmul %2, %4, %cst_5 {dimension_numbers = #tpu.dot_dimension_numbers<[1], [0], [0], [1], [0, 0, 1, 1], [], []>} : vector<512x48xbf16>, vector<48x128xbf16>, vector<512x128xf32> -> vector<512x128xf32>
    %6 = arith.addf %0, %5 : vector<512x128xf32>
    %c2 = arith.constant 2 : index
    %c0_6 = arith.constant 0 : index
    %c0_7 = arith.constant 0 : index
    %7 = vector.load %arg1[%c2, %c0_6, %c0_7] : memref<8x128x48xbf16, #tpu.memory_space<vmem>>, vector<4x128x48xbf16>
    %8 = vector.shape_cast %7 : vector<4x128x48xbf16> to vector<512x48xbf16>
    %c1 = arith.constant 1 : index
    %c0_8 = arith.constant 0 : index
    %c0_9 = arith.constant 0 : index
    %9 = vector.load %arg2[%c1, %c0_8, %c0_9] : memref<3x48x128xbf16, #tpu.memory_space<vmem>>, vector<1x48x128xbf16>
    %10 = vector.shape_cast %9 : vector<1x48x128xbf16> to vector<48x128xbf16>
    %cst_10 = arith.constant dense<0.000000e+00> : vector<512x128xf32>
    %11 = tpu.matmul %8, %10, %cst_10 {dimension_numbers = #tpu.dot_dimension_numbers<[1], [0], [0], [1], [0, 0, 1, 1], [], []>} : vector<512x48xbf16>, vector<48x128xbf16>, vector<512x128xf32> -> vector<512x128xf32>
    %12 = arith.addf %6, %11 : vector<512x128xf32>
    %c4 = arith.constant 4 : index
    %c0_11 = arith.constant 0 : index
    %c0_12 = arith.constant 0 : index
    %13 = vector.load %arg1[%c4, %c0_11, %c0_12] : memref<8x128x48xbf16, #tpu.memory_space<vmem>>, vector<4x128x48xbf16>
    %14 = vector.shape_cast %13 : vector<4x128x48xbf16> to vector<512x48xbf16>
    %c2_13 = arith.constant 2 : index
    %c0_14 = arith.constant 0 : index
    %c0_15 = arith.constant 0 : index
    %15 = vector.load %arg2[%c2_13, %c0_14, %c0_15] : memref<3x48x128xbf16, #tpu.memory_space<vmem>>, vector<1x48x128xbf16>
    %16 = vector.shape_cast %15 : vector<1x48x128xbf16> to vector<48x128xbf16>
    %cst_16 = arith.constant dense<0.000000e+00> : vector<512x128xf32>
    %17 = tpu.matmul %14, %16, %cst_16 {dimension_numbers = #tpu.dot_dimension_numbers<[1], [0], [0], [1], [0, 0, 1, 1], [], []>} : vector<512x48xbf16>, vector<48x128xbf16>, vector<512x128xf32> -> vector<512x128xf32>
    %18 = arith.addf %12, %17 : vector<512x128xf32>
    %19 = vector.shape_cast %18 : vector<512x128xf32> to vector<4x128x128xf32>
    %20 = vector.extract_strided_slice %19 {offsets = [0, 0, 0], sizes = [1, 128, 128], strides = [1, 1, 1]} : vector<4x128x128xf32> to vector<1x128x128xf32>
    %21 = vector.shape_cast %20 : vector<1x128x128xf32> to vector<128x128xf32>
    %22 = vector.extract_strided_slice %19 {offsets = [1, 0, 0], sizes = [1, 128, 128], strides = [1, 1, 1]} : vector<4x128x128xf32> to vector<1x128x128xf32>
    %23 = vector.shape_cast %22 : vector<1x128x128xf32> to vector<128x128xf32>
    %24 = arith.maximumf %21, %23 : vector<128x128xf32>
    %25 = vector.extract_strided_slice %19 {offsets = [2, 0, 0], sizes = [1, 128, 128], strides = [1, 1, 1]} : vector<4x128x128xf32> to vector<1x128x128xf32>
    %26 = vector.shape_cast %25 : vector<1x128x128xf32> to vector<128x128xf32>
    %27 = vector.extract_strided_slice %19 {offsets = [3, 0, 0], sizes = [1, 128, 128], strides = [1, 1, 1]} : vector<4x128x128xf32> to vector<1x128x128xf32>
    %28 = vector.shape_cast %27 : vector<1x128x128xf32> to vector<128x128xf32>
    %29 = arith.maximumf %26, %28 : vector<128x128xf32>
    %30 = arith.maximumf %24, %29 : vector<128x128xf32>
    %c0_17 = arith.constant 0 : index
    %c0_18 = arith.constant 0 : index
    %31 = vector.load %arg3[%c0_17, %c0_18] : memref<1x128xf32, #tpu.memory_space<vmem>>, vector<1x128xf32>
    %32 = vector.broadcast %31 : vector<1x128xf32> to vector<128x128xf32>
    %33 = arith.addf %30, %32 : vector<128x128xf32>
    %cst_19 = arith.constant 0.000000e+00 : f32
    %34 = vector.broadcast %cst_19 : f32 to vector<128x128xf32>
    %35 = arith.maximumf %33, %34 : vector<128x128xf32>
    %36 = arith.truncf %35 : vector<128x128xf32> to vector<128x128xbf16>
    %c0_20 = arith.constant 0 : index
    %c0_21 = arith.constant 0 : index
    %37 = vector.load %arg4[%c0_20, %c0_21] : memref<128x128xbf16, #tpu.memory_space<vmem>>, vector<128x128xbf16>
    tpu.vector_store %arg4[%c0_20, %c0_21], %36 {strides = array<i32>} : memref<128x128xbf16, #tpu.memory_space<vmem>>, vector<128x128xbf16>,
    return
  }
  func.func @transform_0(%arg0: i32) -> (i32, i32, i32) {
    %c0_i32 = arith.constant 0 : i32
    %c0_i32_0 = arith.constant 0 : i32
    %c0_i32_1 = arith.constant 0 : i32
    return %c0_i32, %arg0, %c0_i32_0 : i32, i32, i32
  }
  func.func @transform_1(%arg0: i32) -> (i32, i32, i32) {
    %c0_i32 = arith.constant 0 : i32
    %c0_i32_0 = arith.constant 0 : i32
    %c0_i32_1 = arith.constant 0 : i32
    %c0_i32_2 = arith.constant 0 : i32
    return %c0_i32, %c0_i32_0, %c0_i32_1 : i32, i32, i32
  }
  func.func @transform_2(%arg0: i32) -> (i32, i32) {
    %c0_i32 = arith.constant 0 : i32
    %c0_i32_0 = arith.constant 0 : i32
    %c0_i32_1 = arith.constant 0 : i32
    return %c0_i32, %c0_i32_0 : i32, i32
  }
  func.func @transform_3(%arg0: i32) -> (i32, i32) {
    %c0_i32 = arith.constant 0 : i32
    %c0_i32_0 = arith.constant 0 : i32
    return %arg0, %c0_i32 : i32, i32
  }
}

module attributes {stable_mosaic.version = 11 : i64} {
  func.func @_conv_relu_pool_kernel(%arg0: i32, %arg1: memref<8x32x96xbf16, #tpu.memory_space<vmem>>, %arg2: memref<3x96x128xbf16, #tpu.memory_space<vmem>>, %arg3: memref<1x128xf32, #tpu.memory_space<vmem>>, %arg4: memref<32x128xbf16, #tpu.memory_space<vmem>>) attributes {dimension_semantics = [#tpu.dimension_semantics<parallel>], iteration_bounds = array<i64: 1>, scalar_prefetch = 0 : i64, scratch_operands = 0 : i64, tpu.core_type = #tpu.core_type<tc>, window_params = [{transform_indices = @transform_0, window_bounds = array<i64: 8, 32, 96>}, {pipeline_mode = #tpu.pipeline_mode<synchronous>, transform_indices = @transform_1, window_bounds = array<i64: 3, 96, 128>}, {pipeline_mode = #tpu.pipeline_mode<synchronous>, transform_indices = @transform_2, window_bounds = array<i64: 1, 128>}, {transform_indices = @transform_3, window_bounds = array<i64: 32, 128>}]} {
    %cst = arith.constant 0.000000e+00 : f32
    %0 = vector.broadcast %cst : f32 to vector<128x128xf32>
    %c0 = arith.constant 0 : index
    %c0_0 = arith.constant 0 : index
    %c0_1 = arith.constant 0 : index
    %1 = vector.load %arg1[%c0, %c0_0, %c0_1] : memref<8x32x96xbf16, #tpu.memory_space<vmem>>, vector<4x32x96xbf16>
    %2 = vector.shape_cast %1 : vector<4x32x96xbf16> to vector<128x96xbf16>
    %c0_2 = arith.constant 0 : index
    %c0_3 = arith.constant 0 : index
    %c0_4 = arith.constant 0 : index
    %3 = vector.load %arg2[%c0_2, %c0_3, %c0_4] : memref<3x96x128xbf16, #tpu.memory_space<vmem>>, vector<1x96x128xbf16>
    %4 = vector.shape_cast %3 : vector<1x96x128xbf16> to vector<96x128xbf16>
    %cst_5 = arith.constant dense<0.000000e+00> : vector<128x128xf32>
    %5 = tpu.matmul %2, %4, %cst_5 {dimension_numbers = #tpu.dot_dimension_numbers<[1], [0], [0], [1], [0, 0, 1, 1], [], []>} : vector<128x96xbf16>, vector<96x128xbf16>, vector<128x128xf32> -> vector<128x128xf32>
    %6 = arith.addf %0, %5 : vector<128x128xf32>
    %c2 = arith.constant 2 : index
    %c0_6 = arith.constant 0 : index
    %c0_7 = arith.constant 0 : index
    %7 = vector.load %arg1[%c2, %c0_6, %c0_7] : memref<8x32x96xbf16, #tpu.memory_space<vmem>>, vector<4x32x96xbf16>
    %8 = vector.shape_cast %7 : vector<4x32x96xbf16> to vector<128x96xbf16>
    %c1 = arith.constant 1 : index
    %c0_8 = arith.constant 0 : index
    %c0_9 = arith.constant 0 : index
    %9 = vector.load %arg2[%c1, %c0_8, %c0_9] : memref<3x96x128xbf16, #tpu.memory_space<vmem>>, vector<1x96x128xbf16>
    %10 = vector.shape_cast %9 : vector<1x96x128xbf16> to vector<96x128xbf16>
    %cst_10 = arith.constant dense<0.000000e+00> : vector<128x128xf32>
    %11 = tpu.matmul %8, %10, %cst_10 {dimension_numbers = #tpu.dot_dimension_numbers<[1], [0], [0], [1], [0, 0, 1, 1], [], []>} : vector<128x96xbf16>, vector<96x128xbf16>, vector<128x128xf32> -> vector<128x128xf32>
    %12 = arith.addf %6, %11 : vector<128x128xf32>
    %c4 = arith.constant 4 : index
    %c0_11 = arith.constant 0 : index
    %c0_12 = arith.constant 0 : index
    %13 = vector.load %arg1[%c4, %c0_11, %c0_12] : memref<8x32x96xbf16, #tpu.memory_space<vmem>>, vector<4x32x96xbf16>
    %14 = vector.shape_cast %13 : vector<4x32x96xbf16> to vector<128x96xbf16>
    %c2_13 = arith.constant 2 : index
    %c0_14 = arith.constant 0 : index
    %c0_15 = arith.constant 0 : index
    %15 = vector.load %arg2[%c2_13, %c0_14, %c0_15] : memref<3x96x128xbf16, #tpu.memory_space<vmem>>, vector<1x96x128xbf16>
    %16 = vector.shape_cast %15 : vector<1x96x128xbf16> to vector<96x128xbf16>
    %cst_16 = arith.constant dense<0.000000e+00> : vector<128x128xf32>
    %17 = tpu.matmul %14, %16, %cst_16 {dimension_numbers = #tpu.dot_dimension_numbers<[1], [0], [0], [1], [0, 0, 1, 1], [], []>} : vector<128x96xbf16>, vector<96x128xbf16>, vector<128x128xf32> -> vector<128x128xf32>
    %18 = arith.addf %12, %17 : vector<128x128xf32>
    %19 = vector.shape_cast %18 : vector<128x128xf32> to vector<4x32x128xf32>
    %20 = vector.extract_strided_slice %19 {offsets = [0, 0, 0], sizes = [1, 32, 128], strides = [1, 1, 1]} : vector<4x32x128xf32> to vector<1x32x128xf32>
    %21 = vector.shape_cast %20 : vector<1x32x128xf32> to vector<32x128xf32>
    %22 = vector.extract_strided_slice %19 {offsets = [1, 0, 0], sizes = [1, 32, 128], strides = [1, 1, 1]} : vector<4x32x128xf32> to vector<1x32x128xf32>
    %23 = vector.shape_cast %22 : vector<1x32x128xf32> to vector<32x128xf32>
    %24 = arith.maximumf %21, %23 : vector<32x128xf32>
    %25 = vector.extract_strided_slice %19 {offsets = [2, 0, 0], sizes = [1, 32, 128], strides = [1, 1, 1]} : vector<4x32x128xf32> to vector<1x32x128xf32>
    %26 = vector.shape_cast %25 : vector<1x32x128xf32> to vector<32x128xf32>
    %27 = vector.extract_strided_slice %19 {offsets = [3, 0, 0], sizes = [1, 32, 128], strides = [1, 1, 1]} : vector<4x32x128xf32> to vector<1x32x128xf32>
    %28 = vector.shape_cast %27 : vector<1x32x128xf32> to vector<32x128xf32>
    %29 = arith.maximumf %26, %28 : vector<32x128xf32>
    %30 = arith.maximumf %24, %29 : vector<32x128xf32>
    %c0_17 = arith.constant 0 : index
    %c0_18 = arith.constant 0 : index
    %31 = vector.load %arg3[%c0_17, %c0_18] : memref<1x128xf32, #tpu.memory_space<vmem>>, vector<1x128xf32>
    %32 = vector.broadcast %31 : vector<1x128xf32> to vector<32x128xf32>
    %33 = arith.addf %30, %32 : vector<32x128xf32>
    %cst_19 = arith.constant 0.000000e+00 : f32
    %34 = vector.broadcast %cst_19 : f32 to vector<32x128xf32>
    %35 = arith.maximumf %33, %34 : vector<32x128xf32>
    %36 = arith.truncf %35 : vector<32x128xf32> to vector<32x128xbf16>
    %c0_20 = arith.constant 0 : index
    %c0_21 = arith.constant 0 : index
    %37 = vector.load %arg4[%c0_20, %c0_21] : memref<32x128xbf16, #tpu.memory_space<vmem>>, vector<32x128xbf16>
    tpu.vector_store %arg4[%c0_20, %c0_21], %36 {strides = array<i32>} : memref<32x128xbf16, #tpu.memory_space<vmem>>, vector<32x128xbf16>,
    return
  }
  func.func @transform_0(%arg0: i32) -> (i32, i32, i32) {
    %c0_i32 = arith.constant 0 : i32
    %c0_i32_0 = arith.constant 0 : i32
    %c0_i32_1 = arith.constant 0 : i32
    return %c0_i32, %arg0, %c0_i32_0 : i32, i32, i32
  }
  func.func @transform_1(%arg0: i32) -> (i32, i32, i32) {
    %c0_i32 = arith.constant 0 : i32
    %c0_i32_0 = arith.constant 0 : i32
    %c0_i32_1 = arith.constant 0 : i32
    %c0_i32_2 = arith.constant 0 : i32
    return %c0_i32, %c0_i32_0, %c0_i32_1 : i32, i32, i32
  }
  func.func @transform_2(%arg0: i32) -> (i32, i32) {
    %c0_i32 = arith.constant 0 : i32
    %c0_i32_0 = arith.constant 0 : i32
    %c0_i32_1 = arith.constant 0 : i32
    return %c0_i32, %c0_i32_0 : i32, i32
  }
  func.func @transform_3(%arg0: i32) -> (i32, i32) {
    %c0_i32 = arith.constant 0 : i32
    %c0_i32_0 = arith.constant 0 : i32
    return %arg0, %c0_i32 : i32, i32
  }
}

module attributes {stable_mosaic.version = 11 : i64} {
  func.func @_fc_head_kernel(%arg0: memref<2x1024xbf16, #tpu.memory_space<vmem>>, %arg1: memref<1024x128xbf16, #tpu.memory_space<vmem>>, %arg2: memref<1x128xf32, #tpu.memory_space<vmem>>, %arg3: memref<128x10xf32, #tpu.memory_space<vmem>>, %arg4: memref<1x10xf32, #tpu.memory_space<vmem>>, %arg5: memref<2x10xf32, #tpu.memory_space<vmem>>, %arg6: memref<2x10xf32, #tpu.memory_space<vmem>>, %arg7: memref<1x1xf32, #tpu.memory_space<vmem>>) attributes {dimension_semantics = [], scalar_prefetch = 0 : i64, scratch_operands = 0 : i64, tpu.core_type = #tpu.core_type<tc>} {
    %c0 = arith.constant 0 : index
    %c0_0 = arith.constant 0 : index
    %0 = vector.load %arg0[%c0, %c0_0] : memref<2x1024xbf16, #tpu.memory_space<vmem>>, vector<2x1024xbf16>
    %c0_1 = arith.constant 0 : index
    %c0_2 = arith.constant 0 : index
    %1 = vector.load %arg1[%c0_1, %c0_2] : memref<1024x128xbf16, #tpu.memory_space<vmem>>, vector<1024x128xbf16>
    %cst = arith.constant dense<0.000000e+00> : vector<2x128xf32>
    %2 = tpu.matmul %0, %1, %cst {dimension_numbers = #tpu.dot_dimension_numbers<[1], [0], [0], [1], [0, 0, 1, 1], [], []>} : vector<2x1024xbf16>, vector<1024x128xbf16>, vector<2x128xf32> -> vector<2x128xf32>
    %c0_3 = arith.constant 0 : index
    %c0_4 = arith.constant 0 : index
    %3 = vector.load %arg2[%c0_3, %c0_4] : memref<1x128xf32, #tpu.memory_space<vmem>>, vector<1x128xf32>
    %4 = vector.broadcast %3 : vector<1x128xf32> to vector<2x128xf32>
    %5 = arith.addf %2, %4 : vector<2x128xf32>
    %cst_5 = arith.constant 0.000000e+00 : f32
    %6 = vector.broadcast %cst_5 : f32 to vector<2x128xf32>
    %7 = arith.maximumf %5, %6 : vector<2x128xf32>
    %c0_6 = arith.constant 0 : index
    %c0_7 = arith.constant 0 : index
    %8 = vector.load %arg3[%c0_6, %c0_7] : memref<128x10xf32, #tpu.memory_space<vmem>>, vector<128x10xf32>
    %cst_8 = arith.constant dense<0.000000e+00> : vector<2x10xf32>
    %9 = tpu.matmul %7, %8, %cst_8 {dimension_numbers = #tpu.dot_dimension_numbers<[1], [0], [0], [1], [0, 0, 1, 1], [], []>} : vector<2x128xf32>, vector<128x10xf32>, vector<2x10xf32> -> vector<2x10xf32>
    %c0_9 = arith.constant 0 : index
    %c0_10 = arith.constant 0 : index
    %10 = vector.load %arg4[%c0_9, %c0_10] : memref<1x10xf32, #tpu.memory_space<vmem>>, vector<1x10xf32>
    %11 = vector.broadcast %10 : vector<1x10xf32> to vector<2x10xf32>
    %12 = arith.addf %9, %11 : vector<2x10xf32>
    %c0_11 = arith.constant 0 : index
    %c0_12 = arith.constant 0 : index
    %13 = vector.load %arg6[%c0_11, %c0_12] : memref<2x10xf32, #tpu.memory_space<vmem>>, vector<2x10xf32>
    tpu.vector_store %arg6[%c0_11, %c0_12], %12 {strides = array<i32>} : memref<2x10xf32, #tpu.memory_space<vmem>>, vector<2x10xf32>,
    %cst_13 = arith.constant dense<0xFF800000> : vector<2xf32>
    %14 = vector.multi_reduction <maximumf>, %12, %cst_13 [1] : vector<2x10xf32> to vector<2xf32>
    %15 = vector.shape_cast %14 : vector<2xf32> to vector<2x1xf32>
    %16 = vector.broadcast %15 : vector<2x1xf32> to vector<2x10xf32>
    %17 = arith.subf %12, %16 : vector<2x10xf32>
    %18 = math.exp %17 : vector<2x10xf32>
    %cst_14 = arith.constant dense<0.000000e+00> : vector<2xf32>
    %19 = vector.multi_reduction <add>, %18, %cst_14 [1] : vector<2x10xf32> to vector<2xf32>
    %20 = vector.shape_cast %19 : vector<2xf32> to vector<2x1xf32>
    %21 = math.log %20 : vector<2x1xf32>
    %22 = arith.addf %15, %21 : vector<2x1xf32>
    %c0_15 = arith.constant 0 : index
    %c0_16 = arith.constant 0 : index
    %23 = vector.load %arg5[%c0_15, %c0_16] : memref<2x10xf32, #tpu.memory_space<vmem>>, vector<2x10xf32>
    %24 = arith.mulf %12, %23 : vector<2x10xf32>
    %cst_17 = arith.constant dense<0.000000e+00> : vector<2xf32>
    %25 = vector.multi_reduction <add>, %24, %cst_17 [1] : vector<2x10xf32> to vector<2xf32>
    %26 = vector.shape_cast %25 : vector<2xf32> to vector<2x1xf32>
    %27 = arith.subf %22, %26 : vector<2x1xf32>
    %cst_18 = arith.constant dense<0.000000e+00> : vector<1xf32>
    %28 = vector.multi_reduction <add>, %27, %cst_18 [0] : vector<2x1xf32> to vector<1xf32>
    %29 = vector.shape_cast %28 : vector<1xf32> to vector<1x1xf32>
    %cst_19 = arith.constant 2.000000e+00 : f32
    %30 = vector.broadcast %cst_19 : f32 to vector<1x1xf32>
    %31 = arith.divf %29, %30 : vector<1x1xf32>
    %c0_20 = arith.constant 0 : index
    %c0_21 = arith.constant 0 : index
    %32 = vector.load %arg7[%c0_20, %c0_21] : memref<1x1xf32, #tpu.memory_space<vmem>>, vector<1x1xf32>
    tpu.vector_store %arg7[%c0_20, %c0_21], %31 {strides = array<i32>} : memref<1x1xf32, #tpu.memory_space<vmem>>, vector<1x1xf32>,
    return
  }
}

</mosaic_0001>

<bundles_post_ra>
// kernel: cifar10_cnn_forward.5
= control target key start
LH: loop header
LB: loop body
LE: loop exit
PB: predicated region body
PF: predicated region fallthrough
CT: control target
= control target key end

     0   :  { %vm335_vm0 = vcmask 392192   ;;  %s3277_s1 = inlined_call_operand.vmem [shape: bf16[3,48,128], index: 1, kind: input, shape index: {}]   ;;  %s3278_s0 = inlined_call_operand.vmem [shape: bf16[8,128,48], index: 0, kind: input, shape index: {}]   ;;  %s3279_s2 = inlined_call_operand.vmem [shape: f32[1,128], index: 2, kind: input, shape index: {}]   ;;  %s3280_s3 = inlined_call_operand.vmem [shape: bf16[128,128], index: 3, kind: output, shape index: {}]  }
   0x1   :  { %v2468_v0 = vld [vmem:[%s3277_s1 + $0x28] sm:$0xff]  ;;  %v2433_v1 = vld [vmem:[%s3277_s1 + $0x10] sm:$0xff]  ;;  %v2503_v2 = vld [vmem:[%s3277_s1 + $0x40] sm:$0xff] }
   0x2   :  { %437 = vmatpush.bf16.msra.mxu0 %v2468_v0  ;;  %2551 = vmatpush.bf16.msra.mxu3 %v2468_v0  ;;  %v2467_v3 = vld [vmem:[%s3277_s1 + $0x20] sm:$0xff]  ;;  %v2432_v4 = vld [vmem:[%s3277_s1 + $0x8] sm:$0xff]  ;;  %v2502_v5 = vld [vmem:[%s3277_s1 + $0x38] sm:$0xff] }
   0x3   :  { %880 = vmatpush.bf16.msra.mxu1 %v2433_v1  ;;  %1395 = vmatpush.bf16.msra.mxu2 %v2503_v2  ;;  %v2466_v6 = vld [vmem:[%s3277_s1 + $0x18] sm:$0xff]  ;;  %v2431_v7 = vld [vmem:[%s3277_s1] sm:$0xff]  ;;  %v2501_v8 = vld [vmem:[%s3277_s1 + $0x30] sm:$0xff] }
   0x4   :  { %v2434_v9 = vld [vmem:[%s3278_s0 + $0x80] sm:$0xff]  ;;  %v2435_v13 = vld [vmem:[%s3278_s0 + $0x88] sm:$0xff]  ;;  %v2436_v17 = vld [vmem:[%s3278_s0 + $0x90] sm:$0xff] }
   0x5   :  { %v2458_v10 = vld [vmem:[%s3278_s0 + $0x140] sm:$0xff]  ;;  %v2459_v14 = vld [vmem:[%s3278_s0 + $0x148] sm:$0xff]  ;;  %v2460_v18 = vld [vmem:[%s3278_s0 + $0x150] sm:$0xff] }
   0x6   :  { %438 = vmatpush.bf16.msra.mxu0 %v2467_v3  ;;  %2552 = vmatpush.bf16.msra.mxu3 %v2467_v3  ;;  %v2399_v11 = vld [vmem:[%s3278_s0] sm:$0xff]  ;;  %v2400_v15 = vld [vmem:[%s3278_s0 + $0x8] sm:$0xff]  ;;  %v2401_v19 = vld [vmem:[%s3278_s0 + $0x10] sm:$0xff] }
   0x7   :  { %881 = vmatpush.bf16.msra.mxu1 %v2432_v4  ;;  %1396 = vmatpush.bf16.msra.mxu2 %v2502_v5  ;;  %v2469_v12 = vld [vmem:[%s3278_s0 + $0x100] sm:$0xff]  ;;  %v2470_v16 = vld [vmem:[%s3278_s0 + $0x108] sm:$0xff]  ;;  %v2471_v20 = vld [vmem:[%s3278_s0 + $0x110] sm:$0xff] }
   0x8   :  { %v2437_v21 = vld [vmem:[%s3278_s0 + $0x98] sm:$0xff]  ;;  %v2438_v25 = vld [vmem:[%s3278_s0 + $0xa0] sm:$0xff]  ;;  %v2439_v29 = vld [vmem:[%s3278_s0 + $0xa8] sm:$0xff] }
   0x9   :  { %v2461_v22 = vld [vmem:[%s3278_s0 + $0x158] sm:$0xff]  ;;  %v2462_v26 = vld [vmem:[%s3278_s0 + $0x160] sm:$0xff]  ;;  %v2463_v30 = vld [vmem:[%s3278_s0 + $0x168] sm:$0xff] }
   0xa   :  { %439 = vmatpush.bf16.msra.mxu0 %v2466_v6  ;;  %2553 = vmatpush.bf16.msra.mxu3 %v2466_v6  ;;  %v2402_v23 = vld [vmem:[%s3278_s0 + $0x18] sm:$0xff]  ;;  %v2403_v27 = vld [vmem:[%s3278_s0 + $0x20] sm:$0xff]  ;;  %v2404_v31 = vld [vmem:[%s3278_s0 + $0x28] sm:$0xff] }
   0xb   :  { %882 = vmatpush.bf16.msra.mxu1 %v2431_v7  ;;  %1397 = vmatpush.bf16.msra.mxu2 %v2501_v8  ;;  %v2472_v24 = vld [vmem:[%s3278_s0 + $0x118] sm:$0xff]  ;;  %v2473_v28 = vld [vmem:[%s3278_s0 + $0x120] sm:$0xff]  ;;  %v2474_v32 = vld [vmem:[%s3278_s0 + $0x128] sm:$0xff] }
   0xc   :  { %v2440_v33 = vld [vmem:[%s3278_s0 + $0xb0] sm:$0xff]  ;;  %v2441_v37 = vld [vmem:[%s3278_s0 + $0xb8] sm:$0xff]  ;;  %v2442_v41 = vld [vmem:[%s3278_s0 + $0xc0] sm:$0xff] }
   0xd   :  { %1953 = vmatmul.msk.bf16.vlgmr.msra.gmra.mxu0 %vm335_vm0, %v2434_v9  ;;  %1977 = vmatmul.msk.bf16.vlgmr.msra.gmra.mxu3 %vm335_vm0, %v2458_v10  ;;  %v2464_v34 = vld [vmem:[%s3278_s0 + $0x170] sm:$0xff]  ;;  %v2465_v38 = vld [vmem:[%s3278_s0 + $0x178] sm:$0xff]  ;;  %v2423_v42 = vld [vmem:[%s3278_s0 + $0xc0] sm:$0xff] }
   0xe   :  { %2554 = vmatpush.bf16.msrb.mxu3 %v2433_v1  ;;  %2125 = vmatmul.msk.bf16.vlgmr.msra.gmra.mxu1 %vm335_vm0, %v2399_v11  ;;  %v2405_v35 = vld [vmem:[%s3278_s0 + $0x30] sm:$0xff]  ;;  %v2406_v39 = vld [vmem:[%s3278_s0 + $0x38] sm:$0xff]  ;;  %v2407_v44 = vld [vmem:[%s3278_s0 + $0x40] sm:$0xff] }
   0xf   :  { %2367 = vmatmul.msk.bf16.vlgmr.msra.gmra.mxu2 %vm335_vm0, %v2469_v12  ;;  %v2475_v36 = vld [vmem:[%s3278_s0 + $0x130] sm:$0xff]  ;;  %v2476_v40 = vld [vmem:[%s3278_s0 + $0x138] sm:$0xff]  ;;  %v2477_v45 = vld [vmem:[%s3278_s0 + $0x140] sm:$0xff] }
  0x10   :  { %v2443_v56 = vld [vmem:[%s3278_s0 + $0xc8] sm:$0xff]  ;;  %v2425_v9 = vld [vmem:[%s3278_s0 + $0xd0] sm:$0xff] }
  0x11   :  { %v2424_v57 = vld [vmem:[%s3278_s0 + $0xc8] sm:$0xff]  ;;  %v2409_v12 = vld [vmem:[%s3278_s0 + $0x50] sm:$0xff] }
  0x12   :  { %2555 = vmatpush.bf16.msrb.mxu3 %v2432_v4  ;;  %v2408_v60 = vld [vmem:[%s3278_s0 + $0x48] sm:$0xff] }
  0x13   :  { %v2478_v61 = vld [vmem:[%s3278_s0 + $0x148] sm:$0xff] }
  0x16   :  { %2556 = vmatpush.bf16.msrb.mxu3 %v2431_v7 }
  0x1a   :  { %2557 = vmatpush.bf16.msra.mxu3 %v2503_v2 }
  0x1d   :  { %1954 = vmatmul.msk.bf16.gmra.mxu0 %vm335_vm0, %v2435_v13  ;;  %1978 = vmatmul.msk.bf16.gmra.mxu3 %vm335_vm0, %v2459_v14  ;;  %v2479_v13 = vld [vmem:[%s3278_s0 + $0x150] sm:$0xff] }
  0x1e   :  { %2558 = vmatpush.bf16.msra.mxu3 %v2502_v5  ;;  %2126 = vmatmul.msk.bf16.gmra.mxu1 %vm335_vm0, %v2400_v15 }
  0x1f   :  { %2368 = vmatmul.msk.bf16.gmra.mxu2 %vm335_vm0, %v2470_v16 }
  0x22   :  { %2559 = vmatpush.bf16.msra.mxu3 %v2501_v8  ;;  %v2444_v8 = vld [vmem:[%s3278_s0 + $0xd0] sm:$0xff] }
  0x2d   :  { %1955 = vmatmul.msk.bf16.gmra.mxu0 %vm335_vm0, %v2436_v17  ;;  %1979 = vmatmul.msk.bf16.gmra.mxu3 %vm335_vm0, %v2460_v18 }
  0x2e   :  { %2127 = vmatmul.msk.bf16.gmra.mxu1 %vm335_vm0, %v2401_v19 }
  0x2f   :  { %2369 = vmatmul.msk.bf16.gmra.mxu2 %vm335_vm0, %v2471_v20 }
  0x3d   :  { %1956 = vmatmul.msk.bf16.gmra.mxu0 %vm335_vm0, %v2437_v21  ;;  %1980 = vmatmul.msk.bf16.gmra.mxu3 %vm335_vm0, %v2461_v22 }
  0x3e   :  { %2128 = vmatmul.msk.bf16.gmra.mxu1 %vm335_vm0, %v2402_v23 }
  0x3f   :  { %2370 = vmatmul.msk.bf16.gmra.mxu2 %vm335_vm0, %v2472_v24  ;;  %v2445_v24 = vld [vmem:[%s3278_s0 + $0xd8] sm:$0xff] }
  0x4d   :  { %1957 = vmatmul.msk.bf16.gmra.mxu0 %vm335_vm0, %v2438_v25  ;;  %1981 = vmatmul.msk.bf16.gmra.mxu3 %vm335_vm0, %v2462_v26  ;;  %v2426_v25 = vld [vmem:[%s3278_s0 + $0xd8] sm:$0xff] }
  0x4e   :  { %2129 = vmatmul.msk.bf16.gmra.mxu1 %vm335_vm0, %v2403_v27 }
  0x4f   :  { %2371 = vmatmul.msk.bf16.gmra.mxu2 %vm335_vm0, %v2473_v28  ;;  %v2410_v28 = vld [vmem:[%s3278_s0 + $0x58] sm:$0xff] }
  0x5d   :  { %1958 = vmatmul.msk.bf16.gmra.mxu0 %vm335_vm0, %v2439_v29  ;;  %1982 = vmatmul.msk.bf16.gmra.mxu3 %vm335_vm0, %v2463_v30  ;;  %v2480_v29 = vld [vmem:[%s3278_s0 + $0x158] sm:$0xff] }
  0x5e   :  { %2130 = vmatmul.msk.bf16.gmra.mxu1 %vm335_vm0, %v2404_v31 }
  0x5f   :  { %2372 = vmatmul.msk.bf16.gmra.mxu2 %vm335_vm0, %v2474_v32 }
  0x6d   :  { %1959 = vmatmul.msk.bf16.gmra.mxu0 %vm335_vm0, %v2440_v33  ;;  %1983 = vmatmul.msk.bf16.gmra.mxu3 %vm335_vm0, %v2464_v34 }
  0x6e   :  { %2131 = vmatmul.msk.bf16.gmra.mxu1 %vm335_vm0, %v2405_v35 }
  0x6f   :  { %2373 = vmatmul.msk.bf16.gmra.mxu2 %vm335_vm0, %v2475_v36 }
  0x7d   :  { %1960 = vmatmul.msk.bf16.gmra.mxu0 %vm335_vm0, %v2441_v37  ;;  %1984 = vmatmul.msk.bf16.gmra.mxu3 %vm335_vm0, %v2465_v38 }
  0x7e   :  { %2132 = vmatmul.msk.bf16.gmra.mxu1 %vm335_vm0, %v2406_v39 }
  0x7f   :  { %2374 = vmatmul.msk.bf16.gmra.mxu2 %vm335_vm0, %v2476_v40  ;;  %v2446_v40 = vld [vmem:[%s3278_s0 + $0xe0] sm:$0xff] }
  0x8a   :  { %v441_v43 = vpop.f32.mrf.mxu0 }
  0x8b   :  { %v884_v46 = vpop.f32.mrf.mxu1 }
  0x8c   :  { %v885_v47 = vadd.f32 %v884_v46, %v441_v43 }
  0x8d   :  { %1961 = vmatmul.msk.bf16.gmra.mxu0 %vm335_vm0, %v2442_v41  ;;  %2149 = vmatmul.msk.bf16.vlgmr.msrb.gmra.mxu3 %vm335_vm0, %v2423_v42  ;;  %v2427_v41 = vld [vmem:[%s3278_s0 + $0xe0] sm:$0xff] }
  0x8e   :  { %2133 = vmatmul.msk.bf16.gmra.mxu1 %vm335_vm0, %v2407_v44  ;;  %v2411_v44 = vld [vmem:[%s3278_s0 + $0x60] sm:$0xff] }
  0x8f   :  { %2375 = vmatmul.msk.bf16.gmra.mxu2 %vm335_vm0, %v2477_v45  ;;  %v2481_v45 = vld [vmem:[%s3278_s0 + $0x160] sm:$0xff] }
  0x90   :  { %v2752_v48 = vpop.f32.mrf.mxu3 }
  0x92   :  { %v1399_v49 = vpop.f32.mrf.mxu2  ;;  %v443_v51 = vpop.f32.mrf.mxu0 }
  0x93   :  { %v2754_v50 = vadd.f32 %v1399_v49, %v885_v47  ;;  %v886_v52 = vpop.f32.mrf.mxu1 }
  0x94   :  { %v887_v53 = vadd.f32 %v886_v52, %v443_v51 }
  0x98   :  { %v2756_v54 = vpop.f32.mrf.mxu3 }
  0x9a   :  { %v1401_v55 = vpop.f32.mrf.mxu2  ;;  %v446_v59 = vpop.f32.mrf.mxu0 }
  0x9b   :  { %v2764_v58 = vadd.f32 %v1401_v55, %v887_v53  ;;  %v889_v62 = vpop.f32.mrf.mxu1 }
  0x9c   :  { %v890_v63 = vadd.f32 %v889_v62, %v446_v59 }
  0x9d   :  { %1962 = vmatmul.msk.bf16.gmra.mxu0 %vm335_vm0, %v2443_v56  ;;  %2150 = vmatmul.msk.bf16.gmra.mxu3 %vm335_vm0, %v2424_v57 }
  0x9e   :  { %2134 = vmatmul.msk.bf16.gmra.mxu1 %vm335_vm0, %v2408_v60  ;;  %v2447_v60 = vld [vmem:[%s3278_s0 + $0xe8] sm:$0xff] }
  0x9f   :  { %2376 = vmatmul.msk.bf16.gmra.mxu2 %vm335_vm0, %v2478_v61  ;;  %v2428_v61 = vld [vmem:[%s3278_s0 + $0xe8] sm:$0xff] }
  0xa0   :  { %v2776_v0 = vpop.f32.mrf.mxu3 }
  0xa2   :  { %v1404_v1 = vpop.f32.mrf.mxu2  ;;  %v448_v3 = vpop.f32.mrf.mxu0 }
  0xa3   :  { %v2778_v2 = vadd.f32 %v1404_v1, %v890_v63  ;;  %v891_v4 = vpop.f32.mrf.mxu1  ;;  %v2412_v1 = vld [vmem:[%s3278_s0 + $0x68] sm:$0xff] }
  0xa4   :  { %v892_v5 = vadd.f32 %v891_v4, %v448_v3  ;;  %v2482_v3 = vld [vmem:[%s3278_s0 + $0x168] sm:$0xff] }
  0xa8   :  { %v2780_v6 = vpop.f32.mrf.mxu3 }
  0xaa   :  { %v1406_v7 = vpop.f32.mrf.mxu2  ;;  %v451_v11 = vpop.f32.mrf.mxu0 }
  0xab   :  { %v2788_v10 = vadd.f32 %v1406_v7, %v892_v5  ;;  %v894_v14 = vpop.f32.mrf.mxu1 }
  0xac   :  { %v895_v15 = vadd.f32 %v894_v14, %v451_v11 }
  0xad   :  { %1963 = vmatmul.msk.bf16.gmra.mxu0 %vm335_vm0, %v2444_v8  ;;  %2151 = vmatmul.msk.bf16.gmra.mxu3 %vm335_vm0, %v2425_v9 }
  0xae   :  { %2135 = vmatmul.msk.bf16.gmra.mxu1 %vm335_vm0, %v2409_v12 }
  0xaf   :  { %2377 = vmatmul.msk.bf16.gmra.mxu2 %vm335_vm0, %v2479_v13 }
  0xb0   :  { %v2800_v16 = vpop.f32.mrf.mxu3 }
  0xb2   :  { %v1409_v17 = vpop.f32.mrf.mxu2  ;;  %v453_v19 = vpop.f32.mrf.mxu0 }
  0xb3   :  { %v2802_v18 = vadd.f32 %v1409_v17, %v895_v15  ;;  %v896_v20 = vpop.f32.mrf.mxu1  ;;  %v2448_v17 = vld [vmem:[%s3278_s0 + $0xf0] sm:$0xff] }
  0xb4   :  { %v897_v21 = vadd.f32 %v896_v20, %v453_v19  ;;  %v2429_v19 = vld [vmem:[%s3278_s0 + $0xf0] sm:$0xff] }
  0xb8   :  { %v2804_v22 = vpop.f32.mrf.mxu3 }
  0xba   :  { %v1411_v23 = vpop.f32.mrf.mxu2  ;;  %v456_v27 = vpop.f32.mrf.mxu0 }
  0xbb   :  { %v2812_v26 = vadd.f32 %v1411_v23, %v897_v21  ;;  %v899_v30 = vpop.f32.mrf.mxu1  ;;  %v2413_v23 = vld [vmem:[%s3278_s0 + $0x70] sm:$0xff] }
  0xbc   :  { %v900_v31 = vadd.f32 %v899_v30, %v456_v27 }
  0xbd   :  { %1964 = vmatmul.msk.bf16.gmra.mxu0 %vm335_vm0, %v2445_v24  ;;  %2152 = vmatmul.msk.bf16.gmra.mxu3 %vm335_vm0, %v2426_v25  ;;  %v2483_v24 = vld [vmem:[%s3278_s0 + $0x170] sm:$0xff] }
  0xbe   :  { %2136 = vmatmul.msk.bf16.gmra.mxu1 %vm335_vm0, %v2410_v28 }
  0xbf   :  { %2378 = vmatmul.msk.bf16.gmra.mxu2 %vm335_vm0, %v2480_v29 }
  0xc0   :  { %v2824_v32 = vpop.f32.mrf.mxu3 }
  0xc2   :  { %v1414_v33 = vpop.f32.mrf.mxu2  ;;  %v458_v35 = vpop.f32.mrf.mxu0 }
  0xc3   :  { %v2826_v34 = vadd.f32 %v1414_v33, %v900_v31  ;;  %v901_v36 = vpop.f32.mrf.mxu1 }
  0xc4   :  { %v902_v37 = vadd.f32 %v901_v36, %v458_v35 }
  0xc8   :  { %v2828_v38 = vpop.f32.mrf.mxu3 }
  0xca   :  { %v1416_v39 = vpop.f32.mrf.mxu2  ;;  %v461_v43 = vpop.f32.mrf.mxu0 }
  0xcb   :  { %v2836_v42 = vadd.f32 %v1416_v39, %v902_v37  ;;  %v904_v46 = vpop.f32.mrf.mxu1  ;;  %v2449_v39 = vld [vmem:[%s3278_s0 + $0xf8] sm:$0xff] }
  0xcc   :  { %v905_v47 = vadd.f32 %v904_v46, %v461_v43 }
  0xcd   :  { %1965 = vmatmul.msk.bf16.gmra.mxu0 %vm335_vm0, %v2446_v40  ;;  %2153 = vmatmul.msk.bf16.gmra.mxu3 %vm335_vm0, %v2427_v41  ;;  %v2430_v40 = vld [vmem:[%s3278_s0 + $0xf8] sm:$0xff] }
  0xce   :  { %2137 = vmatmul.msk.bf16.gmra.mxu1 %vm335_vm0, %v2411_v44  ;;  %v2414_v44 = vld [vmem:[%s3278_s0 + $0x78] sm:$0xff] }
  0xcf   :  { %2379 = vmatmul.msk.bf16.gmra.mxu2 %vm335_vm0, %v2481_v45  ;;  %v2484_v45 = vld [vmem:[%s3278_s0 + $0x178] sm:$0xff] }
  0xd0   :  { %v2848_v49 = vpop.f32.mrf.mxu3 }
  0xd2   :  { %v1419_v51 = vpop.f32.mrf.mxu2  ;;  %v463_v53 = vpop.f32.mrf.mxu0 }
  0xd3   :  { %v2850_v52 = vadd.f32 %v1419_v51, %v905_v47  ;;  %v906_v55 = vpop.f32.mrf.mxu1 }
  0xd4   :  { %v907_v56 = vadd.f32 %v906_v55, %v463_v53 }
  0xd8   :  { %v2852_v57 = vpop.f32.mrf.mxu3 }
  0xda   :  { %v1421_v59 = vpop.f32.mrf.mxu2  ;;  %v466_v63 = vpop.f32.mrf.mxu0 }
  0xdb   :  { %v2860_v62 = vadd.f32 %v1421_v59, %v907_v56  ;;  %v909_v4 = vpop.f32.mrf.mxu1 }
  0xdc   :  { %v910_v5 = vadd.f32 %v909_v4, %v466_v63 }
  0xdd   :  { %1966 = vmatmul.msk.bf16.gmra.mxu0 %vm335_vm0, %v2447_v60  ;;  %2154 = vmatmul.msk.bf16.gmra.mxu3 %vm335_vm0, %v2428_v61 }
  0xde   :  { %2138 = vmatmul.msk.bf16.gmra.mxu1 %vm335_vm0, %v2412_v1  ;;  %v2450_v1 = vld [vmem:[%s3278_s0 + $0x100] sm:$0xff] }
  0xdf   :  { %2380 = vmatmul.msk.bf16.gmra.mxu2 %vm335_vm0, %v2482_v3  ;;  %v2493_v3 = vld [vmem:[%s3278_s0 + $0x1c0] sm:$0xff] }
  0xe0   :  { %v2872_v7 = vpop.f32.mrf.mxu3 }
  0xe2   :  { %v1424_v8 = vpop.f32.mrf.mxu2  ;;  %v468_v11 = vpop.f32.mrf.mxu0 }
  0xe3   :  { %v2874_v9 = vadd.f32 %v1424_v8, %v910_v5  ;;  %v911_v12 = vpop.f32.mrf.mxu1  ;;  %v2415_v8 = vld [vmem:[%s3278_s0 + $0x80] sm:$0xff] }
  0xe4   :  { %v912_v13 = vadd.f32 %v911_v12, %v468_v11  ;;  %v2485_v11 = vld [vmem:[%s3278_s0 + $0x180] sm:$0xff] }
  0xe8   :  { %v2876_v14 = vpop.f32.mrf.mxu3 }
  0xe9   :  { %3287 = vst [vmem:[#allocation2_spill] sm:$0xff] %v2876_v14 }
  0xea   :  { %v1426_v15 = vpop.f32.mrf.mxu2  ;;  %v471_v21 = vpop.f32.mrf.mxu0 }
  0xeb   :  { %v2884_v20 = vadd.f32 %v1426_v15, %v912_v13  ;;  %v914_v25 = vpop.f32.mrf.mxu1 }
  0xec   :  { %v915_v27 = vadd.f32 %v914_v25, %v471_v21 }
  0xed   :  { %1967 = vmatmul.msk.bf16.gmra.mxu0 %vm335_vm0, %v2448_v17  ;;  %2155 = vmatmul.msk.bf16.gmra.mxu3 %vm335_vm0, %v2429_v19 }
  0xee   :  { %2139 = vmatmul.msk.bf16.gmra.mxu1 %vm335_vm0, %v2413_v23 }
  0xef   :  { %2381 = vmatmul.msk.bf16.gmra.mxu2 %vm335_vm0, %v2483_v24 }
  0xf0   :  { %v2896_v28 = vpop.f32.mrf.mxu3 }
  0xf1   :  { %3288 = vst [vmem:[#allocation3_spill] sm:$0xff] %v2896_v28 }
  0xf2   :  { %v1429_v29 = vpop.f32.mrf.mxu2  ;;  %v473_v31 = vpop.f32.mrf.mxu0 }
  0xf3   :  { %v2898_v30 = vadd.f32 %v1429_v29, %v915_v27  ;;  %v916_v33 = vpop.f32.mrf.mxu1 }
  0xf4   :  { %v917_v35 = vadd.f32 %v916_v33, %v473_v31  ;;  %v2451_v31 = vld [vmem:[%s3278_s0 + $0x108] sm:$0xff] }
  0xf5   :  { %3289 = vst [vmem:[#allocation4_spill] sm:$0xff] %v2898_v30  ;;  %v2494_v33 = vld [vmem:[%s3278_s0 + $0x1c8] sm:$0xff] }
  0xf8   :  { %v2900_v36 = vpop.f32.mrf.mxu3 }
  0xf9   :  { %3290 = vst [vmem:[#allocation5_spill] sm:$0xff] %v2900_v36 }
  0xfa   :  { %v1431_v37 = vpop.f32.mrf.mxu2  ;;  %v476_v43 = vpop.f32.mrf.mxu0 }
  0xfb   :  { %v2908_v41 = vadd.f32 %v1431_v37, %v917_v35  ;;  %v919_v46 = vpop.f32.mrf.mxu1 }
  0xfc   :  { %v920_v47 = vadd.f32 %v919_v46, %v476_v43 }
  0xfd   :  { %3291 = vst [vmem:[#allocation6_spill] sm:$0xff] %v2908_v41  ;;  %1968 = vmatmul.msk.bf16.gmra.mxu0 %vm335_vm0, %v2449_v39  ;;  %2156 = vmatmul.msk.bf16.gmra.mxu3 %vm335_vm0, %v2430_v40  ;;  %v2416_v39 = vld [vmem:[%s3278_s0 + $0x88] sm:$0xff] }
  0xfe   :  { %2140 = vmatmul.msk.bf16.gmra.mxu1 %vm335_vm0, %v2414_v44  ;;  %v2486_v40 = vld [vmem:[%s3278_s0 + $0x188] sm:$0xff] }
  0xff   :  { %2382 = vmatmul.msk.bf16.gmra.mxu2 %vm335_vm0, %v2484_v45 }
 0x100   :  { %v2920_v51 = vpop.f32.mrf.mxu3 }
 0x101   :  { %3292 = vst [vmem:[#allocation7_spill] sm:$0xff] %v2920_v51 }
 0x102   :  { %v1434_v53 = vpop.f32.mrf.mxu2  ;;  %v478_v56 = vpop.f32.mrf.mxu0 }
 0x103   :  { %v2922_v55 = vadd.f32 %v1434_v53, %v920_v47  ;;  %v921_v59 = vpop.f32.mrf.mxu1 }
 0x104   :  { %v922_v60 = vadd.f32 %v921_v59, %v478_v56 }
 0x108   :  { %v2924_v61 = vpop.f32.mrf.mxu3 }
 0x109   :  { %3293 = vst [vmem:[#allocation8_spill] sm:$0xff] %v2924_v61 }
 0x10a   :  { %v1436_v63 = vpop.f32.mrf.mxu2  ;;  %v481_v5 = vpop.f32.mrf.mxu0 }
 0x10b   :  { %v2932_v4 = vadd.f32 %v1436_v63, %v922_v60  ;;  %v924_v12 = vpop.f32.mrf.mxu1 }
 0x10c   :  { %v925_v13 = vadd.f32 %v924_v12, %v481_v5  ;;  %v2452_v5 = vld [vmem:[%s3278_s0 + $0x110] sm:$0xff] }
 0x10d   :  { %1969 = vmatmul.msk.bf16.gmra.mxu0 %vm335_vm0, %v2450_v1  ;;  %2391 = vmatmul.msk.bf16.vlgmr.msra.gmra.mxu3 %vm335_vm0, %v2493_v3 }
 0x10e   :  { %2141 = vmatmul.msk.bf16.gmra.mxu1 %vm335_vm0, %v2415_v8  ;;  %v2495_v8 = vld [vmem:[%s3278_s0 + $0x1d0] sm:$0xff] }
 0x10f   :  { %2383 = vmatmul.msk.bf16.gmra.mxu2 %vm335_vm0, %v2485_v11 }
 0x110   :  { %v2944_v15 = vpop.f32.mrf.mxu3 }
 0x112   :  { %v1439_v17 = vpop.f32.mrf.mxu2  ;;  %v483_v21 = vpop.f32.mrf.mxu0 }
 0x113   :  { %v2946_v19 = vadd.f32 %v1439_v17, %v925_v13  ;;  %v926_v23 = vpop.f32.mrf.mxu1  ;;  %v2417_v13 = vld [vmem:[%s3278_s0 + $0x90] sm:$0xff] }
 0x114   :  { %v927_v25 = vadd.f32 %v926_v23, %v483_v21  ;;  %v2487_v17 = vld [vmem:[%s3278_s0 + $0x190] sm:$0xff] }
 0x118   :  { %v2950_v27 = vpop.f32.mrf.mxu3 }
 0x11a   :  { %v1441_v29 = vpop.f32.mrf.mxu2  ;;  %v486_v37 = vpop.f32.mrf.mxu0 }
 0x11b   :  { %v2958_v35 = vadd.f32 %v1441_v29, %v927_v25  ;;  %v929_v43 = vpop.f32.mrf.mxu1 }
 0x11c   :  { %v930_v45 = vadd.f32 %v929_v43, %v486_v37 }
 0x11d   :  { %1970 = vmatmul.msk.bf16.gmra.mxu0 %vm335_vm0, %v2451_v31  ;;  %2392 = vmatmul.msk.bf16.gmra.mxu3 %vm335_vm0, %v2494_v33 }
 0x11e   :  { %2142 = vmatmul.msk.bf16.gmra.mxu1 %vm335_vm0, %v2416_v39 }
 0x11f   :  { %2384 = vmatmul.msk.bf16.gmra.mxu2 %vm335_vm0, %v2486_v40 }
 0x120   :  { %v2972_v46 = vpop.f32.mrf.mxu3 }
 0x122   :  { %v1444_v47 = vpop.f32.mrf.mxu2  ;;  %v488_v56 = vpop.f32.mrf.mxu0 }
 0x123   :  { %v2974_v53 = vadd.f32 %v1444_v47, %v930_v45  ;;  %v931_v59 = vpop.f32.mrf.mxu1 }
 0x124   :  { %v932_v63 = vadd.f32 %v931_v59, %v488_v56  ;;  %v2453_v56 = vld [vmem:[%s3278_s0 + $0x118] sm:$0xff] }
 0x125   :  { %v2496_v59 = vld [vmem:[%s3278_s0 + $0x1d8] sm:$0xff] }
 0x128   :  { %v2978_v1 = vpop.f32.mrf.mxu3 }
 0x12a   :  { %v1446_v3 = vpop.f32.mrf.mxu2  ;;  %v491_v12 = vpop.f32.mrf.mxu0 }
 0x12b   :  { %v2986_v11 = vadd.f32 %v1446_v3, %v932_v63  ;;  %v934_v21 = vpop.f32.mrf.mxu1 }
 0x12c   :  { %v935_v25 = vadd.f32 %v934_v21, %v491_v12 }
 0x12d   :  { %1971 = vmatmul.msk.bf16.gmra.mxu0 %vm335_vm0, %v2452_v5  ;;  %2393 = vmatmul.msk.bf16.gmra.mxu3 %vm335_vm0, %v2495_v8  ;;  %v2418_v5 = vld [vmem:[%s3278_s0 + $0x98] sm:$0xff] }
 0x12e   :  { %2143 = vmatmul.msk.bf16.gmra.mxu1 %vm335_vm0, %v2417_v13  ;;  %v2488_v8 = vld [vmem:[%s3278_s0 + $0x198] sm:$0xff] }
 0x12f   :  { %2385 = vmatmul.msk.bf16.gmra.mxu2 %vm335_vm0, %v2487_v17 }
 0x130   :  { %v3000_v29 = vpop.f32.mrf.mxu3 }
 0x132   :  { %v1449_v31 = vpop.f32.mrf.mxu2  ;;  %v493_v37 = vpop.f32.mrf.mxu0 }
 0x133   :  { %v3002_v33 = vadd.f32 %v1449_v31, %v935_v25  ;;  %v936_v39 = vpop.f32.mrf.mxu1 }
 0x134   :  { %v937_v43 = vadd.f32 %v936_v39, %v493_v37 }
 0x138   :  { %v3006_v45 = vpop.f32.mrf.mxu3 }
 0x13a   :  { %v1451_v47 = vpop.f32.mrf.mxu2  ;;  %v496_v3 = vpop.f32.mrf.mxu0 }
 0x13b   :  { %v3014_v63 = vadd.f32 %v1451_v47, %v937_v43  ;;  %v939_v12 = vpop.f32.mrf.mxu1 }
 0x13c   :  { %v940_v17 = vadd.f32 %v939_v12, %v496_v3 }
 0x13d   :  { %1972 = vmatmul.msk.bf16.gmra.mxu0 %vm335_vm0, %v2453_v56  ;;  %2394 = vmatmul.msk.bf16.gmra.mxu3 %vm335_vm0, %v2496_v59  ;;  %v2454_v59 = vld [vmem:[%s3278_s0 + $0x120] sm:$0xff] }
 0x13e   :  { %2144 = vmatmul.msk.bf16.gmra.mxu1 %vm335_vm0, %v2418_v5  ;;  %v2497_v5 = vld [vmem:[%s3278_s0 + $0x1e0] sm:$0xff] }
 0x13f   :  { %2386 = vmatmul.msk.bf16.gmra.mxu2 %vm335_vm0, %v2488_v8 }
 0x140   :  { %v3028_v21 = vpop.f32.mrf.mxu3 }
 0x142   :  { %v1454_v25 = vpop.f32.mrf.mxu2  ;;  %v498_v37 = vpop.f32.mrf.mxu0 }
 0x143   :  { %v3030_v31 = vadd.f32 %v1454_v25, %v940_v17  ;;  %v941_v39 = vpop.f32.mrf.mxu1  ;;  %v2419_v17 = vld [vmem:[%s3278_s0 + $0xa0] sm:$0xff] }
 0x144   :  { %v942_v47 = vadd.f32 %v941_v39, %v498_v37  ;;  %v2489_v25 = vld [vmem:[%s3278_s0 + $0x1a0] sm:$0xff] }
 0x148   :  { %v3034_v3 = vpop.f32.mrf.mxu3 }
 0x14a   :  { %v1456_v56 = vpop.f32.mrf.mxu2  ;;  %v501_v12 = vpop.f32.mrf.mxu0 }
 0x14b   :  { %v3042_v8 = vadd.f32 %v1456_v56, %v942_v47  ;;  %v944_v37 = vpop.f32.mrf.mxu1 }
 0x14c   :  { %v945_v43 = vadd.f32 %v944_v37, %v501_v12  ;;  %v2420_v37 = vld [vmem:[%s3278_s0 + $0xa8] sm:$0xff] }
 0x14d   :  { %1973 = vmatmul.msk.bf16.gmra.mxu0 %vm335_vm0, %v2454_v59  ;;  %2395 = vmatmul.msk.bf16.gmra.mxu3 %vm335_vm0, %v2497_v5  ;;  %v2455_v5 = vld [vmem:[%s3278_s0 + $0x128] sm:$0xff] }
 0x14e   :  { %2145 = vmatmul.msk.bf16.gmra.mxu1 %vm335_vm0, %v2419_v17  ;;  %v2498_v17 = vld [vmem:[%s3278_s0 + $0x1e8] sm:$0xff] }
 0x14f   :  { %2387 = vmatmul.msk.bf16.gmra.mxu2 %vm335_vm0, %v2489_v25 }
 0x150   :  { %v3056_v47 = vpop.f32.mrf.mxu3 }
 0x152   :  { %v1459_v56 = vpop.f32.mrf.mxu2  ;;  %v503_v40 = vpop.f32.mrf.mxu0 }
 0x153   :  { %v3058_v13 = vadd.f32 %v1459_v56, %v945_v43  ;;  %v946_v23 = vpop.f32.mrf.mxu1 }
 0x154   :  { %v947_v39 = vadd.f32 %v946_v23, %v503_v40  ;;  %v2490_v23 = vld [vmem:[%s3278_s0 + $0x1a8] sm:$0xff] }
 0x158   :  { %v3062_v12 = vpop.f32.mrf.mxu3 }
 0x15a   :  { %v1461_v59 = vpop.f32.mrf.mxu2  ;;  %v506_v43 = vpop.f32.mrf.mxu0 }
 0x15b   :  { %v3070_v25 = vadd.f32 %v1461_v59, %v947_v39  ;;  %v949_v40 = vpop.f32.mrf.mxu1 }
 0x15c   :  { %v950_v60 = vadd.f32 %v949_v40, %v506_v43  ;;  %v2421_v40 = vld [vmem:[%s3278_s0 + $0xb0] sm:$0xff] }
 0x15d   :  { %1974 = vmatmul.msk.bf16.gmra.mxu0 %vm335_vm0, %v2455_v5  ;;  %2396 = vmatmul.msk.bf16.gmra.mxu3 %vm335_vm0, %v2498_v17  ;;  %v2456_v17 = vld [vmem:[%s3278_s0 + $0x130] sm:$0xff] }
 0x15e   :  { %2146 = vmatmul.msk.bf16.gmra.mxu1 %vm335_vm0, %v2420_v37  ;;  %v2499_v37 = vld [vmem:[%s3278_s0 + $0x1f0] sm:$0xff] }
 0x15f   :  { %2388 = vmatmul.msk.bf16.gmra.mxu2 %vm335_vm0, %v2490_v23 }
 0x160   :  { %v3084_v39 = vpop.f32.mrf.mxu3 }
 0x162   :  { %v1464_v59 = vpop.f32.mrf.mxu2  ;;  %v508_v24 = vpop.f32.mrf.mxu0 }
 0x163   :  { %v3086_v44 = vadd.f32 %v1464_v59, %v950_v60  ;;  %v951_v61 = vpop.f32.mrf.mxu1 }
 0x164   :  { %v952_v56 = vadd.f32 %v951_v61, %v508_v24  ;;  %v2491_v61 = vld [vmem:[%s3278_s0 + $0x1b0] sm:$0xff] }
 0x168   :  { %v3090_v43 = vpop.f32.mrf.mxu3 }
 0x169   :  { %3294 = vst [vmem:[#allocation9_spill] sm:$0xff] %v3090_v43 }
 0x16a   :  { %v1466_v5 = vpop.f32.mrf.mxu2  ;;  %v511_v60 = vpop.f32.mrf.mxu0 }
 0x16b   :  { %v3098_v23 = vadd.f32 %v1466_v5, %v952_v56  ;;  %v954_v24 = vpop.f32.mrf.mxu1 }
 0x16c   :  { %v955_v51 = vadd.f32 %v954_v24, %v511_v60  ;;  %v2422_v24 = vld [vmem:[%s3278_s0 + $0xb8] sm:$0xff] }
 0x16d   :  { %3295 = vst [vmem:[#allocation10_spill] sm:$0xff] %v3098_v23  ;;  %1975 = vmatmul.msk.bf16.gmra.mxu0 %vm335_vm0, %v2456_v17  ;;  %2397 = vmatmul.msk.bf16.gmra.mxu3 %vm335_vm0, %v2499_v37  ;;  %v2457_v37 = vld [vmem:[%s3278_s0 + $0x138] sm:$0xff] }
 0x16e   :  { %2147 = vmatmul.msk.bf16.gmra.mxu1 %vm335_vm0, %v2421_v40  ;;  %v2500_v40 = vld [vmem:[%s3278_s0 + $0x1f8] sm:$0xff] }
 0x16f   :  { %2389 = vmatmul.msk.bf16.gmra.mxu2 %vm335_vm0, %v2491_v61 }
 0x170   :  { %v3112_v56 = vpop.f32.mrf.mxu3 }
 0x171   :  { %3296 = vst [vmem:[#allocation11_spill] sm:$0xff] %v3112_v56 }
 0x172   :  { %v1469_v5 = vpop.f32.mrf.mxu2  ;;  %v513_v28 = vpop.f32.mrf.mxu0 }
 0x173   :  { %v3114_v36 = vadd.f32 %v1469_v5, %v955_v51  ;;  %v956_v43 = vpop.f32.mrf.mxu1 }
 0x174   :  { %v957_v59 = vadd.f32 %v956_v43, %v513_v28  ;;  %v2492_v28 = vld [vmem:[%s3278_s0 + $0x1b8] sm:$0xff] }
 0x175   :  { %3297 = vst [vmem:[#allocation12_spill] sm:$0xff] %v3114_v36 }
 0x178   :  { %v3118_v60 = vpop.f32.mrf.mxu3 }
 0x179   :  { %3298 = vst [vmem:[#allocation13_spill] sm:$0xff] %v3118_v60 }
 0x17a   :  { %v1471_v17 = vpop.f32.mrf.mxu2  ;;  %v516_v51 = vpop.f32.mrf.mxu0 }
 0x17b   :  { %v3126_v61 = vadd.f32 %v1471_v17, %v957_v59  ;;  %v959_v43 = vpop.f32.mrf.mxu1 }
 0x17c   :  { %v960_v14 = vadd.f32 %v959_v43, %v516_v51 }
 0x17d   :  { %3299 = vst [vmem:[#allocation14_spill] sm:$0xff] %v3126_v61  ;;  %1976 = vmatmul.msk.bf16.gmra.mxu0 %vm335_vm0, %v2457_v37  ;;  %2398 = vmatmul.msk.bf16.gmra.mxu3 %vm335_vm0, %v2500_v40 }
 0x17e   :  { %2148 = vmatmul.msk.bf16.gmra.mxu1 %vm335_vm0, %v2422_v24 }
 0x17f   :  { %2390 = vmatmul.msk.bf16.gmra.mxu2 %vm335_vm0, %v2492_v28 }
 0x180   :  { %v3140_v59 = vpop.f32.mrf.mxu3 }
 0x181   :  { %3300 = vst [vmem:[#allocation15_spill] sm:$0xff] %v3140_v59 }
 0x182   :  { %v1474_v17 = vpop.f32.mrf.mxu2  ;;  %v518_v36 = vpop.f32.mrf.mxu0 }
 0x183   :  { %v3142_v60 = vadd.f32 %v1474_v17, %v960_v14  ;;  %v961_v30 = vpop.f32.mrf.mxu1  ;;  %v1005_v14 = vadd.f32 %v2944_v15, %v2752_v48  ;;  %v3162_v48 = vld [vmem:[%s3279_s2] ss:$0 sm:$0xff] }
 0x184   :  { %v962_v5 = vadd.f32 %v961_v30, %v518_v36 }
 0x185   :  { %3301 = vst [vmem:[#allocation16_spill] sm:$0xff] %v3142_v60 }
 0x188   :  { %v3146_v51 = vpop.f32.mrf.mxu3 }
 0x189   :  { %3302 = vst [vmem:[#allocation17_spill] sm:$0xff] %v3146_v51  ;;  %v1007_v51 = vadd.f32 %v2950_v27, %v2756_v54  ;;  %v1010_v27 = vadd.f32 %v2972_v46, %v2776_v0 }
 0x18a   :  { %v1476_v37 = vpop.f32.mrf.mxu2  ;;  %v521_v40 = vpop.f32.mrf.mxu0 }
 0x18b   :  { %v3148_v43 = vadd.f32 %v1476_v37, %v962_v5  ;;  %v964_v24 = vpop.f32.mrf.mxu1  ;;  %v3303_v5 = vmax.f32 %v2754_v50, %v2946_v19  ;;  %v3304_v50 = vmax.f32 %v2764_v58, %v2958_v35  ;;  %v3305_v58 = vmax.f32 %v2778_v2, %v2974_v53 }
 0x18c   :  { %v965_v59 = vadd.f32 %v964_v24, %v521_v40  ;;  %v1012_v35 = vadd.f32 %v2978_v1, %v2780_v6  ;;  %v1015_v2 = vadd.f32 %v3000_v29, %v2800_v16 }
 0x190   :  { %v1519_v17 = vpop.f32.mrf.mxu3 }
 0x191   :  { %v1607_v41 = vadd.f32 %v1519_v17, %v1005_v14 }
 0x192   :  { %v1479_v61 = vpop.f32.mrf.mxu2  ;;  %v523_v56 = vpop.f32.mrf.mxu0 }
 0x193   :  { %v1591_v23 = vadd.f32 %v1479_v61, %v965_v59  ;;  %v966_v30 = vpop.f32.mrf.mxu1 }
 0x194   :  { %v967_v60 = vadd.f32 %v966_v30, %v523_v56 }
 0x195   :  { %v1639_v36 = vmax.f32 %v1591_v23, %v1607_v41 }
 0x197   :  { %v1655_v37 = vmax.f32 %v3303_v5, %v1639_v36 }
 0x198   :  { %v1521_v28 = vpop.f32.mrf.mxu3 }
 0x199   :  { %v1608_v24 = vadd.f32 %v1521_v28, %v1007_v51  ;;  %v1675_v23 = vadd.f32 %v3162_v48, %v1655_v37 }
 0x19a   :  { %v1481_v40 = vpop.f32.mrf.mxu2  ;;  %v526_v61 = vpop.f32.mrf.mxu0 }
 0x19b   :  { %v1592_v15 = vadd.f32 %v1481_v40, %v967_v60  ;;  %v969_v59 = vpop.f32.mrf.mxu1  ;;  %v1691_v17 = vmax.f32 %v1675_v23, 0.0 }
 0x19c   :  { %v970_v54 = vadd.f32 %v969_v59, %v526_v61 }
 0x19d   :  { %v1640_v41 = vmax.f32 %v1592_v15, %v1608_v24 }
 0x19f   :  { %v1656_v19 = vmax.f32 %v3304_v50, %v1640_v41 }
 0x1a0   :  { %v1524_v51 = vpop.f32.mrf.mxu3 }
 0x1a1   :  { %v1676_v56 = vadd.f32 %v3162_v48, %v1656_v19  ;;  %v1609_v14 = vadd.f32 %v1524_v51, %v1010_v27 }
 0x1a2   :  { %v1484_v28 = vpop.f32.mrf.mxu2  ;;  %v528_v36 = vpop.f32.mrf.mxu0 }
 0x1a3   :  { %v1692_v60 = vmax.f32 %v1676_v56, 0.0  ;;  %v1593_v30 = vadd.f32 %v1484_v28, %v970_v54  ;;  %v971_v5 = vpop.f32.mrf.mxu1  ;;  %v3306_v54 = vmax.f32 %v2788_v10, %v2986_v11  ;;  %v3307_v10 = vmax.f32 %v2802_v18, %v3002_v33 }
 0x1a4   :  { %v972_v46 = vadd.f32 %v971_v5, %v528_v36  ;;  %v1017_v11 = vadd.f32 %v3006_v45, %v2804_v22  ;;  %v1020_v18 = vadd.f32 %v3028_v21, %v2824_v32 }
 0x1a5   :  { %v2507_v40 = vpack.c.bf16 %v1692_v60, %v1691_v17  ;;  %v1641_v37 = vmax.f32 %v1593_v30, %v1609_v14 }
 0x1a7   :  { %2508 = vst [vmem:[%s3280_s3] sm:$0xff] %v2507_v40   ;;  %v1657_v0 = vmax.f32 %v3305_v58, %v1641_v37 }
 0x1a8   :  { %v1526_v24 = vpop.f32.mrf.mxu3 }
 0x1a9   :  { %v1610_v61 = vadd.f32 %v1526_v24, %v1012_v35  ;;  %v1677_v19 = vadd.f32 %v3162_v48, %v1657_v0 }
 0x1aa   :  { %v1486_v15 = vpop.f32.mrf.mxu2  ;;  %v531_v41 = vpop.f32.mrf.mxu0 }
 0x1ab   :  { %v1594_v59 = vadd.f32 %v1486_v15, %v972_v46  ;;  %v974_v23 = vpop.f32.mrf.mxu1  ;;  %v1693_v28 = vmax.f32 %v1677_v19, 0.0 }
 0x1ac   :  { %v975_v56 = vadd.f32 %v974_v23, %v531_v41 }
 0x1ad   :  { %v1642_v50 = vmax.f32 %v1594_v59, %v1610_v61  ;;  %v3308_v61 = vmax.f32 %v2812_v26, %v3014_v63  ;;  %v3309_v26 = vmax.f32 %v2826_v34, %v3030_v31  ;;  %v1022_v63 = vadd.f32 %v3034_v3, %v2828_v38 }
 0x1ae   :  { %v1025_v34 = vadd.f32 %v3056_v47, %v2848_v49 }
 0x1af   :  { %v1658_v27 = vmax.f32 %v3306_v54, %v1642_v50 }
 0x1b0   :  { %v1529_v53 = vpop.f32.mrf.mxu3 }
 0x1b1   :  { %v1678_v6 = vadd.f32 %v3162_v48, %v1658_v27  ;;  %v1611_v51 = vadd.f32 %v1529_v53, %v1015_v2 }
 0x1b2   :  { %v1489_v1 = vpop.f32.mrf.mxu2  ;;  %v533_v60 = vpop.f32.mrf.mxu0 }
 0x1b3   :  { %v1694_v14 = vmax.f32 %v1678_v6, 0.0  ;;  %v1595_v17 = vadd.f32 %v1489_v1, %v975_v56  ;;  %v976_v30 = vpop.f32.mrf.mxu1 }
 0x1b4   :  { %v977_v29 = vadd.f32 %v976_v30, %v533_v60 }
 0x1b5   :  { %v2512_v36 = vpack.c.bf16 %v1694_v14, %v1693_v28  ;;  %v1643_v5 = vmax.f32 %v1595_v17, %v1611_v51 }
 0x1b7   :  { %2544 = vst [vmem:[%s3280_s3 + $0x8] sm:$0xff] %v2512_v36   ;;  %v1659_v16 = vmax.f32 %v3307_v10, %v1643_v5  ;;  %v3310_v36 = vmax.f32 %v2836_v42, %v3042_v8  ;;  %v3311_v42 = vmax.f32 %v2850_v52, %v3058_v13  ;;  %v1027_v8 = vadd.f32 %v3062_v12, %v2852_v57 }
 0x1b8   :  { %v1531_v40 = vpop.f32.mrf.mxu3  ;;  %v1030_v52 = vadd.f32 %v3084_v39, %v2872_v7  ;;  %v3315_v39 = vld [vmem:[#allocation9_spill] sm:$0xff] }
 0x1b9   :  { %v1612_v58 = vadd.f32 %v1531_v40, %v1017_v11  ;;  %v1679_v15 = vadd.f32 %v3162_v48, %v1659_v16 }
 0x1ba   :  { %v1491_v37 = vpop.f32.mrf.mxu2  ;;  %v536_v35 = vpop.f32.mrf.mxu0 }
 0x1bb   :  { %v1596_v0 = vadd.f32 %v1491_v37, %v977_v29  ;;  %v979_v46 = vpop.f32.mrf.mxu1  ;;  %v1695_v50 = vmax.f32 %v1679_v15, 0.0 }
 0x1bc   :  { %v980_v41 = vadd.f32 %v979_v46, %v536_v35 }
 0x1bd   :  { %v1644_v24 = vmax.f32 %v1596_v0, %v1612_v58 }
 0x1bf   :  { %v1660_v59 = vmax.f32 %v3308_v61, %v1644_v24 }
 0x1c0   :  { %v1534_v33 = vpop.f32.mrf.mxu3 }
 0x1c1   :  { %v1680_v22 = vadd.f32 %v3162_v48, %v1660_v59  ;;  %v1613_v23 = vadd.f32 %v1534_v33, %v1020_v18  ;;  %v3312_v33 = vmax.f32 %v2860_v62, %v3070_v25  ;;  %v3313_v62 = vmax.f32 %v2874_v9, %v3086_v44  ;;  %v3314_v25 = vld [vmem:[#allocation2_spill] sm:$0xff]  ;;  %v3318_v9 = vld [vmem:[#allocation3_spill] sm:$0xff] }
 0x1c2   :  { %v1494_v45 = vpop.f32.mrf.mxu2  ;;  %v538_v27 = vpop.f32.mrf.mxu0  ;;  %v3319_v44 = vld [vmem:[#allocation11_spill] sm:$0xff] }
 0x1c3   :  { %v1696_v19 = vmax.f32 %v1680_v22, 0.0  ;;  %v1597_v54 = vadd.f32 %v1494_v45, %v980_v41  ;;  %v981_v56 = vpop.f32.mrf.mxu1 }
 0x1c4   :  { %v982_v21 = vadd.f32 %v981_v56, %v538_v27 }
 0x1c5   :  { %v2517_v2 = vpack.c.bf16 %v1696_v19, %v1695_v50  ;;  %v1645_v6 = vmax.f32 %v1597_v54, %v1613_v23 }
 0x1c7   :  { %2545 = vst [vmem:[%s3280_s3 + $0x10] sm:$0xff] %v2517_v2   ;;  %v1661_v32 = vmax.f32 %v3309_v26, %v1645_v6 }
 0x1c8   :  { %v1536_v53 = vpop.f32.mrf.mxu3 }
 0x1c9   :  { %v1614_v51 = vadd.f32 %v1536_v53, %v1022_v63  ;;  %v1681_v30 = vadd.f32 %v3162_v48, %v1661_v32  ;;  %v1032_v32 = vadd.f32 %v3315_v39, %v3314_v25 }
 0x1ca   :  { %v1496_v1 = vpop.f32.mrf.mxu2  ;;  %v541_v14 = vpop.f32.mrf.mxu0 }
 0x1cb   :  { %v1598_v28 = vadd.f32 %v1496_v1, %v982_v21  ;;  %v984_v17 = vpop.f32.mrf.mxu1  ;;  %v1697_v11 = vmax.f32 %v1681_v30, 0.0  ;;  %v3316_v30 = vld [vmem:[#allocation10_spill] sm:$0xff] }
 0x1cc   :  { %v985_v10 = vadd.f32 %v984_v17, %v541_v14 }
 0x1cd   :  { %v1646_v60 = vmax.f32 %v1598_v28, %v1614_v51 }
 0x1cf   :  { %v1662_v5 = vmax.f32 %v3310_v36, %v1646_v60  ;;  %v3317_v36 = vmax.f32 %v2884_v20, %v3316_v30  ;;  %v3320_v20 = vld [vmem:[#allocation4_spill] sm:$0xff] }
 0x1d0   :  { %v1539_v31 = vpop.f32.mrf.mxu3 }
 0x1d1   :  { %v1682_v38 = vadd.f32 %v3162_v48, %v1662_v5  ;;  %v1615_v16 = vadd.f32 %v1539_v31, %v1025_v34  ;;  %v1035_v34 = vadd.f32 %v3319_v44, %v3318_v9 }
 0x1d2   :  { %v1499_v3 = vpop.f32.mrf.mxu2  ;;  %v543_v37 = vpop.f32.mrf.mxu0 }
 0x1d3   :  { %v1698_v29 = vmax.f32 %v1682_v38, 0.0  ;;  %v1599_v40 = vadd.f32 %v1499_v3, %v985_v10  ;;  %v986_v58 = vpop.f32.mrf.mxu1 }
 0x1d4   :  { %v987_v47 = vadd.f32 %v986_v58, %v543_v37 }
 0x1d5   :  { %v2522_v0 = vpack.c.bf16 %v1698_v29, %v1697_v11  ;;  %v1647_v35 = vmax.f32 %v1599_v40, %v1615_v16 }
 0x1d7   :  { %2546 = vst [vmem:[%s3280_s3 + $0x18] sm:$0xff] %v2522_v0   ;;  %v1663_v49 = vmax.f32 %v3311_v42, %v1647_v35  ;;  %v3321_v42 = vld [vmem:[#allocation12_spill] sm:$0xff] }
 0x1d8   :  { %v1541_v46 = vpop.f32.mrf.mxu3 }
 0x1d9   :  { %v1616_v15 = vadd.f32 %v1541_v46, %v1027_v8  ;;  %v1683_v22 = vadd.f32 %v3162_v48, %v1663_v49  ;;  %v3322_v49 = vmax.f32 %v3320_v20, %v3321_v42  ;;  %v3324_v46 = vld [vmem:[#allocation13_spill] sm:$0xff] }
 0x1da   :  { %v1501_v24 = vpop.f32.mrf.mxu2  ;;  %v546_v59 = vpop.f32.mrf.mxu0 }
 0x1db   :  { %v1600_v61 = vadd.f32 %v1501_v24, %v987_v47  ;;  %v989_v41 = vpop.f32.mrf.mxu1  ;;  %v1699_v19 = vmax.f32 %v1683_v22, 0.0  ;;  %v3323_v47 = vld [vmem:[#allocation5_spill] sm:$0xff] }
 0x1dc   :  { %v990_v23 = vadd.f32 %v989_v41, %v546_v59  ;;  %v1037_v24 = vadd.f32 %v3324_v46, %v3323_v47 }
 0x1dd   :  { %v1648_v18 = vmax.f32 %v1600_v61, %v1616_v15 }
 0x1df   :  { %v1664_v45 = vmax.f32 %v3312_v33, %v1648_v18 }
 0x1e0   :  { %v1544_v13 = vpop.f32.mrf.mxu3 }
 0x1e1   :  { %v1684_v57 = vadd.f32 %v3162_v48, %v1664_v45  ;;  %v1617_v50 = vadd.f32 %v1544_v13, %v1030_v52  ;;  %v3325_v52 = vld [vmem:[#allocation6_spill] sm:$0xff] }
 0x1e2   :  { %v1504_v12 = vpop.f32.mrf.mxu2  ;;  %v548_v56 = vpop.f32.mrf.mxu0 }
 0x1e3   :  { %v1700_v54 = vmax.f32 %v1684_v57, 0.0  ;;  %v1601_v27 = vadd.f32 %v1504_v12, %v990_v23  ;;  %v991_v2 = vpop.f32.mrf.mxu1  ;;  %v3326_v57 = vld [vmem:[#allocation14_spill] sm:$0xff] }
 0x1e4   :  { %v992_v63 = vadd.f32 %v991_v2, %v548_v56  ;;  %v3327_v13 = vmax.f32 %v3325_v52, %v3326_v57 }
 0x1e5   :  { %v2527_v6 = vpack.c.bf16 %v1700_v54, %v1699_v19  ;;  %v1649_v26 = vmax.f32 %v1601_v27, %v1617_v50  ;;  %v3328_v19 = vld [vmem:[#allocation7_spill] sm:$0xff] }
 0x1e6   :  { %v3329_v54 = vld [vmem:[#allocation15_spill] sm:$0xff] }
 0x1e7   :  { %2547 = vst [vmem:[%s3280_s3 + $0x20] sm:$0xff] %v2527_v6   ;;  %v1665_v7 = vmax.f32 %v3313_v62, %v1649_v26  ;;  %v1040_v27 = vadd.f32 %v3329_v54, %v3328_v19 }
 0x1e8   :  { %v1546_v21 = vpop.f32.mrf.mxu3 }
 0x1e9   :  { %v1618_v1 = vadd.f32 %v1546_v21, %v1032_v32  ;;  %v1685_v60 = vadd.f32 %v3162_v48, %v1665_v7 }
 0x1ea   :  { %v1506_v53 = vpop.f32.mrf.mxu2  ;;  %v551_v28 = vpop.f32.mrf.mxu0 }
 0x1eb   :  { %v1602_v51 = vadd.f32 %v1506_v53, %v992_v63  ;;  %v994_v14 = vpop.f32.mrf.mxu1  ;;  %v1701_v11 = vmax.f32 %v1685_v60, 0.0  ;;  %v3330_v53 = vld [vmem:[#allocation16_spill] sm:$0xff] }
 0x1ec   :  { %v995_v10 = vadd.f32 %v994_v14, %v551_v28  ;;  %v3332_v28 = vld [vmem:[#allocation8_spill] sm:$0xff]  ;;  %v3333_v14 = vld [vmem:[#allocation17_spill] sm:$0xff] }
 0x1ed   :  { %v1650_v17 = vmax.f32 %v1602_v51, %v1618_v1  ;;  %v3331_v1 = vmax.f32 %v2922_v55, %v3330_v53 }
 0x1ef   :  { %v1666_v5 = vmax.f32 %v3317_v36, %v1650_v17  ;;  %v1042_v17 = vadd.f32 %v3333_v14, %v3332_v28 }
 0x1f0   :  { %v1549_v31 = vpop.f32.mrf.mxu3 }
 0x1f1   :  { %v1686_v38 = vadd.f32 %v3162_v48, %v1666_v5  ;;  %v1619_v16 = vadd.f32 %v1549_v31, %v1035_v34  ;;  %v3334_v34 = vmax.f32 %v2932_v4, %v3148_v43 }
 0x1f2   :  { %v1509_v3 = vpop.f32.mrf.mxu2  ;;  %v553_v37 = vpop.f32.mrf.mxu0 }
 0x1f3   :  { %v1702_v29 = vmax.f32 %v1686_v38, 0.0  ;;  %v1603_v40 = vadd.f32 %v1509_v3, %v995_v10  ;;  %v996_v58 = vpop.f32.mrf.mxu1 }
 0x1f4   :  { %v997_v15 = vadd.f32 %v996_v58, %v553_v37 }
 0x1f5   :  { %v2532_v0 = vpack.c.bf16 %v1702_v29, %v1701_v11  ;;  %v1651_v35 = vmax.f32 %v1603_v40, %v1619_v16 }
 0x1f7   :  { %2548 = vst [vmem:[%s3280_s3 + $0x28] sm:$0xff] %v2532_v0   ;;  %v1667_v8 = vmax.f32 %v3322_v49, %v1651_v35 }
 0x1f8   :  { %v1551_v61 = vpop.f32.mrf.mxu3 }
 0x1f9   :  { %v1620_v41 = vadd.f32 %v1551_v61, %v1037_v24  ;;  %v1687_v23 = vadd.f32 %v3162_v48, %v1667_v8 }
 0x1fa   :  { %v1511_v59 = vpop.f32.mrf.mxu2  ;;  %v556_v22 = vpop.f32.mrf.mxu0 }
 0x1fb   :  { %v1604_v18 = vadd.f32 %v1511_v59, %v997_v15  ;;  %v999_v33 = vpop.f32.mrf.mxu1  ;;  %v1703_v62 = vmax.f32 %v1687_v23, 0.0 }
 0x1fc   :  { %v1000_v50 = vadd.f32 %v999_v33, %v556_v22 }
 0x1fd   :  { %v1652_v45 = vmax.f32 %v1604_v18, %v1620_v41 }
 0x1ff   :  { %v1668_v12 = vmax.f32 %v3327_v13, %v1652_v45 }
 0x200   :  { %v1554_v2 = vpop.f32.mrf.mxu3 }
 0x201   :  { %v1688_v56 = vadd.f32 %v3162_v48, %v1668_v12  ;;  %v1621_v26 = vadd.f32 %v1554_v2, %v1040_v27 }
 0x202   :  { %v1514_v6 = vpop.f32.mrf.mxu2  ;;  %v558_v63 = vpop.f32.mrf.mxu0 }
 0x203   :  { %v1704_v7 = vmax.f32 %v1688_v56, 0.0  ;;  %v1605_v25 = vadd.f32 %v1514_v6, %v1000_v50  ;;  %v1001_v21 = vpop.f32.mrf.mxu1 }
 0x204   :  { %v1002_v60 = vadd.f32 %v1001_v21, %v558_v63 }
 0x205   :  { %v2537_v39 = vpack.c.bf16 %v1704_v7, %v1703_v62  ;;  %v1653_v32 = vmax.f32 %v1605_v25, %v1621_v26 }
 0x207   :  { %2549 = vst [vmem:[%s3280_s3 + $0x30] sm:$0xff] %v2537_v39   ;;  %v1669_v51 = vmax.f32 %v3331_v1, %v1653_v32 }
 0x208   :  { %v1556_v30 = vpop.f32.mrf.mxu3 }
 0x209   :  { %v1622_v5 = vadd.f32 %v1556_v30, %v1042_v17  ;;  %v1689_v44 = vadd.f32 %v3162_v48, %v1669_v51 }
 0x20a   :  { %v1516_v36 = vpop.f32.mrf.mxu2 }
 0x20b   :  { %v1606_v10 = vadd.f32 %v1516_v36, %v1002_v60  ;;  %v1705_v3 = vmax.f32 %v1689_v44, 0.0 }
 0x20d   :  { %v1654_v9 = vmax.f32 %v1606_v10, %v1622_v5 }
 0x20f   :  { %v1670_v38 = vmax.f32 %v3334_v34, %v1654_v9 }
 0x211   :  { %v1690_v31 = vadd.f32 %v3162_v48, %v1670_v38 }
 0x213   :  { %v1706_v55 = vmax.f32 %v1690_v31, 0.0 }
 0x215   :  { %v2542_v16 = vpack.c.bf16 %v1706_v55, %v1705_v3 }
 0x217   :  { %2550 = vst [vmem:[%s3280_s3 + $0x38] sm:$0xff] %v2542_v16  }

// kernel: cifar10_cnn_forward.4
= control target key start
LH: loop header
LB: loop body
LE: loop exit
PB: predicated region body
PF: predicated region fallthrough
CT: control target
= control target key end

     0   :  { %s7270_s12 = smov 0   ;;  %s7272_s13 = smov 0   ;;  %s8521_s0 = inlined_call_operand.vmem [shape: bf16[8,512,9], index: 0, kind: input, shape index: {}]   ;;  %s8522_s1 = inlined_call_operand.vmem [shape: bf16[3,9,128], index: 1, kind: input, shape index: {}]   ;;  %s8523_s2 = inlined_call_operand.vmem [shape: f32[1,128], index: 2, kind: input, shape index: {}]   ;;  %s8524_s3 = inlined_call_operand.vmem [shape: bf16[512,128], index: 3, kind: output, shape index: {}]  }
   0x1   :  { %s7274_s14 = smov 0  }
   0x2 LB: > { %s5660_s15 = sadd.s32 4294967295, %s7247_s14   ;;  %s7287_s16 = sadd.s32 1, %s7247_s14   ;;  %s7247_s14 = sphi %s7274_s14, %s8741_s14   ;;  %s7243_s13 = sphi %s7272_s13, %s8740_s13   ;;  %s7239_s12 = sphi %s7270_s12, %s8739_s12  }
   0x3   : > { %s17_s17 = ssub.s32 %s7247_s14, %s7287_s16  ;;  %s20_s18 = sadd.s32 1, %s7243_s13 }
   0x4   : > { %p18_p0 = scmp.eq.s32.totalorder %s17_s17, 0  ;;  %p27_p1 = scmp.ne.s32.totalorder %s7243_s13, %s7239_s12 }
   0x5   : > { %p28_p2 = scmp.eq.s32.totalorder %s7247_s14, 0  ;;  %p5663_p4 = scmp.ge.s32.totalorder %s7247_s14, 2 }
   0x6   : > { %s7296_s19 = scalar_select %p18_p0, %s7243_s13, %s20_s18  }
   0x7   : > { %p29_p3 = por %p28_p2, %p27_p1  ;;  %127 = sbr.rel (%p5663_p4) target bundleno = 144 (0x90), region = 24 }
   0xc   : > { %130 = sbr.rel (!%p29_p3) target bundleno = 144 (0x90), region = 28  ;;  %s132_s20 = sand.u32 (%p29_p3), 1, %s7243_s13  }
   0xd   : > { %s6905_s21 = sshll.u32 (%p29_p3), %s7247_s14, 7  ;;  %s5664_s22 = sshll.u32 (%p29_p3), %s132_s20, 10 }
   0xe   : > { %s7304_s25 = scalar_lea.vmem (%p29_p3), %s8521_s0, %s6905_s21  ;;  %s7309_s26 = scalar_lea.vmem (%p29_p3), [#allocation2], %s5664_s22 }
   0xf   : > { %v154_v0 = vld [vmem:[%s7304_s25] sm:$0xff] (%p29_p3)   ;;  %v158_v1 = vld [vmem:[%s7304_s25 + $0x8] sm:$0xff] (%p29_p3)   ;;  %v162_v2 = vld [vmem:[%s7304_s25 + $0x10] sm:$0xff] (%p29_p3)  }
  0x10   : > { %155 = vst [vmem:[%s7309_s26] sm:$0xff] (%p29_p3), %v154_v0   ;;  %v166_v3 = vld [vmem:[%s7304_s25 + $0x18] sm:$0xff] (%p29_p3)   ;;  %v170_v4 = vld [vmem:[%s7304_s25 + $0x20] sm:$0xff] (%p29_p3)   ;;  %v174_v5 = vld [vmem:[%s7304_s25 + $0x28] sm:$0xff] (%p29_p3)  }
  0x11   : > { %159 = vst [vmem:[%s7309_s26 + $0x8] sm:$0xff] %v158_v1   ;;  %v178_v6 = vld [vmem:[%s7304_s25 + $0x30] sm:$0xff]   ;;  %v182_v7 = vld [vmem:[%s7304_s25 + $0x38] sm:$0xff]   ;;  %v186_v8 = vld [vmem:[%s7304_s25 + $0x40] sm:$0xff]  }
  0x12   : > { %163 = vst [vmem:[%s7309_s26 + $0x10] sm:$0xff] %v162_v2   ;;  %v190_v9 = vld [vmem:[%s7304_s25 + $0x48] sm:$0xff]   ;;  %v194_v10 = vld [vmem:[%s7304_s25 + $0x50] sm:$0xff]   ;;  %v198_v11 = vld [vmem:[%s7304_s25 + $0x58] sm:$0xff]  }
  0x13   : > { %167 = vst [vmem:[%s7309_s26 + $0x18] sm:$0xff] %v166_v3   ;;  %v202_v12 = vld [vmem:[%s7304_s25 + $0x60] sm:$0xff]   ;;  %v206_v13 = vld [vmem:[%s7304_s25 + $0x68] sm:$0xff]   ;;  %v210_v14 = vld [vmem:[%s7304_s25 + $0x70] sm:$0xff]  }
  0x14   : > { %171 = vst [vmem:[%s7309_s26 + $0x20] sm:$0xff] %v170_v4   ;;  %v214_v15 = vld [vmem:[%s7304_s25 + $0x78] sm:$0xff]   ;;  %v218_v16 = vld [vmem:[%s7304_s25 + $0x100] sm:$0xff]   ;;  %v222_v17 = vld [vmem:[%s7304_s25 + $0x108] sm:$0xff]  }
  0x15   : > { %175 = vst [vmem:[%s7309_s26 + $0x28] sm:$0xff] %v174_v5   ;;  %v226_v18 = vld [vmem:[%s7304_s25 + $0x110] sm:$0xff]   ;;  %v230_v19 = vld [vmem:[%s7304_s25 + $0x118] sm:$0xff]   ;;  %v234_v20 = vld [vmem:[%s7304_s25 + $0x120] sm:$0xff]  }
  0x16   : > { %179 = vst [vmem:[%s7309_s26 + $0x30] sm:$0xff] %v178_v6   ;;  %v238_v21 = vld [vmem:[%s7304_s25 + $0x128] sm:$0xff]   ;;  %v242_v22 = vld [vmem:[%s7304_s25 + $0x130] sm:$0xff]   ;;  %v246_v23 = vld [vmem:[%s7304_s25 + $0x138] sm:$0xff]  }
  0x17   : > { %183 = vst [vmem:[%s7309_s26 + $0x38] sm:$0xff] %v182_v7   ;;  %v250_v24 = vld [vmem:[%s7304_s25 + $0x140] sm:$0xff]   ;;  %v254_v25 = vld [vmem:[%s7304_s25 + $0x148] sm:$0xff]   ;;  %v258_v26 = vld [vmem:[%s7304_s25 + $0x150] sm:$0xff]  }
  0x18   : > { %187 = vst [vmem:[%s7309_s26 + $0x40] sm:$0xff] %v186_v8   ;;  %v262_v27 = vld [vmem:[%s7304_s25 + $0x158] sm:$0xff]   ;;  %v266_v28 = vld [vmem:[%s7304_s25 + $0x160] sm:$0xff]   ;;  %v270_v29 = vld [vmem:[%s7304_s25 + $0x168] sm:$0xff]  }
  0x19   : > { %191 = vst [vmem:[%s7309_s26 + $0x48] sm:$0xff] %v190_v9   ;;  %v274_v30 = vld [vmem:[%s7304_s25 + $0x170] sm:$0xff]   ;;  %v278_v31 = vld [vmem:[%s7304_s25 + $0x178] sm:$0xff]   ;;  %v282_v32 = vld [vmem:[%s7304_s25 + $0x200] sm:$0xff]  }
  0x1a   : > { %195 = vst [vmem:[%s7309_s26 + $0x50] sm:$0xff] %v194_v10   ;;  %v286_v33 = vld [vmem:[%s7304_s25 + $0x208] sm:$0xff]   ;;  %v290_v34 = vld [vmem:[%s7304_s25 + $0x210] sm:$0xff]   ;;  %v294_v35 = vld [vmem:[%s7304_s25 + $0x218] sm:$0xff]  }
  0x1b   : > { %199 = vst [vmem:[%s7309_s26 + $0x58] sm:$0xff] %v198_v11   ;;  %v298_v36 = vld [vmem:[%s7304_s25 + $0x220] sm:$0xff]   ;;  %v302_v37 = vld [vmem:[%s7304_s25 + $0x228] sm:$0xff]   ;;  %v306_v38 = vld [vmem:[%s7304_s25 + $0x230] sm:$0xff]  }
  0x1c   : > { %203 = vst [vmem:[%s7309_s26 + $0x60] sm:$0xff] %v202_v12   ;;  %v310_v39 = vld [vmem:[%s7304_s25 + $0x238] sm:$0xff]   ;;  %v314_v40 = vld [vmem:[%s7304_s25 + $0x240] sm:$0xff]   ;;  %v318_v41 = vld [vmem:[%s7304_s25 + $0x248] sm:$0xff]  }
  0x1d   : > { %207 = vst [vmem:[%s7309_s26 + $0x68] sm:$0xff] %v206_v13   ;;  %v322_v42 = vld [vmem:[%s7304_s25 + $0x250] sm:$0xff]   ;;  %v326_v43 = vld [vmem:[%s7304_s25 + $0x258] sm:$0xff]   ;;  %v330_v44 = vld [vmem:[%s7304_s25 + $0x260] sm:$0xff]  }
  0x1e   : > { %211 = vst [vmem:[%s7309_s26 + $0x70] sm:$0xff] %v210_v14   ;;  %v334_v45 = vld [vmem:[%s7304_s25 + $0x268] sm:$0xff]   ;;  %v338_v46 = vld [vmem:[%s7304_s25 + $0x270] sm:$0xff]   ;;  %v342_v47 = vld [vmem:[%s7304_s25 + $0x278] sm:$0xff]  }
  0x1f   : > { %215 = vst [vmem:[%s7309_s26 + $0x78] sm:$0xff] %v214_v15   ;;  %v346_v48 = vld [vmem:[%s7304_s25 + $0x300] sm:$0xff]   ;;  %v350_v49 = vld [vmem:[%s7304_s25 + $0x308] sm:$0xff]   ;;  %v354_v50 = vld [vmem:[%s7304_s25 + $0x310] sm:$0xff]  }
  0x20   : > { %219 = vst [vmem:[%s7309_s26 + $0x80] sm:$0xff] %v218_v16   ;;  %v358_v51 = vld [vmem:[%s7304_s25 + $0x318] sm:$0xff]   ;;  %v362_v52 = vld [vmem:[%s7304_s25 + $0x320] sm:$0xff]   ;;  %v366_v53 = vld [vmem:[%s7304_s25 + $0x328] sm:$0xff]  }
  0x21   : > { %223 = vst [vmem:[%s7309_s26 + $0x88] sm:$0xff] %v222_v17   ;;  %v370_v54 = vld [vmem:[%s7304_s25 + $0x330] sm:$0xff]   ;;  %v374_v55 = vld [vmem:[%s7304_s25 + $0x338] sm:$0xff]   ;;  %v378_v56 = vld [vmem:[%s7304_s25 + $0x340] sm:$0xff]  }
  0x22   : > { %227 = vst [vmem:[%s7309_s26 + $0x90] sm:$0xff] %v226_v18   ;;  %v382_v57 = vld [vmem:[%s7304_s25 + $0x348] sm:$0xff]   ;;  %v386_v58 = vld [vmem:[%s7304_s25 + $0x350] sm:$0xff]   ;;  %v390_v59 = vld [vmem:[%s7304_s25 + $0x358] sm:$0xff]  }
  0x23   : > { %231 = vst [vmem:[%s7309_s26 + $0x98] sm:$0xff] %v230_v19   ;;  %v394_v60 = vld [vmem:[%s7304_s25 + $0x360] sm:$0xff]   ;;  %v398_v61 = vld [vmem:[%s7304_s25 + $0x368] sm:$0xff]   ;;  %v402_v62 = vld [vmem:[%s7304_s25 + $0x370] sm:$0xff]  }
  0x24   : > { %235 = vst [vmem:[%s7309_s26 + $0xa0] sm:$0xff] %v234_v20   ;;  %v406_v63 = vld [vmem:[%s7304_s25 + $0x378] sm:$0xff]   ;;  %v410_v0 = vld [vmem:[%s7304_s25 + $0x400] sm:$0xff]   ;;  %v414_v1 = vld [vmem:[%s7304_s25 + $0x408] sm:$0xff]  }
  0x25   : > { %239 = vst [vmem:[%s7309_s26 + $0xa8] sm:$0xff] %v238_v21   ;;  %v418_v2 = vld [vmem:[%s7304_s25 + $0x410] sm:$0xff]   ;;  %v422_v3 = vld [vmem:[%s7304_s25 + $0x418] sm:$0xff]   ;;  %v426_v4 = vld [vmem:[%s7304_s25 + $0x420] sm:$0xff]  }
  0x26   : > { %243 = vst [vmem:[%s7309_s26 + $0xb0] sm:$0xff] %v242_v22   ;;  %v430_v5 = vld [vmem:[%s7304_s25 + $0x428] sm:$0xff]   ;;  %v434_v6 = vld [vmem:[%s7304_s25 + $0x430] sm:$0xff]   ;;  %v438_v7 = vld [vmem:[%s7304_s25 + $0x438] sm:$0xff]  }
  0x27   : > { %247 = vst [vmem:[%s7309_s26 + $0xb8] sm:$0xff] %v246_v23   ;;  %v442_v8 = vld [vmem:[%s7304_s25 + $0x440] sm:$0xff]   ;;  %v446_v9 = vld [vmem:[%s7304_s25 + $0x448] sm:$0xff]   ;;  %v450_v10 = vld [vmem:[%s7304_s25 + $0x450] sm:$0xff]  }
  0x28   : > { %251 = vst [vmem:[%s7309_s26 + $0xc0] sm:$0xff] %v250_v24   ;;  %v454_v11 = vld [vmem:[%s7304_s25 + $0x458] sm:$0xff]   ;;  %v458_v12 = vld [vmem:[%s7304_s25 + $0x460] sm:$0xff]   ;;  %v462_v13 = vld [vmem:[%s7304_s25 + $0x468] sm:$0xff]  }
  0x29   : > { %255 = vst [vmem:[%s7309_s26 + $0xc8] sm:$0xff] %v254_v25   ;;  %v466_v14 = vld [vmem:[%s7304_s25 + $0x470] sm:$0xff]   ;;  %v470_v15 = vld [vmem:[%s7304_s25 + $0x478] sm:$0xff]   ;;  %v474_v16 = vld [vmem:[%s7304_s25 + $0x500] sm:$0xff]  }
  0x2a   : > { %259 = vst [vmem:[%s7309_s26 + $0xd0] sm:$0xff] %v258_v26   ;;  %v478_v17 = vld [vmem:[%s7304_s25 + $0x508] sm:$0xff]   ;;  %v482_v18 = vld [vmem:[%s7304_s25 + $0x510] sm:$0xff]   ;;  %v486_v19 = vld [vmem:[%s7304_s25 + $0x518] sm:$0xff]  }
  0x2b   : > { %263 = vst [vmem:[%s7309_s26 + $0xd8] sm:$0xff] %v262_v27   ;;  %v490_v20 = vld [vmem:[%s7304_s25 + $0x520] sm:$0xff]   ;;  %v494_v21 = vld [vmem:[%s7304_s25 + $0x528] sm:$0xff]   ;;  %v498_v22 = vld [vmem:[%s7304_s25 + $0x530] sm:$0xff]  }
  0x2c   : > { %267 = vst [vmem:[%s7309_s26 + $0xe0] sm:$0xff] %v266_v28   ;;  %v502_v23 = vld [vmem:[%s7304_s25 + $0x538] sm:$0xff]   ;;  %v506_v24 = vld [vmem:[%s7304_s25 + $0x540] sm:$0xff]   ;;  %v510_v25 = vld [vmem:[%s7304_s25 + $0x548] sm:$0xff]  }
  0x2d   : > { %271 = vst [vmem:[%s7309_s26 + $0xe8] sm:$0xff] %v270_v29   ;;  %v514_v26 = vld [vmem:[%s7304_s25 + $0x550] sm:$0xff]   ;;  %v518_v27 = vld [vmem:[%s7304_s25 + $0x558] sm:$0xff]   ;;  %v522_v28 = vld [vmem:[%s7304_s25 + $0x560] sm:$0xff]  }
  0x2e   : > { %275 = vst [vmem:[%s7309_s26 + $0xf0] sm:$0xff] %v274_v30   ;;  %v526_v29 = vld [vmem:[%s7304_s25 + $0x568] sm:$0xff]   ;;  %v530_v30 = vld [vmem:[%s7304_s25 + $0x570] sm:$0xff]  }
  0x2f   : > { %279 = vst [vmem:[%s7309_s26 + $0xf8] sm:$0xff] %v278_v31   ;;  %v534_v31 = vld [vmem:[%s7304_s25 + $0x578] sm:$0xff]  }
  0x30   : > { %283 = vst [vmem:[%s7309_s26 + $0x100] sm:$0xff] %v282_v32   ;;  %v538_v32 = vld [vmem:[%s7304_s25 + $0x600] sm:$0xff]  }
  0x31   : > { %287 = vst [vmem:[%s7309_s26 + $0x108] sm:$0xff] %v286_v33   ;;  %v542_v33 = vld [vmem:[%s7304_s25 + $0x608] sm:$0xff]  }
  0x32   : > { %291 = vst [vmem:[%s7309_s26 + $0x110] sm:$0xff] %v290_v34   ;;  %v546_v34 = vld [vmem:[%s7304_s25 + $0x610] sm:$0xff]  }
  0x33   : > { %295 = vst [vmem:[%s7309_s26 + $0x118] sm:$0xff] %v294_v35   ;;  %v550_v35 = vld [vmem:[%s7304_s25 + $0x618] sm:$0xff]  }
  0x34   : > { %299 = vst [vmem:[%s7309_s26 + $0x120] sm:$0xff] %v298_v36   ;;  %v554_v36 = vld [vmem:[%s7304_s25 + $0x620] sm:$0xff]  }
  0x35   : > { %303 = vst [vmem:[%s7309_s26 + $0x128] sm:$0xff] %v302_v37   ;;  %v558_v37 = vld [vmem:[%s7304_s25 + $0x628] sm:$0xff]  }
  0x36   : > { %307 = vst [vmem:[%s7309_s26 + $0x130] sm:$0xff] %v306_v38   ;;  %v562_v38 = vld [vmem:[%s7304_s25 + $0x630] sm:$0xff]  }
  0x37   : > { %311 = vst [vmem:[%s7309_s26 + $0x138] sm:$0xff] %v310_v39   ;;  %v566_v39 = vld [vmem:[%s7304_s25 + $0x638] sm:$0xff]  }
  0x38   : > { %315 = vst [vmem:[%s7309_s26 + $0x140] sm:$0xff] %v314_v40   ;;  %v570_v40 = vld [vmem:[%s7304_s25 + $0x640] sm:$0xff]  }
  0x39   : > { %319 = vst [vmem:[%s7309_s26 + $0x148] sm:$0xff] %v318_v41   ;;  %v574_v41 = vld [vmem:[%s7304_s25 + $0x648] sm:$0xff]  }
  0x3a   : > { %323 = vst [vmem:[%s7309_s26 + $0x150] sm:$0xff] %v322_v42   ;;  %v578_v42 = vld [vmem:[%s7304_s25 + $0x650] sm:$0xff]  }
  0x3b   : > { %327 = vst [vmem:[%s7309_s26 + $0x158] sm:$0xff] %v326_v43   ;;  %v582_v43 = vld [vmem:[%s7304_s25 + $0x658] sm:$0xff]  }
  0x3c   : > { %331 = vst [vmem:[%s7309_s26 + $0x160] sm:$0xff] %v330_v44   ;;  %v586_v44 = vld [vmem:[%s7304_s25 + $0x660] sm:$0xff]  }
  0x3d   : > { %335 = vst [vmem:[%s7309_s26 + $0x168] sm:$0xff] %v334_v45   ;;  %v590_v45 = vld [vmem:[%s7304_s25 + $0x668] sm:$0xff]  }
  0x3e   : > { %339 = vst [vmem:[%s7309_s26 + $0x170] sm:$0xff] %v338_v46   ;;  %v594_v46 = vld [vmem:[%s7304_s25 + $0x670] sm:$0xff]  }
  0x3f   : > { %343 = vst [vmem:[%s7309_s26 + $0x178] sm:$0xff] %v342_v47   ;;  %v598_v47 = vld [vmem:[%s7304_s25 + $0x678] sm:$0xff]  }
  0x40   : > { %347 = vst [vmem:[%s7309_s26 + $0x180] sm:$0xff] %v346_v48   ;;  %v602_v48 = vld [vmem:[%s7304_s25 + $0x700] sm:$0xff]  }
  0x41   : > { %351 = vst [vmem:[%s7309_s26 + $0x188] sm:$0xff] %v350_v49   ;;  %v606_v49 = vld [vmem:[%s7304_s25 + $0x708] sm:$0xff]  }
  0x42   : > { %355 = vst [vmem:[%s7309_s26 + $0x190] sm:$0xff] %v354_v50   ;;  %v610_v50 = vld [vmem:[%s7304_s25 + $0x710] sm:$0xff]  }
  0x43   : > { %359 = vst [vmem:[%s7309_s26 + $0x198] sm:$0xff] %v358_v51   ;;  %v614_v51 = vld [vmem:[%s7304_s25 + $0x718] sm:$0xff]  }
  0x44   : > { %363 = vst [vmem:[%s7309_s26 + $0x1a0] sm:$0xff] %v362_v52   ;;  %v618_v52 = vld [vmem:[%s7304_s25 + $0x720] sm:$0xff]  }
  0x45   : > { %367 = vst [vmem:[%s7309_s26 + $0x1a8] sm:$0xff] %v366_v53   ;;  %v622_v53 = vld [vmem:[%s7304_s25 + $0x728] sm:$0xff]  }
  0x46   : > { %371 = vst [vmem:[%s7309_s26 + $0x1b0] sm:$0xff] %v370_v54   ;;  %v626_v54 = vld [vmem:[%s7304_s25 + $0x730] sm:$0xff]  }
  0x47   : > { %375 = vst [vmem:[%s7309_s26 + $0x1b8] sm:$0xff] %v374_v55   ;;  %v630_v55 = vld [vmem:[%s7304_s25 + $0x738] sm:$0xff]  }
  0x48   : > { %379 = vst [vmem:[%s7309_s26 + $0x1c0] sm:$0xff] %v378_v56   ;;  %v634_v56 = vld [vmem:[%s7304_s25 + $0x740] sm:$0xff]  }
  0x49   : > { %383 = vst [vmem:[%s7309_s26 + $0x1c8] sm:$0xff] %v382_v57   ;;  %v638_v57 = vld [vmem:[%s7304_s25 + $0x748] sm:$0xff]  }
  0x4a   : > { %387 = vst [vmem:[%s7309_s26 + $0x1d0] sm:$0xff] %v386_v58   ;;  %v642_v58 = vld [vmem:[%s7304_s25 + $0x750] sm:$0xff]  }
  0x4b   : > { %391 = vst [vmem:[%s7309_s26 + $0x1d8] sm:$0xff] %v390_v59   ;;  %v646_v59 = vld [vmem:[%s7304_s25 + $0x758] sm:$0xff]  }
  0x4c   : > { %395 = vst [vmem:[%s7309_s26 + $0x1e0] sm:$0xff] %v394_v60   ;;  %v650_v60 = vld [vmem:[%s7304_s25 + $0x760] sm:$0xff]  }
  0x4d   : > { %399 = vst [vmem:[%s7309_s26 + $0x1e8] sm:$0xff] %v398_v61   ;;  %v654_v61 = vld [vmem:[%s7304_s25 + $0x768] sm:$0xff]  }
  0x4e   : > { %403 = vst [vmem:[%s7309_s26 + $0x1f0] sm:$0xff] %v402_v62   ;;  %v658_v62 = vld [vmem:[%s7304_s25 + $0x770] sm:$0xff]  }
  0x4f   : > { %407 = vst [vmem:[%s7309_s26 + $0x1f8] sm:$0xff] %v406_v63   ;;  %v662_v63 = vld [vmem:[%s7304_s25 + $0x778] sm:$0xff]  }
  0x50   : > { %411 = vst [vmem:[%s7309_s26 + $0x200] sm:$0xff] %v410_v0  }
  0x51   : > { %415 = vst [vmem:[%s7309_s26 + $0x208] sm:$0xff] %v414_v1  }
  0x52   : > { %419 = vst [vmem:[%s7309_s26 + $0x210] sm:$0xff] %v418_v2  }
  0x53   : > { %423 = vst [vmem:[%s7309_s26 + $0x218] sm:$0xff] %v422_v3  }
  0x54   : > { %427 = vst [vmem:[%s7309_s26 + $0x220] sm:$0xff] %v426_v4  }
  0x55   : > { %431 = vst [vmem:[%s7309_s26 + $0x228] sm:$0xff] %v430_v5  }
  0x56   : > { %435 = vst [vmem:[%s7309_s26 + $0x230] sm:$0xff] %v434_v6  }
  0x57   : > { %439 = vst [vmem:[%s7309_s26 + $0x238] sm:$0xff] %v438_v7  }
  0x58   : > { %443 = vst [vmem:[%s7309_s26 + $0x240] sm:$0xff] %v442_v8  }
  0x59   : > { %447 = vst [vmem:[%s7309_s26 + $0x248] sm:$0xff] %v446_v9  }
  0x5a   : > { %451 = vst [vmem:[%s7309_s26 + $0x250] sm:$0xff] %v450_v10  }
  0x5b   : > { %455 = vst [vmem:[%s7309_s26 + $0x258] sm:$0xff] %v454_v11  }
  0x5c   : > { %459 = vst [vmem:[%s7309_s26 + $0x260] sm:$0xff] %v458_v12  }
  0x5d   : > { %463 = vst [vmem:[%s7309_s26 + $0x268] sm:$0xff] %v462_v13  }
  0x5e   : > { %467 = vst [vmem:[%s7309_s26 + $0x270] sm:$0xff] %v466_v14  }
  0x5f   : > { %471 = vst [vmem:[%s7309_s26 + $0x278] sm:$0xff] %v470_v15  }
  0x60   : > { %475 = vst [vmem:[%s7309_s26 + $0x280] sm:$0xff] %v474_v16  }
  0x61   : > { %479 = vst [vmem:[%s7309_s26 + $0x288] sm:$0xff] %v478_v17  }
  0x62   : > { %483 = vst [vmem:[%s7309_s26 + $0x290] sm:$0xff] %v482_v18  }
  0x63   : > { %487 = vst [vmem:[%s7309_s26 + $0x298] sm:$0xff] %v486_v19  }
  0x64   : > { %491 = vst [vmem:[%s7309_s26 + $0x2a0] sm:$0xff] %v490_v20  }
  0x65   : > { %495 = vst [vmem:[%s7309_s26 + $0x2a8] sm:$0xff] %v494_v21  }
  0x66   : > { %499 = vst [vmem:[%s7309_s26 + $0x2b0] sm:$0xff] %v498_v22  }
  0x67   : > { %503 = vst [vmem:[%s7309_s26 + $0x2b8] sm:$0xff] %v502_v23  }
  0x68   : > { %507 = vst [vmem:[%s7309_s26 + $0x2c0] sm:$0xff] %v506_v24  }
  0x69   : > { %511 = vst [vmem:[%s7309_s26 + $0x2c8] sm:$0xff] %v510_v25  }
  0x6a   : > { %515 = vst [vmem:[%s7309_s26 + $0x2d0] sm:$0xff] %v514_v26  }
  0x6b   : > { %519 = vst [vmem:[%s7309_s26 + $0x2d8] sm:$0xff] %v518_v27  }
  0x6c   : > { %523 = vst [vmem:[%s7309_s26 + $0x2e0] sm:$0xff] %v522_v28  }
  0x6d   : > { %527 = vst [vmem:[%s7309_s26 + $0x2e8] sm:$0xff] %v526_v29  }
  0x6e   : > { %531 = vst [vmem:[%s7309_s26 + $0x2f0] sm:$0xff] %v530_v30  }
  0x6f   : > { %535 = vst [vmem:[%s7309_s26 + $0x2f8] sm:$0xff] %v534_v31  }
  0x70   : > { %539 = vst [vmem:[%s7309_s26 + $0x300] sm:$0xff] %v538_v32  }
  0x71   : > { %543 = vst [vmem:[%s7309_s26 + $0x308] sm:$0xff] %v542_v33  }
  0x72   : > { %547 = vst [vmem:[%s7309_s26 + $0x310] sm:$0xff] %v546_v34  }
  0x73   : > { %551 = vst [vmem:[%s7309_s26 + $0x318] sm:$0xff] %v550_v35  }
  0x74   : > { %555 = vst [vmem:[%s7309_s26 + $0x320] sm:$0xff] %v554_v36  }
  0x75   : > { %559 = vst [vmem:[%s7309_s26 + $0x328] sm:$0xff] %v558_v37  }
  0x76   : > { %563 = vst [vmem:[%s7309_s26 + $0x330] sm:$0xff] %v562_v38  }
  0x77   : > { %567 = vst [vmem:[%s7309_s26 + $0x338] sm:$0xff] %v566_v39  }
  0x78   : > { %571 = vst [vmem:[%s7309_s26 + $0x340] sm:$0xff] %v570_v40  }
  0x79   : > { %575 = vst [vmem:[%s7309_s26 + $0x348] sm:$0xff] %v574_v41  }
  0x7a   : > { %579 = vst [vmem:[%s7309_s26 + $0x350] sm:$0xff] %v578_v42  }
  0x7b   : > { %583 = vst [vmem:[%s7309_s26 + $0x358] sm:$0xff] %v582_v43  }
  0x7c   : > { %587 = vst [vmem:[%s7309_s26 + $0x360] sm:$0xff] %v586_v44  }
  0x7d   : > { %591 = vst [vmem:[%s7309_s26 + $0x368] sm:$0xff] %v590_v45  }
  0x7e   : > { %595 = vst [vmem:[%s7309_s26 + $0x370] sm:$0xff] %v594_v46  }
  0x7f   : > { %599 = vst [vmem:[%s7309_s26 + $0x378] sm:$0xff] %v598_v47  }
  0x80   : > { %603 = vst [vmem:[%s7309_s26 + $0x380] sm:$0xff] %v602_v48  }
  0x81   : > { %607 = vst [vmem:[%s7309_s26 + $0x388] sm:$0xff] %v606_v49  }
  0x82   : > { %611 = vst [vmem:[%s7309_s26 + $0x390] sm:$0xff] %v610_v50  }
  0x83   : > { %615 = vst [vmem:[%s7309_s26 + $0x398] sm:$0xff] %v614_v51  }
  0x84   : > { %619 = vst [vmem:[%s7309_s26 + $0x3a0] sm:$0xff] %v618_v52  }
  0x85   : > { %623 = vst [vmem:[%s7309_s26 + $0x3a8] sm:$0xff] %v622_v53  }
  0x86   : > { %627 = vst [vmem:[%s7309_s26 + $0x3b0] sm:$0xff] %v626_v54  }
  0x87   : > { %631 = vst [vmem:[%s7309_s26 + $0x3b8] sm:$0xff] %v630_v55  }
  0x88   : > { %635 = vst [vmem:[%s7309_s26 + $0x3c0] sm:$0xff] %v634_v56  }
  0x89   : > { %639 = vst [vmem:[%s7309_s26 + $0x3c8] sm:$0xff] %v638_v57  }
  0x8a   : > { %643 = vst [vmem:[%s7309_s26 + $0x3d0] sm:$0xff] %v642_v58  }
  0x8b   : > { %647 = vst [vmem:[%s7309_s26 + $0x3d8] sm:$0xff] %v646_v59  }
  0x8c   : > { %651 = vst [vmem:[%s7309_s26 + $0x3e0] sm:$0xff] %v650_v60  }
  0x8d   : > { %655 = vst [vmem:[%s7309_s26 + $0x3e8] sm:$0xff] %v654_v61  }
  0x8e   : > { %659 = vst [vmem:[%s7309_s26 + $0x3f0] sm:$0xff] %v658_v62  }
  0x8f   : > { %663 = vst [vmem:[%s7309_s26 + $0x3f8] sm:$0xff] %v662_v63  }
  0x90 PF: > { %p5667_p5 = scmp.ge.s32.totalorder %s7247_s14, 1  ;;  %p2250_p6 = scmp.lt.s32.totalorder %s7247_s14, 3 }
  0x92   : > { %p2251_p7 = pnand %p5667_p5, %p2250_p6 }
  0x94   : > { %2254 = sbr.rel (%p2251_p7) target bundleno = 1069 (0x42d), region = 80 }
  0x99   : > { %v6059_v0 = vld [vmem:[%s8522_s1 + $0x8] sm:$0xf]  ;;  %v7035_v1 = vld [vmem:[%s8522_s1 + $0x8] sm:$0x10]  ;;  %vm3068_vm0 = vcmask 1043456   ;;  %vm3069_vm1 = vcmask 1044480  }
  0x9a   : > { %v6060_v2 = vor.u32 %v7035_v1, %v6059_v0  ;;  %v6383_v3 = vld [vmem:[%s8522_s1] sm:$0xf]  ;;  %v6970_v4 = vld [vmem:[%s8522_s1] sm:$0x10]  ;;  %s2257_s8 = sand.u32 1, %s7239_s12   ;;  %v7249_v5 = vmov 65535  }
  0x9b   : > { %v3070_v6 = vsel %vm3068_vm0, 4294967295, %v7249_v5  ;;  %v6384_v7 = vor.u32 %v6970_v4, %v6383_v3  ;;  %v6837_v8 = vld [vmem:[%s8522_s1 + $0x10] sm:$0xf]  ;;  %v7100_v9 = vld [vmem:[%s8522_s1 + $0x10] sm:$0x10]  ;;  %s5668_s18 = sshll.u32 %s2257_s8, 10 }
  0x9c   : > { %v3071_v10 = vsel %vm3069_vm1, %v3070_v6, 0  ;;  %v6838_v11 = vor.u32 %v7100_v9, %v6837_v8  ;;  %s7585_s20 = scalar_lea.vmem [#allocation2], %s5668_s18  ;;  %vm2875_vm2 = vcmask 72704   ;;  %s5669_s12 = sshll.u32 %s5660_s15, 5 }
  0x9d   : > { %v3073_v12 = vand.u32 %v6060_v2, %v3071_v10  ;;  %v3922_v13 = vand.u32 %v6384_v7, %v3071_v10  ;;  %v6971_v15 = vld [vmem:[%s7585_s20 + $0x100] sm:$0xff]  ;;  %v6972_v19 = vld [vmem:[%s7585_s20 + $0x108] sm:$0xff]  ;;  %v6973_v23 = vld [vmem:[%s7585_s20 + $0x110] sm:$0xff]  ;;  %p2282_p8 = scmp.lt.s32.totalorder %s5669_s12, 63 }
  0x9e   : > { %v4903_v14 = vand.u32 %v6838_v11, %v3071_v10  ;;  %v7019_v16 = vld [vmem:[%s7585_s20 + $0x280] sm:$0xff]  ;;  %v7020_v20 = vld [vmem:[%s7585_s20 + $0x288] sm:$0xff]  ;;  %v7021_v24 = vld [vmem:[%s7585_s20 + $0x290] sm:$0xff] }
  0x9f   : > { %3082 = vmatpush.bf16.msra.mxu0 %v3073_v12  ;;  %7196 = vmatpush.bf16.msra.mxu3 %v3073_v12  ;;  %v6906_v17 = vld [vmem:[%s7585_s20] sm:$0xff]  ;;  %v6907_v21 = vld [vmem:[%s7585_s20 + $0x8] sm:$0xff]  ;;  %v6908_v25 = vld [vmem:[%s7585_s20 + $0x10] sm:$0xff]  ;;  %s8743_s12 = smov (!%p2282_p8, %s5669_s12), 63 }
  0xa0   : > { %v7036_v18 = vld [vmem:[%s7585_s20 + $0x200] sm:$0xff]  ;;  %3931 = vmatpush.bf16.msra.mxu1 %v3922_v13  ;;  %4912 = vmatpush.bf16.msra.mxu2 %v4903_v14  ;;  %v7037_v22 = vld [vmem:[%s7585_s20 + $0x208] sm:$0xff]  ;;  %v7038_v26 = vld [vmem:[%s7585_s20 + $0x210] sm:$0xff]  ;;  %s5670_s14 = sshll.u32 %s8743_s12, 2 }
  0xa1   : > { %v6974_v27 = vld [vmem:[%s7585_s20 + $0x118] sm:$0xff]  ;;  %v6975_v31 = vld [vmem:[%s7585_s20 + $0x120] sm:$0xff]  ;;  %v6976_v35 = vld [vmem:[%s7585_s20 + $0x128] sm:$0xff]  ;;  %s8267_s24 = scalar_lea.vmem %s8524_s3, %s5670_s14 }
  0xa2   : > { %6061 = vmatmul.msk.bf16.vlgmr.msra.gmra.mxu0 %vm2875_vm2, %v6971_v15  ;;  %6109 = vmatmul.msk.bf16.vlgmr.msra.gmra.mxu3 %vm2875_vm2, %v7019_v16  ;;  %v7022_v28 = vld [vmem:[%s7585_s20 + $0x298] sm:$0xff]  ;;  %v7023_v32 = vld [vmem:[%s7585_s20 + $0x2a0] sm:$0xff]  ;;  %v7024_v36 = vld [vmem:[%s7585_s20 + $0x2a8] sm:$0xff] }
  0xa3   : > { %7197 = vmatpush.bf16.msrb.mxu3 %v3922_v13  ;;  %6385 = vmatmul.msk.bf16.vlgmr.msra.gmra.mxu1 %vm2875_vm2, %v6906_v17  ;;  %v6909_v29 = vld [vmem:[%s7585_s20 + $0x18] sm:$0xff]  ;;  %v6910_v33 = vld [vmem:[%s7585_s20 + $0x20] sm:$0xff]  ;;  %v6911_v37 = vld [vmem:[%s7585_s20 + $0x28] sm:$0xff] }
  0xa4   : > { %6839 = vmatmul.msk.bf16.vlgmr.msra.gmra.mxu2 %vm2875_vm2, %v7036_v18  ;;  %v7039_v30 = vld [vmem:[%s7585_s20 + $0x218] sm:$0xff]  ;;  %v7040_v34 = vld [vmem:[%s7585_s20 + $0x220] sm:$0xff]  ;;  %v7041_v38 = vld [vmem:[%s7585_s20 + $0x228] sm:$0xff] }
  0xa5   : > { %v6977_v39 = vld [vmem:[%s7585_s20 + $0x130] sm:$0xff]  ;;  %v6978_v43 = vld [vmem:[%s7585_s20 + $0x138] sm:$0xff]  ;;  %v6979_v47 = vld [vmem:[%s7585_s20 + $0x140] sm:$0xff] }
  0xa6   : > { %v7025_v40 = vld [vmem:[%s7585_s20 + $0x2b0] sm:$0xff]  ;;  %v7026_v44 = vld [vmem:[%s7585_s20 + $0x2b8] sm:$0xff]  ;;  %v7027_v48 = vld [vmem:[%s7585_s20 + $0x2c0] sm:$0xff] }
  0xa7   : > { %7198 = vmatpush.bf16.msra.mxu3 %v4903_v14  ;;  %v6912_v41 = vld [vmem:[%s7585_s20 + $0x30] sm:$0xff]  ;;  %v6913_v45 = vld [vmem:[%s7585_s20 + $0x38] sm:$0xff]  ;;  %v6914_v50 = vld [vmem:[%s7585_s20 + $0x40] sm:$0xff] }
  0xa8   : > { %v7042_v42 = vld [vmem:[%s7585_s20 + $0x230] sm:$0xff]  ;;  %v7043_v46 = vld [vmem:[%s7585_s20 + $0x238] sm:$0xff]  ;;  %v7044_v51 = vld [vmem:[%s7585_s20 + $0x240] sm:$0xff] }
  0xa9   : > { %v6980_v62 = vld [vmem:[%s7585_s20 + $0x148] sm:$0xff]  ;;  %v6981_v14 = vld [vmem:[%s7585_s20 + $0x150] sm:$0xff] }
  0xaa   : > { %v7028_v63 = vld [vmem:[%s7585_s20 + $0x2c8] sm:$0xff]  ;;  %v7029_v15 = vld [vmem:[%s7585_s20 + $0x2d0] sm:$0xff] }
  0xab   : > { %v6915_v2 = vld [vmem:[%s7585_s20 + $0x48] sm:$0xff]  ;;  %v6916_v18 = vld [vmem:[%s7585_s20 + $0x50] sm:$0xff] }
  0xac   : > { %v7045_v3 = vld [vmem:[%s7585_s20 + $0x248] sm:$0xff] }
  0xb2   : > { %6062 = vmatmul.msk.bf16.gmra.mxu0 %vm2875_vm2, %v6972_v19  ;;  %6110 = vmatmul.msk.bf16.gmra.mxu3 %vm2875_vm2, %v7020_v20  ;;  %v7046_v19 = vld [vmem:[%s7585_s20 + $0x250] sm:$0xff] }
  0xb3   : > { %6386 = vmatmul.msk.bf16.gmra.mxu1 %vm2875_vm2, %v6907_v21 }
  0xb4   : > { %6840 = vmatmul.msk.bf16.gmra.mxu2 %vm2875_vm2, %v7037_v22 }
  0xc2   : > { %6063 = vmatmul.msk.bf16.gmra.mxu0 %vm2875_vm2, %v6973_v23  ;;  %6111 = vmatmul.msk.bf16.gmra.mxu3 %vm2875_vm2, %v7021_v24 }
  0xc3   : > { %6387 = vmatmul.msk.bf16.gmra.mxu1 %vm2875_vm2, %v6908_v25 }
  0xc4   : > { %6841 = vmatmul.msk.bf16.gmra.mxu2 %vm2875_vm2, %v7038_v26 }
  0xd2   : > { %6064 = vmatmul.msk.bf16.gmra.mxu0 %vm2875_vm2, %v6974_v27  ;;  %6112 = vmatmul.msk.bf16.gmra.mxu3 %vm2875_vm2, %v7022_v28 }
  0xd3   : > { %6388 = vmatmul.msk.bf16.gmra.mxu1 %vm2875_vm2, %v6909_v29 }
  0xd4   : > { %6842 = vmatmul.msk.bf16.gmra.mxu2 %vm2875_vm2, %v7039_v30  ;;  %v6982_v30 = vld [vmem:[%s7585_s20 + $0x158] sm:$0xff] }
  0xe2   : > { %6065 = vmatmul.msk.bf16.gmra.mxu0 %vm2875_vm2, %v6975_v31  ;;  %6113 = vmatmul.msk.bf16.gmra.mxu3 %vm2875_vm2, %v7023_v32  ;;  %v7030_v31 = vld [vmem:[%s7585_s20 + $0x2d8] sm:$0xff] }
  0xe3   : > { %6389 = vmatmul.msk.bf16.gmra.mxu1 %vm2875_vm2, %v6910_v33 }
  0xe4   : > { %6843 = vmatmul.msk.bf16.gmra.mxu2 %vm2875_vm2, %v7040_v34  ;;  %v6917_v34 = vld [vmem:[%s7585_s20 + $0x58] sm:$0xff] }
  0xf2   : > { %6066 = vmatmul.msk.bf16.gmra.mxu0 %vm2875_vm2, %v6976_v35  ;;  %6114 = vmatmul.msk.bf16.gmra.mxu3 %vm2875_vm2, %v7024_v36  ;;  %v7047_v35 = vld [vmem:[%s7585_s20 + $0x258] sm:$0xff] }
  0xf3   : > { %6390 = vmatmul.msk.bf16.gmra.mxu1 %vm2875_vm2, %v6911_v37 }
  0xf4   : > { %6844 = vmatmul.msk.bf16.gmra.mxu2 %vm2875_vm2, %v7041_v38 }
 0x102   : > { %6067 = vmatmul.msk.bf16.gmra.mxu0 %vm2875_vm2, %v6977_v39  ;;  %6115 = vmatmul.msk.bf16.gmra.mxu3 %vm2875_vm2, %v7025_v40 }
 0x103   : > { %6391 = vmatmul.msk.bf16.gmra.mxu1 %vm2875_vm2, %v6912_v41 }
 0x104   : > { %6845 = vmatmul.msk.bf16.gmra.mxu2 %vm2875_vm2, %v7042_v42 }
 0x112   : > { %6068 = vmatmul.msk.bf16.gmra.mxu0 %vm2875_vm2, %v6978_v43  ;;  %6116 = vmatmul.msk.bf16.gmra.mxu3 %vm2875_vm2, %v7026_v44 }
 0x113   : > { %6392 = vmatmul.msk.bf16.gmra.mxu1 %vm2875_vm2, %v6913_v45 }
 0x114   : > { %6846 = vmatmul.msk.bf16.gmra.mxu2 %vm2875_vm2, %v7043_v46  ;;  %v6983_v46 = vld [vmem:[%s7585_s20 + $0x160] sm:$0xff] }
 0x11f   : > { %v3084_v49 = vpop.f32.mrf.mxu0 }
 0x120   : > { %v3933_v52 = vpop.f32.mrf.mxu1 }
 0x121   : > { %v3934_v53 = vadd.f32 %v3933_v52, %v3084_v49 }
 0x122   : > { %6069 = vmatmul.msk.bf16.gmra.mxu0 %vm2875_vm2, %v6979_v47  ;;  %6117 = vmatmul.msk.bf16.gmra.mxu3 %vm2875_vm2, %v7027_v48  ;;  %v7031_v47 = vld [vmem:[%s7585_s20 + $0x2e0] sm:$0xff] }
 0x123   : > { %6393 = vmatmul.msk.bf16.gmra.mxu1 %vm2875_vm2, %v6914_v50  ;;  %v6918_v50 = vld [vmem:[%s7585_s20 + $0x60] sm:$0xff] }
 0x124   : > { %6847 = vmatmul.msk.bf16.gmra.mxu2 %vm2875_vm2, %v7044_v51  ;;  %v7048_v51 = vld [vmem:[%s7585_s20 + $0x260] sm:$0xff] }
 0x125   : > { %v7659_v54 = vpop.f32.mrf.mxu3 }
 0x127   : > { %v4914_v55 = vpop.f32.mrf.mxu2  ;;  %v3086_v57 = vpop.f32.mrf.mxu0 }
 0x128   : > { %v7661_v56 = vadd.f32 %v4914_v55, %v3934_v53  ;;  %v3935_v58 = vpop.f32.mrf.mxu1 }
 0x129   : > { %v3936_v59 = vadd.f32 %v3935_v58, %v3086_v57 }
 0x12d   : > { %v7663_v60 = vpop.f32.mrf.mxu3 }
 0x12f   : > { %v4916_v61 = vpop.f32.mrf.mxu2  ;;  %v3089_v1 = vpop.f32.mrf.mxu0 }
 0x130   : > { %v7667_v0 = vadd.f32 %v4916_v61, %v3936_v59  ;;  %v3938_v4 = vpop.f32.mrf.mxu1 }
 0x131   : > { %v3939_v5 = vadd.f32 %v3938_v4, %v3089_v1 }
 0x132   : > { %6070 = vmatmul.msk.bf16.gmra.mxu0 %vm2875_vm2, %v6980_v62  ;;  %6118 = vmatmul.msk.bf16.gmra.mxu3 %vm2875_vm2, %v7028_v63 }
 0x133   : > { %6394 = vmatmul.msk.bf16.gmra.mxu1 %vm2875_vm2, %v6915_v2  ;;  %v6984_v2 = vld [vmem:[%s7585_s20 + $0x168] sm:$0xff] }
 0x134   : > { %6848 = vmatmul.msk.bf16.gmra.mxu2 %vm2875_vm2, %v7045_v3  ;;  %v7032_v3 = vld [vmem:[%s7585_s20 + $0x2e8] sm:$0xff] }
 0x135   : > { %v7675_v6 = vpop.f32.mrf.mxu3 }
 0x137   : > { %v4919_v7 = vpop.f32.mrf.mxu2  ;;  %v3091_v9 = vpop.f32.mrf.mxu0 }
 0x138   : > { %v7677_v8 = vadd.f32 %v4919_v7, %v3939_v5  ;;  %v3940_v10 = vpop.f32.mrf.mxu1  ;;  %v6919_v7 = vld [vmem:[%s7585_s20 + $0x68] sm:$0xff] }
 0x139   : > { %v3941_v11 = vadd.f32 %v3940_v10, %v3091_v9  ;;  %v7049_v9 = vld [vmem:[%s7585_s20 + $0x268] sm:$0xff] }
 0x13d   : > { %v7679_v12 = vpop.f32.mrf.mxu3 }
 0x13f   : > { %v4921_v13 = vpop.f32.mrf.mxu2  ;;  %v3094_v17 = vpop.f32.mrf.mxu0 }
 0x140   : > { %v7683_v16 = vadd.f32 %v4921_v13, %v3941_v11  ;;  %v3943_v20 = vpop.f32.mrf.mxu1 }
 0x141   : > { %v3944_v21 = vadd.f32 %v3943_v20, %v3094_v17 }
 0x142   : > { %6071 = vmatmul.msk.bf16.gmra.mxu0 %vm2875_vm2, %v6981_v14  ;;  %6119 = vmatmul.msk.bf16.gmra.mxu3 %vm2875_vm2, %v7029_v15 }
 0x143   : > { %6395 = vmatmul.msk.bf16.gmra.mxu1 %vm2875_vm2, %v6916_v18 }
 0x144   : > { %6849 = vmatmul.msk.bf16.gmra.mxu2 %vm2875_vm2, %v7046_v19 }
 0x145   : > { %v7691_v22 = vpop.f32.mrf.mxu3 }
 0x147   : > { %v4924_v23 = vpop.f32.mrf.mxu2  ;;  %v3096_v25 = vpop.f32.mrf.mxu0 }
 0x148   : > { %v7693_v24 = vadd.f32 %v4924_v23, %v3944_v21  ;;  %v3945_v26 = vpop.f32.mrf.mxu1  ;;  %v6985_v23 = vld [vmem:[%s7585_s20 + $0x170] sm:$0xff] }
 0x149   : > { %v3946_v27 = vadd.f32 %v3945_v26, %v3096_v25  ;;  %v7033_v25 = vld [vmem:[%s7585_s20 + $0x2f0] sm:$0xff] }
 0x14d   : > { %v7695_v28 = vpop.f32.mrf.mxu3 }
 0x14f   : > { %v4926_v29 = vpop.f32.mrf.mxu2  ;;  %v3099_v33 = vpop.f32.mrf.mxu0 }
 0x150   : > { %v7699_v32 = vadd.f32 %v4926_v29, %v3946_v27  ;;  %v3948_v36 = vpop.f32.mrf.mxu1  ;;  %v6920_v29 = vld [vmem:[%s7585_s20 + $0x70] sm:$0xff] }
 0x151   : > { %v3949_v37 = vadd.f32 %v3948_v36, %v3099_v33 }
 0x152   : > { %8551 = vst [vmem:[#allocation3_spill] sm:$0xff] %v7699_v32  ;;  %6072 = vmatmul.msk.bf16.gmra.mxu0 %vm2875_vm2, %v6982_v30  ;;  %6120 = vmatmul.msk.bf16.gmra.mxu3 %vm2875_vm2, %v7030_v31  ;;  %v7050_v30 = vld [vmem:[%s7585_s20 + $0x270] sm:$0xff]  ;;  %v7064_v32 = vld [vmem:[%s7585_s20 + $0x2e0] sm:$0xff] }
 0x153   : > { %6396 = vmatmul.msk.bf16.gmra.mxu1 %vm2875_vm2, %v6917_v34 }
 0x154   : > { %6850 = vmatmul.msk.bf16.gmra.mxu2 %vm2875_vm2, %v7047_v35 }
 0x155   : > { %v7707_v38 = vpop.f32.mrf.mxu3 }
 0x156   : > { %8552 = vst [vmem:[#allocation4_spill] sm:$0xff] %v7707_v38  ;;  %v6966_v38 = vld [vmem:[%s7585_s20 + $0x1e0] sm:$0xff] }
 0x157   : > { %v4929_v39 = vpop.f32.mrf.mxu2  ;;  %v3101_v41 = vpop.f32.mrf.mxu0 }
 0x158   : > { %v7709_v40 = vadd.f32 %v4929_v39, %v3949_v37  ;;  %v3950_v42 = vpop.f32.mrf.mxu1 }
 0x159   : > { %v3951_v43 = vadd.f32 %v3950_v42, %v3101_v41 }
 0x15d   : > { %v7711_v44 = vpop.f32.mrf.mxu3 }
 0x15e   : > { %8553 = vst [vmem:[#allocation5_spill] sm:$0xff] %v7711_v44 }
 0x15f   : > { %v4931_v45 = vpop.f32.mrf.mxu2  ;;  %v3104_v49 = vpop.f32.mrf.mxu0 }
 0x160   : > { %v7715_v48 = vadd.f32 %v4931_v45, %v3951_v43  ;;  %v3953_v52 = vpop.f32.mrf.mxu1  ;;  %v6986_v45 = vld [vmem:[%s7585_s20 + $0x178] sm:$0xff] }
 0x161   : > { %v3954_v53 = vadd.f32 %v3953_v52, %v3104_v49 }
 0x162   : > { %8554 = vst [vmem:[#allocation6_spill] sm:$0xff] %v7715_v48  ;;  %6073 = vmatmul.msk.bf16.gmra.mxu0 %vm2875_vm2, %v6983_v46  ;;  %6121 = vmatmul.msk.bf16.gmra.mxu3 %vm2875_vm2, %v7031_v47  ;;  %v7034_v46 = vld [vmem:[%s7585_s20 + $0x2f8] sm:$0xff] }
 0x163   : > { %6397 = vmatmul.msk.bf16.gmra.mxu1 %vm2875_vm2, %v6918_v50  ;;  %v6921_v50 = vld [vmem:[%s7585_s20 + $0x78] sm:$0xff] }
 0x164   : > { %6851 = vmatmul.msk.bf16.gmra.mxu2 %vm2875_vm2, %v7048_v51  ;;  %v7051_v51 = vld [vmem:[%s7585_s20 + $0x278] sm:$0xff] }
 0x165   : > { %v7723_v55 = vpop.f32.mrf.mxu3 }
 0x166   : > { %8555 = vst [vmem:[#allocation7_spill] sm:$0xff] %v7723_v55  ;;  %v7063_v55 = vld [vmem:[%s7585_s20 + $0x2d8] sm:$0xff] }
 0x167   : > { %v4934_v57 = vpop.f32.mrf.mxu2  ;;  %v3106_v59 = vpop.f32.mrf.mxu0 }
 0x168   : > { %v7725_v58 = vadd.f32 %v4934_v57, %v3954_v53  ;;  %v3955_v61 = vpop.f32.mrf.mxu1 }
 0x169   : > { %v3956_v62 = vadd.f32 %v3955_v61, %v3106_v59 }
 0x16d   : > { %v7727_v63 = vpop.f32.mrf.mxu3 }
 0x16e   : > { %8556 = vst [vmem:[#allocation8_spill] sm:$0xff] %v7727_v63 }
 0x16f   : > { %v4936_v1 = vpop.f32.mrf.mxu2  ;;  %v3109_v5 = vpop.f32.mrf.mxu0 }
 0x170   : > { %v7731_v4 = vadd.f32 %v4936_v1, %v3956_v62  ;;  %v3958_v10 = vpop.f32.mrf.mxu1 }
 0x171   : > { %v3959_v11 = vadd.f32 %v3958_v10, %v3109_v5 }
 0x172   : > { %8557 = vst [vmem:[#allocation9_spill] sm:$0xff] %v7731_v4  ;;  %6074 = vmatmul.msk.bf16.gmra.mxu0 %vm2875_vm2, %v6984_v2  ;;  %6122 = vmatmul.msk.bf16.gmra.mxu3 %vm2875_vm2, %v7032_v3 }
 0x173   : > { %6398 = vmatmul.msk.bf16.gmra.mxu1 %vm2875_vm2, %v6919_v7  ;;  %v6987_v7 = vld [vmem:[%s7585_s20 + $0x180] sm:$0xff] }
 0x174   : > { %6852 = vmatmul.msk.bf16.gmra.mxu2 %vm2875_vm2, %v7049_v9  ;;  %v6954_v9 = vld [vmem:[%s7585_s20 + $0x180] sm:$0xff] }
 0x175   : > { %v7739_v13 = vpop.f32.mrf.mxu3 }
 0x176   : > { %8558 = vst [vmem:[#allocation10_spill] sm:$0xff] %v7739_v13  ;;  %v6965_v13 = vld [vmem:[%s7585_s20 + $0x1d8] sm:$0xff] }
 0x177   : > { %v4939_v14 = vpop.f32.mrf.mxu2  ;;  %v3111_v17 = vpop.f32.mrf.mxu0 }
 0x178   : > { %v7741_v15 = vadd.f32 %v4939_v14, %v3959_v11  ;;  %v3960_v18 = vpop.f32.mrf.mxu1  ;;  %v6922_v14 = vld [vmem:[%s7585_s20 + $0x80] sm:$0xff] }
 0x179   : > { %v3961_v19 = vadd.f32 %v3960_v18, %v3111_v17  ;;  %v7052_v17 = vld [vmem:[%s7585_s20 + $0x280] sm:$0xff] }
 0x17d   : > { %v7743_v20 = vpop.f32.mrf.mxu3 }
 0x17e   : > { %8559 = vst [vmem:[#allocation11_spill] sm:$0xff] %v7743_v20 }
 0x17f   : > { %v4941_v21 = vpop.f32.mrf.mxu2  ;;  %v3114_v27 = vpop.f32.mrf.mxu0 }
 0x180   : > { %v7747_v26 = vadd.f32 %v4941_v21, %v3961_v19  ;;  %v3963_v31 = vpop.f32.mrf.mxu1 }
 0x181   : > { %v3964_v33 = vadd.f32 %v3963_v31, %v3114_v27 }
 0x182   : > { %8560 = vst [vmem:[#allocation12_spill] sm:$0xff] %v7747_v26  ;;  %6075 = vmatmul.msk.bf16.gmra.mxu0 %vm2875_vm2, %v6985_v23  ;;  %6123 = vmatmul.msk.bf16.gmra.mxu3 %vm2875_vm2, %v7033_v25 }
 0x183   : > { %6399 = vmatmul.msk.bf16.gmra.mxu1 %vm2875_vm2, %v6920_v29 }
 0x184   : > { %6853 = vmatmul.msk.bf16.gmra.mxu2 %vm2875_vm2, %v7050_v30 }
 0x185   : > { %v7755_v34 = vpop.f32.mrf.mxu3 }
 0x186   : > { %8561 = vst [vmem:[#allocation13_spill] sm:$0xff] %v7755_v34  ;;  %v7062_v34 = vld [vmem:[%s7585_s20 + $0x2d0] sm:$0xff] }
 0x187   : > { %v4944_v35 = vpop.f32.mrf.mxu2  ;;  %v3116_v37 = vpop.f32.mrf.mxu0 }
 0x188   : > { %v7757_v36 = vadd.f32 %v4944_v35, %v3964_v33  ;;  %v3965_v39 = vpop.f32.mrf.mxu1  ;;  %v6988_v35 = vld [vmem:[%s7585_s20 + $0x188] sm:$0xff] }
 0x189   : > { %v3966_v41 = vadd.f32 %v3965_v39, %v3116_v37  ;;  %v6955_v37 = vld [vmem:[%s7585_s20 + $0x188] sm:$0xff] }
 0x18d   : > { %v7759_v42 = vpop.f32.mrf.mxu3 }
 0x18e   : > { %8562 = vst [vmem:[#allocation14_spill] sm:$0xff] %v7759_v42 }
 0x18f   : > { %v4946_v43 = vpop.f32.mrf.mxu2  ;;  %v3119_v49 = vpop.f32.mrf.mxu0 }
 0x190   : > { %v7763_v47 = vadd.f32 %v4946_v43, %v3966_v41  ;;  %v3968_v52 = vpop.f32.mrf.mxu1  ;;  %v6923_v43 = vld [vmem:[%s7585_s20 + $0x88] sm:$0xff] }
 0x191   : > { %v3969_v53 = vadd.f32 %v3968_v52, %v3119_v49 }
 0x192   : > { %8563 = vst [vmem:[#allocation15_spill] sm:$0xff] %v7763_v47  ;;  %6076 = vmatmul.msk.bf16.gmra.mxu0 %vm2875_vm2, %v6986_v45  ;;  %6124 = vmatmul.msk.bf16.gmra.mxu3 %vm2875_vm2, %v7034_v46  ;;  %v7053_v45 = vld [vmem:[%s7585_s20 + $0x288] sm:$0xff] }
 0x193   : > { %6400 = vmatmul.msk.bf16.gmra.mxu1 %vm2875_vm2, %v6921_v50 }
 0x194   : > { %6854 = vmatmul.msk.bf16.gmra.mxu2 %vm2875_vm2, %v7051_v51 }
 0x195   : > { %v7771_v57 = vpop.f32.mrf.mxu3 }
 0x196   : > { %8564 = vst [vmem:[#allocation16_spill] sm:$0xff] %v7771_v57  ;;  %v6964_v57 = vld [vmem:[%s7585_s20 + $0x1d0] sm:$0xff] }
 0x197   : > { %v4949_v59 = vpop.f32.mrf.mxu2  ;;  %v3121_v62 = vpop.f32.mrf.mxu0 }
 0x198   : > { %v7773_v61 = vadd.f32 %v4949_v59, %v3969_v53  ;;  %v3970_v1 = vpop.f32.mrf.mxu1 }
 0x199   : > { %v3971_v2 = vadd.f32 %v3970_v1, %v3121_v62 }
 0x19d   : > { %v7775_v3 = vpop.f32.mrf.mxu3 }
 0x19e   : > { %8565 = vst [vmem:[#allocation17_spill] sm:$0xff] %v7775_v3 }
 0x19f   : > { %v4951_v5 = vpop.f32.mrf.mxu2  ;;  %v3124_v11 = vpop.f32.mrf.mxu0 }
 0x1a0   : > { %v7779_v10 = vadd.f32 %v4951_v5, %v3971_v2  ;;  %v3973_v18 = vpop.f32.mrf.mxu1  ;;  %v6989_v5 = vld [vmem:[%s7585_s20 + $0x190] sm:$0xff] }
 0x1a1   : > { %v3974_v19 = vadd.f32 %v3973_v18, %v3124_v11 }
 0x1a2   : > { %8566 = vst [vmem:[#allocation18_spill] sm:$0xff] %v7779_v10  ;;  %6077 = vmatmul.msk.bf16.gmra.mxu0 %vm2875_vm2, %v6987_v7  ;;  %6433 = vmatmul.msk.bf16.vlgmr.msrb.gmra.mxu3 %vm2875_vm2, %v6954_v9  ;;  %v6956_v7 = vld [vmem:[%s7585_s20 + $0x190] sm:$0xff] }
 0x1a3   : > { %6401 = vmatmul.msk.bf16.gmra.mxu1 %vm2875_vm2, %v6922_v14  ;;  %v6924_v14 = vld [vmem:[%s7585_s20 + $0x90] sm:$0xff] }
 0x1a4   : > { %6855 = vmatmul.msk.bf16.gmra.mxu2 %vm2875_vm2, %v7052_v17  ;;  %v7054_v17 = vld [vmem:[%s7585_s20 + $0x290] sm:$0xff] }
 0x1a5   : > { %v7787_v21 = vpop.f32.mrf.mxu3 }
 0x1a6   : > { %8567 = vst [vmem:[#allocation19_spill] sm:$0xff] %v7787_v21  ;;  %v7061_v21 = vld [vmem:[%s7585_s20 + $0x2c8] sm:$0xff] }
 0x1a7   : > { %v4954_v23 = vpop.f32.mrf.mxu2  ;;  %v3126_v27 = vpop.f32.mrf.mxu0 }
 0x1a8   : > { %v7789_v25 = vadd.f32 %v4954_v23, %v3974_v19  ;;  %v3975_v29 = vpop.f32.mrf.mxu1 }
 0x1a9   : > { %v3976_v30 = vadd.f32 %v3975_v29, %v3126_v27 }
 0x1ad   : > { %v7791_v31 = vpop.f32.mrf.mxu3 }
 0x1ae   : > { %8568 = vst [vmem:[#allocation20_spill] sm:$0xff] %v7791_v31 }
 0x1af   : > { %v4956_v33 = vpop.f32.mrf.mxu2  ;;  %v3129_v41 = vpop.f32.mrf.mxu0 }
 0x1b0   : > { %v7795_v39 = vadd.f32 %v4956_v33, %v3976_v30  ;;  %v3978_v46 = vpop.f32.mrf.mxu1 }
 0x1b1   : > { %v3979_v49 = vadd.f32 %v3978_v46, %v3129_v41 }
 0x1b2   : > { %8569 = vst [vmem:[#allocation21_spill] sm:$0xff] %v7795_v39  ;;  %6078 = vmatmul.msk.bf16.gmra.mxu0 %vm2875_vm2, %v6988_v35  ;;  %6434 = vmatmul.msk.bf16.gmra.mxu3 %vm2875_vm2, %v6955_v37 }
 0x1b3   : > { %6402 = vmatmul.msk.bf16.gmra.mxu1 %vm2875_vm2, %v6923_v43  ;;  %v6990_v43 = vld [vmem:[%s7585_s20 + $0x198] sm:$0xff] }
 0x1b4   : > { %6856 = vmatmul.msk.bf16.gmra.mxu2 %vm2875_vm2, %v7053_v45  ;;  %v6957_v45 = vld [vmem:[%s7585_s20 + $0x198] sm:$0xff] }
 0x1b5   : > { %v7803_v50 = vpop.f32.mrf.mxu3 }
 0x1b6   : > { %8570 = vst [vmem:[#allocation22_spill] sm:$0xff] %v7803_v50  ;;  %v6930_v50 = vld [vmem:[%s7585_s20 + $0xc0] sm:$0xff] }
 0x1b7   : > { %v4959_v51 = vpop.f32.mrf.mxu2  ;;  %v3131_v53 = vpop.f32.mrf.mxu0 }
 0x1b8   : > { %v7805_v52 = vadd.f32 %v4959_v51, %v3979_v49  ;;  %v3980_v59 = vpop.f32.mrf.mxu1  ;;  %v6925_v51 = vld [vmem:[%s7585_s20 + $0x98] sm:$0xff] }
 0x1b9   : > { %v3981_v62 = vadd.f32 %v3980_v59, %v3131_v53  ;;  %v7055_v53 = vld [vmem:[%s7585_s20 + $0x298] sm:$0xff] }
 0x1bd   : > { %v7807_v1 = vpop.f32.mrf.mxu3 }
 0x1be   : > { %8571 = vst [vmem:[#allocation23_spill] sm:$0xff] %v7807_v1 }
 0x1bf   : > { %v4961_v2 = vpop.f32.mrf.mxu2  ;;  %v3134_v11 = vpop.f32.mrf.mxu0 }
 0x1c0   : > { %v7811_v9 = vadd.f32 %v4961_v2, %v3981_v62  ;;  %v3983_v18 = vpop.f32.mrf.mxu1 }
 0x1c1   : > { %v3984_v19 = vadd.f32 %v3983_v18, %v3134_v11 }
 0x1c2   : > { %8572 = vst [vmem:[#allocation24_spill] sm:$0xff] %v7811_v9  ;;  %6079 = vmatmul.msk.bf16.gmra.mxu0 %vm2875_vm2, %v6989_v5  ;;  %6435 = vmatmul.msk.bf16.gmra.mxu3 %vm2875_vm2, %v6956_v7 }
 0x1c3   : > { %6403 = vmatmul.msk.bf16.gmra.mxu1 %vm2875_vm2, %v6924_v14 }
 0x1c4   : > { %6857 = vmatmul.msk.bf16.gmra.mxu2 %vm2875_vm2, %v7054_v17 }
 0x1c5   : > { %v7819_v23 = vpop.f32.mrf.mxu3 }
 0x1c6   : > { %8573 = vst [vmem:[#allocation25_spill] sm:$0xff] %v7819_v23  ;;  %v6929_v23 = vld [vmem:[%s7585_s20 + $0xb8] sm:$0xff] }
 0x1c7   : > { %v4964_v27 = vpop.f32.mrf.mxu2  ;;  %v3136_v30 = vpop.f32.mrf.mxu0 }
 0x1c8   : > { %v7821_v29 = vadd.f32 %v4964_v27, %v3984_v19  ;;  %v3985_v33 = vpop.f32.mrf.mxu1  ;;  %v6991_v27 = vld [vmem:[%s7585_s20 + $0x1a0] sm:$0xff] }
 0x1c9   : > { %v3986_v35 = vadd.f32 %v3985_v33, %v3136_v30  ;;  %v6958_v30 = vld [vmem:[%s7585_s20 + $0x1a0] sm:$0xff] }
 0x1cd   : > { %v7823_v37 = vpop.f32.mrf.mxu3 }
 0x1ce   : > { %8574 = vst [vmem:[#allocation26_spill] sm:$0xff] %v7823_v37 }
 0x1cf   : > { %v4966_v41 = vpop.f32.mrf.mxu2  ;;  %v3139_v49 = vpop.f32.mrf.mxu0 }
 0x1d0   : > { %v7827_v46 = vadd.f32 %v4966_v41, %v3986_v35  ;;  %v3988_v59 = vpop.f32.mrf.mxu1  ;;  %v6926_v41 = vld [vmem:[%s7585_s20 + $0xa0] sm:$0xff] }
 0x1d1   : > { %v3989_v62 = vadd.f32 %v3988_v59, %v3139_v49 }
 0x1d2   : > { %8575 = vst [vmem:[#allocation27_spill] sm:$0xff] %v7827_v46  ;;  %6080 = vmatmul.msk.bf16.gmra.mxu0 %vm2875_vm2, %v6990_v43  ;;  %6436 = vmatmul.msk.bf16.gmra.mxu3 %vm2875_vm2, %v6957_v45  ;;  %v7056_v43 = vld [vmem:[%s7585_s20 + $0x2a0] sm:$0xff] }
 0x1d3   : > { %6404 = vmatmul.msk.bf16.gmra.mxu1 %vm2875_vm2, %v6925_v51 }
 0x1d4   : > { %6858 = vmatmul.msk.bf16.gmra.mxu2 %vm2875_vm2, %v7055_v53 }
 0x1d5   : > { %v7835_v2 = vpop.f32.mrf.mxu3 }
 0x1d6   : > { %8576 = vst [vmem:[#allocation28_spill] sm:$0xff] %v7835_v2  ;;  %v6928_v2 = vld [vmem:[%s7585_s20 + $0xb0] sm:$0xff] }
 0x1d7   : > { %v4969_v5 = vpop.f32.mrf.mxu2  ;;  %v3141_v11 = vpop.f32.mrf.mxu0 }
 0x1d8   : > { %v7837_v7 = vadd.f32 %v4969_v5, %v3989_v62  ;;  %v3990_v14 = vpop.f32.mrf.mxu1 }
 0x1d9   : > { %v3991_v17 = vadd.f32 %v3990_v14, %v3141_v11 }
 0x1dd   : > { %v7839_v18 = vpop.f32.mrf.mxu3 }
 0x1de   : > { %8577 = vst [vmem:[#allocation29_spill] sm:$0xff] %v7839_v18 }
 0x1df   : > { %v4971_v19 = vpop.f32.mrf.mxu2  ;;  %v3144_v35 = vpop.f32.mrf.mxu0 }
 0x1e0   : > { %v7843_v33 = vadd.f32 %v4971_v19, %v3991_v17  ;;  %v3993_v45 = vpop.f32.mrf.mxu1  ;;  %v6992_v19 = vld [vmem:[%s7585_s20 + $0x1a8] sm:$0xff] }
 0x1e1   : > { %v3994_v49 = vadd.f32 %v3993_v45, %v3144_v35  ;;  %v6927_v45 = vld [vmem:[%s7585_s20 + $0xa8] sm:$0xff] }
 0x1e2   : > { %8578 = vst [vmem:[#allocation30_spill] sm:$0xff] %v7843_v33  ;;  %6081 = vmatmul.msk.bf16.gmra.mxu0 %vm2875_vm2, %v6991_v27  ;;  %6437 = vmatmul.msk.bf16.gmra.mxu3 %vm2875_vm2, %v6958_v30  ;;  %v6959_v27 = vld [vmem:[%s7585_s20 + $0x1a8] sm:$0xff] }
 0x1e3   : > { %6405 = vmatmul.msk.bf16.gmra.mxu1 %vm2875_vm2, %v6926_v41  ;;  %v7057_v41 = vld [vmem:[%s7585_s20 + $0x2a8] sm:$0xff] }
 0x1e4   : > { %6859 = vmatmul.msk.bf16.gmra.mxu2 %vm2875_vm2, %v7056_v43 }
 0x1e5   : > { %v7851_v51 = vpop.f32.mrf.mxu3 }
 0x1e6   : > { %8579 = vst [vmem:[#allocation31_spill] sm:$0xff] %v7851_v51 }
 0x1e7   : > { %v4974_v53 = vpop.f32.mrf.mxu2  ;;  %v3146_v62 = vpop.f32.mrf.mxu0 }
 0x1e8   : > { %v7853_v59 = vadd.f32 %v4974_v53, %v3994_v49  ;;  %v3995_v5 = vpop.f32.mrf.mxu1 }
 0x1e9   : > { %v3996_v11 = vadd.f32 %v3995_v5, %v3146_v62 }
 0x1ed   : > { %v7855_v14 = vpop.f32.mrf.mxu3 }
 0x1ee   : > { %8580 = vst [vmem:[#allocation32_spill] sm:$0xff] %v7855_v14 }
 0x1ef   : > { %v4976_v17 = vpop.f32.mrf.mxu2  ;;  %v3149_v30 = vpop.f32.mrf.mxu0 }
 0x1f0   : > { %v7859_v35 = vadd.f32 %v4976_v17, %v3996_v11  ;;  %v3998_v43 = vpop.f32.mrf.mxu1 }
 0x1f1   : > { %v3999_v51 = vadd.f32 %v3998_v43, %v3149_v30  ;;  %v6960_v43 = vld [vmem:[%s7585_s20 + $0x1b0] sm:$0xff] }
 0x1f2   : > { %8581 = vst [vmem:[#allocation33_spill] sm:$0xff] %v7859_v35  ;;  %6082 = vmatmul.msk.bf16.gmra.mxu0 %vm2875_vm2, %v6992_v19  ;;  %6438 = vmatmul.msk.bf16.gmra.mxu3 %vm2875_vm2, %v6959_v27  ;;  %v6993_v19 = vld [vmem:[%s7585_s20 + $0x1b0] sm:$0xff] }
 0x1f3   : > { %6406 = vmatmul.msk.bf16.gmra.mxu1 %vm2875_vm2, %v6927_v45  ;;  %v7058_v45 = vld [vmem:[%s7585_s20 + $0x2b0] sm:$0xff] }
 0x1f4   : > { %6860 = vmatmul.msk.bf16.gmra.mxu2 %vm2875_vm2, %v7057_v41 }
 0x1f5   : > { %v7867_v49 = vpop.f32.mrf.mxu3 }
 0x1f6   : > { %8582 = vst [vmem:[#allocation34_spill] sm:$0xff] %v7867_v49 }
 0x1f7   : > { %v4979_v53 = vpop.f32.mrf.mxu2  ;;  %v3151_v5 = vpop.f32.mrf.mxu0 }
 0x1f8   : > { %v7869_v62 = vadd.f32 %v4979_v53, %v3999_v51  ;;  %v4000_v11 = vpop.f32.mrf.mxu1 }
 0x1f9   : > { %v4001_v17 = vadd.f32 %v4000_v11, %v3151_v5 }
 0x1fd   : > { %v7871_v14 = vpop.f32.mrf.mxu3 }
 0x1fe   : > { %8583 = vst [vmem:[#allocation35_spill] sm:$0xff] %v7871_v14 }
 0x1ff   : > { %v4981_v30 = vpop.f32.mrf.mxu2  ;;  %v3154_v27 = vpop.f32.mrf.mxu0 }
 0x200   : > { %v7875_v18 = vadd.f32 %v4981_v30, %v4001_v17  ;;  %v4003_v41 = vpop.f32.mrf.mxu1 }
 0x201   : > { %v4004_v49 = vadd.f32 %v4003_v41, %v3154_v27  ;;  %v6961_v41 = vld [vmem:[%s7585_s20 + $0x1b8] sm:$0xff] }
 0x202   : > { %8584 = vst [vmem:[#allocation36_spill] sm:$0xff] %v7875_v18  ;;  %6083 = vmatmul.msk.bf16.gmra.mxu0 %vm2875_vm2, %v6993_v19  ;;  %6439 = vmatmul.msk.bf16.gmra.mxu3 %vm2875_vm2, %v6960_v43  ;;  %v6994_v19 = vld [vmem:[%s7585_s20 + $0x1b8] sm:$0xff] }
 0x203   : > { %6407 = vmatmul.msk.bf16.gmra.mxu1 %vm2875_vm2, %v6928_v2  ;;  %v7059_v2 = vld [vmem:[%s7585_s20 + $0x2b8] sm:$0xff] }
 0x204   : > { %6861 = vmatmul.msk.bf16.gmra.mxu2 %vm2875_vm2, %v7058_v45 }
 0x205   : > { %v7883_v51 = vpop.f32.mrf.mxu3 }
 0x206   : > { %8585 = vst [vmem:[#allocation37_spill] sm:$0xff] %v7883_v51 }
 0x207   : > { %v4984_v53 = vpop.f32.mrf.mxu2  ;;  %v3156_v11 = vpop.f32.mrf.mxu0 }
 0x208   : > { %v7885_v5 = vadd.f32 %v4984_v53, %v4004_v49  ;;  %v4005_v17 = vpop.f32.mrf.mxu1 }
 0x209   : > { %v4006_v30 = vadd.f32 %v4005_v17, %v3156_v11 }
 0x20d   : > { %v7887_v14 = vpop.f32.mrf.mxu3 }
 0x20e   : > { %8586 = vst [vmem:[#allocation38_spill] sm:$0xff] %v7887_v14 }
 0x20f   : > { %v4986_v27 = vpop.f32.mrf.mxu2  ;;  %v3159_v43 = vpop.f32.mrf.mxu0 }
 0x210   : > { %v7891_v37 = vadd.f32 %v4986_v27, %v4006_v30  ;;  %v4008_v45 = vpop.f32.mrf.mxu1 }
 0x211   : > { %v4009_v51 = vadd.f32 %v4008_v45, %v3159_v43  ;;  %v6962_v45 = vld [vmem:[%s7585_s20 + $0x1c0] sm:$0xff] }
 0x212   : > { %8587 = vst [vmem:[#allocation39_spill] sm:$0xff] %v7891_v37  ;;  %6084 = vmatmul.msk.bf16.gmra.mxu0 %vm2875_vm2, %v6994_v19  ;;  %6440 = vmatmul.msk.bf16.gmra.mxu3 %vm2875_vm2, %v6961_v41  ;;  %v6995_v19 = vld [vmem:[%s7585_s20 + $0x1c0] sm:$0xff] }
 0x213   : > { %6408 = vmatmul.msk.bf16.gmra.mxu1 %vm2875_vm2, %v6929_v23  ;;  %v7060_v23 = vld [vmem:[%s7585_s20 + $0x2c0] sm:$0xff] }
 0x214   : > { %6862 = vmatmul.msk.bf16.gmra.mxu2 %vm2875_vm2, %v7059_v2 }
 0x215   : > { %v7899_v49 = vpop.f32.mrf.mxu3 }
 0x216   : > { %8588 = vst [vmem:[#allocation40_spill] sm:$0xff] %v7899_v49 }
 0x217   : > { %v4989_v53 = vpop.f32.mrf.mxu2  ;;  %v3161_v17 = vpop.f32.mrf.mxu0 }
 0x218   : > { %v7901_v11 = vadd.f32 %v4989_v53, %v4009_v51  ;;  %v4010_v30 = vpop.f32.mrf.mxu1 }
 0x219   : > { %v4011_v27 = vadd.f32 %v4010_v30, %v3161_v17 }
 0x21d   : > { %v7903_v14 = vpop.f32.mrf.mxu3 }
 0x21e   : > { %8589 = vst [vmem:[#allocation41_spill] sm:$0xff] %v7903_v14  ;;  %v6963_v14 = vld [vmem:[%s7585_s20 + $0x1c8] sm:$0xff] }
 0x21f   : > { %v4991_v43 = vpop.f32.mrf.mxu2  ;;  %v3164_v41 = vpop.f32.mrf.mxu0 }
 0x220   : > { %v7907_v1 = vadd.f32 %v4991_v43, %v4011_v27  ;;  %v4013_v2 = vpop.f32.mrf.mxu1 }
 0x221   : > { %v4014_v49 = vadd.f32 %v4013_v2, %v3164_v41  ;;  %v6996_v2 = vld [vmem:[%s7585_s20 + $0x1c8] sm:$0xff] }
 0x222   : > { %6085 = vmatmul.msk.bf16.gmra.mxu0 %vm2875_vm2, %v6995_v19  ;;  %6441 = vmatmul.msk.bf16.gmra.mxu3 %vm2875_vm2, %v6962_v45 }
 0x223   : > { %6409 = vmatmul.msk.bf16.gmra.mxu1 %vm2875_vm2, %v6930_v50 }
 0x224   : > { %6863 = vmatmul.msk.bf16.gmra.mxu2 %vm2875_vm2, %v7060_v23  ;;  %v6931_v23 = vld [vmem:[%s7585_s20 + $0xc8] sm:$0xff] }
 0x225   : > { %v7915_v51 = vpop.f32.mrf.mxu3 }
 0x227   : > { %v4994_v53 = vpop.f32.mrf.mxu2  ;;  %v3166_v30 = vpop.f32.mrf.mxu0 }
 0x228   : > { %v7917_v17 = vadd.f32 %v4994_v53, %v4014_v49  ;;  %v4015_v27 = vpop.f32.mrf.mxu1  ;;  %v6997_v49 = vld [vmem:[%s7585_s20 + $0x1d0] sm:$0xff] }
 0x229   : > { %v4016_v41 = vadd.f32 %v4015_v27, %v3166_v30 }
 0x22d   : > { %v7921_v19 = vpop.f32.mrf.mxu3 }
 0x22f   : > { %v4996_v45 = vpop.f32.mrf.mxu2  ;;  %v3169_v31 = vpop.f32.mrf.mxu0 }
 0x230   : > { %v7925_v50 = vadd.f32 %v4996_v45, %v4016_v41  ;;  %v4018_v3 = vpop.f32.mrf.mxu1 }
 0x231   : > { %v4019_v53 = vadd.f32 %v4018_v3, %v3169_v31 }
 0x232   : > { %6086 = vmatmul.msk.bf16.gmra.mxu0 %vm2875_vm2, %v6996_v2  ;;  %6442 = vmatmul.msk.bf16.gmra.mxu3 %vm2875_vm2, %v6963_v14 }
 0x233   : > { %6410 = vmatmul.msk.bf16.gmra.mxu1 %vm2875_vm2, %v6931_v23 }
 0x234   : > { %6864 = vmatmul.msk.bf16.gmra.mxu2 %vm2875_vm2, %v7061_v21  ;;  %v6932_v21 = vld [vmem:[%s7585_s20 + $0xd0] sm:$0xff] }
 0x235   : > { %v7935_v30 = vpop.f32.mrf.mxu3 }
 0x237   : > { %v4999_v27 = vpop.f32.mrf.mxu2  ;;  %v3171_v45 = vpop.f32.mrf.mxu0 }
 0x238   : > { %v7937_v41 = vadd.f32 %v4999_v27, %v4019_v53  ;;  %v4020_v43 = vpop.f32.mrf.mxu1  ;;  %v6998_v53 = vld [vmem:[%s7585_s20 + $0x1d8] sm:$0xff] }
 0x239   : > { %v4021_v31 = vadd.f32 %v4020_v43, %v3171_v45 }
 0x23d   : > { %v7941_v2 = vpop.f32.mrf.mxu3 }
 0x23f   : > { %v5001_v14 = vpop.f32.mrf.mxu2  ;;  %v3174_v42 = vpop.f32.mrf.mxu0 }
 0x240   : > { %v7945_v23 = vadd.f32 %v5001_v14, %v4021_v31  ;;  %v4023_v20 = vpop.f32.mrf.mxu1 }
 0x241   : > { %v4024_v27 = vadd.f32 %v4023_v20, %v3174_v42 }
 0x242   : > { %6087 = vmatmul.msk.bf16.gmra.mxu0 %vm2875_vm2, %v6997_v49  ;;  %6443 = vmatmul.msk.bf16.gmra.mxu3 %vm2875_vm2, %v6964_v57 }
 0x243   : > { %6411 = vmatmul.msk.bf16.gmra.mxu1 %vm2875_vm2, %v6932_v21 }
 0x244   : > { %6865 = vmatmul.msk.bf16.gmra.mxu2 %vm2875_vm2, %v7062_v34  ;;  %v6933_v34 = vld [vmem:[%s7585_s20 + $0xd8] sm:$0xff] }
 0x245   : > { %v7955_v43 = vpop.f32.mrf.mxu3 }
 0x247   : > { %v5004_v45 = vpop.f32.mrf.mxu2  ;;  %v3176_v14 = vpop.f32.mrf.mxu0 }
 0x248   : > { %v7957_v31 = vadd.f32 %v5004_v45, %v4024_v27  ;;  %v4025_v3 = vpop.f32.mrf.mxu1  ;;  %v6999_v27 = vld [vmem:[%s7585_s20 + $0x1e0] sm:$0xff] }
 0x249   : > { %v4026_v42 = vadd.f32 %v4025_v3, %v3176_v14 }
 0x24d   : > { %v7961_v49 = vpop.f32.mrf.mxu3 }
 0x24f   : > { %v5006_v57 = vpop.f32.mrf.mxu2  ;;  %v3179_v63 = vpop.f32.mrf.mxu0 }
 0x250   : > { %v7965_v21 = vadd.f32 %v5006_v57, %v4026_v42  ;;  %v4028_v44 = vpop.f32.mrf.mxu1 }
 0x251   : > { %v4029_v45 = vadd.f32 %v4028_v44, %v3179_v63 }
 0x252   : > { %8590 = vst [vmem:[#allocation42_spill] sm:$0xff] %v7965_v21  ;;  %6088 = vmatmul.msk.bf16.gmra.mxu0 %vm2875_vm2, %v6998_v53  ;;  %6444 = vmatmul.msk.bf16.gmra.mxu3 %vm2875_vm2, %v6965_v13 }
 0x253   : > { %6412 = vmatmul.msk.bf16.gmra.mxu1 %vm2875_vm2, %v6933_v34 }
 0x254   : > { %6866 = vmatmul.msk.bf16.gmra.mxu2 %vm2875_vm2, %v7063_v55  ;;  %v6934_v55 = vld [vmem:[%s7585_s20 + $0xe0] sm:$0xff] }
 0x255   : > { %v7975_v3 = vpop.f32.mrf.mxu3 }
 0x256   : > { %8591 = vst [vmem:[#allocation43_spill] sm:$0xff] %v7975_v3 }
 0x257   : > { %v5009_v14 = vpop.f32.mrf.mxu2  ;;  %v3181_v57 = vpop.f32.mrf.mxu0 }
 0x258   : > { %v7977_v42 = vadd.f32 %v5009_v14, %v4029_v45  ;;  %v4030_v20 = vpop.f32.mrf.mxu1  ;;  %v7000_v45 = vld [vmem:[%s7585_s20 + $0x1e8] sm:$0xff] }
 0x259   : > { %v4031_v63 = vadd.f32 %v4030_v20, %v3181_v57 }
 0x25d   : > { %v7981_v53 = vpop.f32.mrf.mxu3 }
 0x25e   : > { %8592 = vst [vmem:[#allocation44_spill] sm:$0xff] %v7981_v53  ;;  %v7065_v53 = vld [vmem:[%s7585_s20 + $0x2e8] sm:$0xff] }
 0x25f   : > { %v5011_v13 = vpop.f32.mrf.mxu2  ;;  %v3184_v21 = vpop.f32.mrf.mxu0 }
 0x260   : > { %v7985_v34 = vadd.f32 %v5011_v13, %v4031_v63  ;;  %v4033_v3 = vpop.f32.mrf.mxu1 }
 0x261   : > { %v4034_v14 = vadd.f32 %v4033_v3, %v3184_v21 }
 0x262   : > { %8593 = vst [vmem:[#allocation45_spill] sm:$0xff] %v7985_v34  ;;  %6089 = vmatmul.msk.bf16.gmra.mxu0 %vm2875_vm2, %v6999_v27  ;;  %6445 = vmatmul.msk.bf16.gmra.mxu3 %vm2875_vm2, %v6966_v38  ;;  %v6967_v34 = vld [vmem:[%s7585_s20 + $0x1e8] sm:$0xff] }
 0x263   : > { %6413 = vmatmul.msk.bf16.gmra.mxu1 %vm2875_vm2, %v6934_v55 }
 0x264   : > { %6867 = vmatmul.msk.bf16.gmra.mxu2 %vm2875_vm2, %v7064_v32  ;;  %v6935_v32 = vld [vmem:[%s7585_s20 + $0xe8] sm:$0xff] }
 0x265   : > { %v7995_v20 = vpop.f32.mrf.mxu3 }
 0x266   : > { %8594 = vst [vmem:[#allocation46_spill] sm:$0xff] %v7995_v20 }
 0x267   : > { %v5014_v57 = vpop.f32.mrf.mxu2  ;;  %v3186_v13 = vpop.f32.mrf.mxu0 }
 0x268   : > { %v7997_v63 = vadd.f32 %v5014_v57, %v4034_v14  ;;  %v4035_v44 = vpop.f32.mrf.mxu1  ;;  %v7001_v14 = vld [vmem:[%s7585_s20 + $0x1f0] sm:$0xff] }
 0x269   : > { %v4036_v3 = vadd.f32 %v4035_v44, %v3186_v13 }
 0x26d   : > { %v8001_v27 = vpop.f32.mrf.mxu3 }
 0x26e   : > { %8595 = vst [vmem:[#allocation47_spill] sm:$0xff] %v8001_v27  ;;  %v7066_v27 = vld [vmem:[%s7585_s20 + $0x2f0] sm:$0xff] }
 0x26f   : > { %v5016_v38 = vpop.f32.mrf.mxu2  ;;  %v3189_v48 = vpop.f32.mrf.mxu0 }
 0x270   : > { %v8005_v55 = vadd.f32 %v5016_v38, %v4036_v3  ;;  %v4038_v20 = vpop.f32.mrf.mxu1 }
 0x271   : > { %v4039_v57 = vadd.f32 %v4038_v20, %v3189_v48 }
 0x272   : > { %8596 = vst [vmem:[#allocation48_spill] sm:$0xff] %v8005_v55  ;;  %6090 = vmatmul.msk.bf16.gmra.mxu0 %vm2875_vm2, %v7000_v45  ;;  %6446 = vmatmul.msk.bf16.gmra.mxu3 %vm2875_vm2, %v6967_v34  ;;  %v6968_v55 = vld [vmem:[%s7585_s20 + $0x1f0] sm:$0xff] }
 0x273   : > { %6414 = vmatmul.msk.bf16.gmra.mxu1 %vm2875_vm2, %v6935_v32 }
 0x274   : > { %6868 = vmatmul.msk.bf16.gmra.mxu2 %vm2875_vm2, %v7065_v53  ;;  %v6936_v53 = vld [vmem:[%s7585_s20 + $0xf0] sm:$0xff] }
 0x275   : > { %v8015_v44 = vpop.f32.mrf.mxu3 }
 0x276   : > { %8597 = vst [vmem:[#allocation49_spill] sm:$0xff] %v8015_v44 }
 0x277   : > { %v5019_v13 = vpop.f32.mrf.mxu2  ;;  %v3191_v38 = vpop.f32.mrf.mxu0 }
 0x278   : > { %v8017_v3 = vadd.f32 %v5019_v13, %v4039_v57  ;;  %v4040_v21 = vpop.f32.mrf.mxu1  ;;  %v7002_v57 = vld [vmem:[%s7585_s20 + $0x1f8] sm:$0xff] }
 0x279   : > { %v4041_v20 = vadd.f32 %v4040_v21, %v3191_v38 }
 0x27d   : > { %v8021_v45 = vpop.f32.mrf.mxu3 }
 0x27e   : > { %8598 = vst [vmem:[#allocation50_spill] sm:$0xff] %v8021_v45  ;;  %v7067_v45 = vld [vmem:[%s7585_s20 + $0x2f8] sm:$0xff] }
 0x27f   : > { %v5021_v34 = vpop.f32.mrf.mxu2  ;;  %v3194_v4 = vpop.f32.mrf.mxu0 }
 0x280   : > { %v8025_v32 = vadd.f32 %v5021_v34, %v4041_v20  ;;  %v4043_v44 = vpop.f32.mrf.mxu1 }
 0x281   : > { %v4044_v13 = vadd.f32 %v4043_v44, %v3194_v4 }
 0x282   : > { %8599 = vst [vmem:[#allocation51_spill] sm:$0xff] %v8025_v32  ;;  %6091 = vmatmul.msk.bf16.gmra.mxu0 %vm2875_vm2, %v7001_v14  ;;  %6447 = vmatmul.msk.bf16.gmra.mxu3 %vm2875_vm2, %v6968_v55  ;;  %v6969_v32 = vld [vmem:[%s7585_s20 + $0x1f8] sm:$0xff] }
 0x283   : > { %6415 = vmatmul.msk.bf16.gmra.mxu1 %vm2875_vm2, %v6936_v53 }
 0x284   : > { %6869 = vmatmul.msk.bf16.gmra.mxu2 %vm2875_vm2, %v7066_v27  ;;  %v6937_v27 = vld [vmem:[%s7585_s20 + $0xf8] sm:$0xff] }
 0x285   : > { %v8035_v21 = vpop.f32.mrf.mxu3 }
 0x286   : > { %8600 = vst [vmem:[#allocation52_spill] sm:$0xff] %v8035_v21 }
 0x287   : > { %v5024_v38 = vpop.f32.mrf.mxu2  ;;  %v3196_v34 = vpop.f32.mrf.mxu0 }
 0x288   : > { %v8037_v20 = vadd.f32 %v5024_v38, %v4044_v13  ;;  %v4045_v48 = vpop.f32.mrf.mxu1  ;;  %v7003_v13 = vld [vmem:[%s7585_s20 + $0x200] sm:$0xff] }
 0x289   : > { %v4046_v44 = vadd.f32 %v4045_v48, %v3196_v34 }
 0x28d   : > { %v8041_v14 = vpop.f32.mrf.mxu3 }
 0x28e   : > { %8601 = vst [vmem:[#allocation53_spill] sm:$0xff] %v8041_v14  ;;  %v7068_v14 = vld [vmem:[%s7585_s20 + $0x300] sm:$0xff] }
 0x28f   : > { %v5026_v55 = vpop.f32.mrf.mxu2  ;;  %v3199_v26 = vpop.f32.mrf.mxu0 }
 0x290   : > { %v8045_v53 = vadd.f32 %v5026_v55, %v4046_v44  ;;  %v4048_v21 = vpop.f32.mrf.mxu1 }
 0x291   : > { %v4049_v38 = vadd.f32 %v4048_v21, %v3199_v26 }
 0x292   : > { %8602 = vst [vmem:[#allocation54_spill] sm:$0xff] %v8045_v53  ;;  %6092 = vmatmul.msk.bf16.gmra.mxu0 %vm2875_vm2, %v7002_v57  ;;  %6448 = vmatmul.msk.bf16.gmra.mxu3 %vm2875_vm2, %v6969_v32  ;;  %v7084_v53 = vld [vmem:[%s7585_s20 + $0x380] sm:$0xff] }
 0x293   : > { %6416 = vmatmul.msk.bf16.gmra.mxu1 %vm2875_vm2, %v6937_v27 }
 0x294   : > { %6870 = vmatmul.msk.bf16.gmra.mxu2 %vm2875_vm2, %v7067_v45  ;;  %v6938_v45 = vld [vmem:[%s7585_s20 + $0x100] sm:$0xff] }
 0x295   : > { %v8055_v48 = vpop.f32.mrf.mxu3 }
 0x296   : > { %8603 = vst [vmem:[#allocation55_spill] sm:$0xff] %v8055_v48 }
 0x297   : > { %v5029_v34 = vpop.f32.mrf.mxu2  ;;  %v3201_v55 = vpop.f32.mrf.mxu0 }
 0x298   : > { %v8057_v44 = vadd.f32 %v5029_v34, %v4049_v38  ;;  %v4050_v4 = vpop.f32.mrf.mxu1  ;;  %v7004_v38 = vld [vmem:[%s7585_s20 + $0x208] sm:$0xff] }
 0x299   : > { %v4051_v21 = vadd.f32 %v4050_v4, %v3201_v55 }
 0x29d   : > { %v8061_v57 = vpop.f32.mrf.mxu3 }
 0x29e   : > { %8604 = vst [vmem:[#allocation56_spill] sm:$0xff] %v8061_v57  ;;  %v7069_v57 = vld [vmem:[%s7585_s20 + $0x308] sm:$0xff] }
 0x29f   : > { %v5031_v32 = vpop.f32.mrf.mxu2  ;;  %v3204_v47 = vpop.f32.mrf.mxu0 }
 0x2a0   : > { %v8065_v27 = vadd.f32 %v5031_v32, %v4051_v21  ;;  %v4053_v48 = vpop.f32.mrf.mxu1 }
 0x2a1   : > { %v4054_v34 = vadd.f32 %v4053_v48, %v3204_v47 }
 0x2a2   : > { %8605 = vst [vmem:[#allocation57_spill] sm:$0xff] %v8065_v27  ;;  %6093 = vmatmul.msk.bf16.gmra.mxu0 %vm2875_vm2, %v7003_v13  ;;  %6887 = vmatmul.msk.bf16.vlgmr.msra.gmra.mxu3 %vm2875_vm2, %v7084_v53  ;;  %v7085_v27 = vld [vmem:[%s7585_s20 + $0x388] sm:$0xff] }
 0x2a3   : > { %6417 = vmatmul.msk.bf16.gmra.mxu1 %vm2875_vm2, %v6938_v45 }
 0x2a4   : > { %6871 = vmatmul.msk.bf16.gmra.mxu2 %vm2875_vm2, %v7068_v14  ;;  %v6939_v14 = vld [vmem:[%s7585_s20 + $0x108] sm:$0xff] }
 0x2a5   : > { %v8075_v4 = vpop.f32.mrf.mxu3 }
 0x2a6   : > { %8606 = vst [vmem:[#allocation58_spill] sm:$0xff] %v8075_v4 }
 0x2a7   : > { %v5034_v55 = vpop.f32.mrf.mxu2  ;;  %v3206_v32 = vpop.f32.mrf.mxu0 }
 0x2a8   : > { %v8077_v21 = vadd.f32 %v5034_v55, %v4054_v34  ;;  %v4055_v26 = vpop.f32.mrf.mxu1  ;;  %v7005_v34 = vld [vmem:[%s7585_s20 + $0x210] sm:$0xff] }
 0x2a9   : > { %v4056_v48 = vadd.f32 %v4055_v26, %v3206_v32 }
 0x2ad   : > { %v8081_v13 = vpop.f32.mrf.mxu3 }
 0x2ae   : > { %8607 = vst [vmem:[#allocation59_spill] sm:$0xff] %v8081_v13  ;;  %v7070_v13 = vld [vmem:[%s7585_s20 + $0x310] sm:$0xff] }
 0x2af   : > { %v5036_v53 = vpop.f32.mrf.mxu2  ;;  %v3209_v10 = vpop.f32.mrf.mxu0 }
 0x2b0   : > { %v8085_v45 = vadd.f32 %v5036_v53, %v4056_v48  ;;  %v4058_v4 = vpop.f32.mrf.mxu1 }
 0x2b1   : > { %v4059_v55 = vadd.f32 %v4058_v4, %v3209_v10 }
 0x2b2   : > { %8608 = vst [vmem:[#allocation60_spill] sm:$0xff] %v8085_v45  ;;  %6094 = vmatmul.msk.bf16.gmra.mxu0 %vm2875_vm2, %v7004_v38  ;;  %6888 = vmatmul.msk.bf16.gmra.mxu3 %vm2875_vm2, %v7085_v27  ;;  %v7086_v45 = vld [vmem:[%s7585_s20 + $0x390] sm:$0xff] }
 0x2b3   : > { %6418 = vmatmul.msk.bf16.gmra.mxu1 %vm2875_vm2, %v6939_v14 }
 0x2b4   : > { %6872 = vmatmul.msk.bf16.gmra.mxu2 %vm2875_vm2, %v7069_v57  ;;  %v6940_v57 = vld [vmem:[%s7585_s20 + $0x110] sm:$0xff] }
 0x2b5   : > { %v8095_v26 = vpop.f32.mrf.mxu3 }
 0x2b6   : > { %8609 = vst [vmem:[#allocation61_spill] sm:$0xff] %v8095_v26 }
 0x2b7   : > { %v5039_v32 = vpop.f32.mrf.mxu2  ;;  %v3211_v53 = vpop.f32.mrf.mxu0 }
 0x2b8   : > { %v8097_v48 = vadd.f32 %v5039_v32, %v4059_v55  ;;  %v4060_v47 = vpop.f32.mrf.mxu1  ;;  %v7006_v55 = vld [vmem:[%s7585_s20 + $0x218] sm:$0xff] }
 0x2b9   : > { %v4061_v4 = vadd.f32 %v4060_v47, %v3211_v53 }
 0x2bd   : > { %v8101_v38 = vpop.f32.mrf.mxu3 }
 0x2be   : > { %8610 = vst [vmem:[#allocation62_spill] sm:$0xff] %v8101_v38  ;;  %v7071_v38 = vld [vmem:[%s7585_s20 + $0x318] sm:$0xff] }
 0x2bf   : > { %v5041_v27 = vpop.f32.mrf.mxu2  ;;  %v3214_v39 = vpop.f32.mrf.mxu0 }
 0x2c0   : > { %v8105_v14 = vadd.f32 %v5041_v27, %v4061_v4  ;;  %v4063_v26 = vpop.f32.mrf.mxu1 }
 0x2c1   : > { %v4064_v32 = vadd.f32 %v4063_v26, %v3214_v39 }
 0x2c2   : > { %8611 = vst [vmem:[#allocation63_spill] sm:$0xff] %v8105_v14  ;;  %6095 = vmatmul.msk.bf16.gmra.mxu0 %vm2875_vm2, %v7005_v34  ;;  %6889 = vmatmul.msk.bf16.gmra.mxu3 %vm2875_vm2, %v7086_v45  ;;  %v7087_v14 = vld [vmem:[%s7585_s20 + $0x398] sm:$0xff] }
 0x2c3   : > { %6419 = vmatmul.msk.bf16.gmra.mxu1 %vm2875_vm2, %v6940_v57 }
 0x2c4   : > { %6873 = vmatmul.msk.bf16.gmra.mxu2 %vm2875_vm2, %v7070_v13  ;;  %v6941_v13 = vld [vmem:[%s7585_s20 + $0x118] sm:$0xff] }
 0x2c5   : > { %v8115_v47 = vpop.f32.mrf.mxu3 }
 0x2c6   : > { %8612 = vst [vmem:[#allocation64_spill] sm:$0xff] %v8115_v47 }
 0x2c7   : > { %v5044_v53 = vpop.f32.mrf.mxu2  ;;  %v3216_v27 = vpop.f32.mrf.mxu0 }
 0x2c8   : > { %v8117_v4 = vadd.f32 %v5044_v53, %v4064_v32  ;;  %v4065_v10 = vpop.f32.mrf.mxu1  ;;  %v7007_v32 = vld [vmem:[%s7585_s20 + $0x220] sm:$0xff] }
 0x2c9   : > { %v4066_v26 = vadd.f32 %v4065_v10, %v3216_v27 }
 0x2cd   : > { %v8121_v34 = vpop.f32.mrf.mxu3 }
 0x2ce   : > { %8613 = vst [vmem:[#allocation65_spill] sm:$0xff] %v8121_v34  ;;  %v7072_v34 = vld [vmem:[%s7585_s20 + $0x320] sm:$0xff] }
 0x2cf   : > { %v5046_v45 = vpop.f32.mrf.mxu2  ;;  %v3219_v9 = vpop.f32.mrf.mxu0 }
 0x2d0   : > { %v8125_v57 = vadd.f32 %v5046_v45, %v4066_v26  ;;  %v4068_v47 = vpop.f32.mrf.mxu1 }
 0x2d1   : > { %v4069_v53 = vadd.f32 %v4068_v47, %v3219_v9 }
 0x2d2   : > { %8614 = vst [vmem:[#allocation66_spill] sm:$0xff] %v8125_v57  ;;  %6096 = vmatmul.msk.bf16.gmra.mxu0 %vm2875_vm2, %v7006_v55  ;;  %6890 = vmatmul.msk.bf16.gmra.mxu3 %vm2875_vm2, %v7087_v14  ;;  %v7088_v57 = vld [vmem:[%s7585_s20 + $0x3a0] sm:$0xff] }
 0x2d3   : > { %6420 = vmatmul.msk.bf16.gmra.mxu1 %vm2875_vm2, %v6941_v13 }
 0x2d4   : > { %6874 = vmatmul.msk.bf16.gmra.mxu2 %vm2875_vm2, %v7071_v38  ;;  %v6942_v38 = vld [vmem:[%s7585_s20 + $0x120] sm:$0xff] }
 0x2d5   : > { %v8135_v10 = vpop.f32.mrf.mxu3 }
 0x2d6   : > { %8615 = vst [vmem:[#allocation67_spill] sm:$0xff] %v8135_v10 }
 0x2d7   : > { %v5049_v27 = vpop.f32.mrf.mxu2  ;;  %v3221_v45 = vpop.f32.mrf.mxu0 }
 0x2d8   : > { %v8137_v26 = vadd.f32 %v5049_v27, %v4069_v53  ;;  %v4070_v39 = vpop.f32.mrf.mxu1  ;;  %v7008_v53 = vld [vmem:[%s7585_s20 + $0x228] sm:$0xff] }
 0x2d9   : > { %v4071_v47 = vadd.f32 %v4070_v39, %v3221_v45 }
 0x2dd   : > { %v8141_v55 = vpop.f32.mrf.mxu3 }
 0x2de   : > { %8616 = vst [vmem:[#allocation68_spill] sm:$0xff] %v8141_v55  ;;  %v7073_v55 = vld [vmem:[%s7585_s20 + $0x328] sm:$0xff] }
 0x2df   : > { %v5051_v14 = vpop.f32.mrf.mxu2  ;;  %v3224_v46 = vpop.f32.mrf.mxu0 }
 0x2e0   : > { %v8145_v13 = vadd.f32 %v5051_v14, %v4071_v47  ;;  %v4073_v10 = vpop.f32.mrf.mxu1 }
 0x2e1   : > { %v4074_v27 = vadd.f32 %v4073_v10, %v3224_v46 }
 0x2e2   : > { %8617 = vst [vmem:[#allocation69_spill] sm:$0xff] %v8145_v13  ;;  %6097 = vmatmul.msk.bf16.gmra.mxu0 %vm2875_vm2, %v7007_v32  ;;  %6891 = vmatmul.msk.bf16.gmra.mxu3 %vm2875_vm2, %v7088_v57  ;;  %v7089_v13 = vld [vmem:[%s7585_s20 + $0x3a8] sm:$0xff] }
 0x2e3   : > { %6421 = vmatmul.msk.bf16.gmra.mxu1 %vm2875_vm2, %v6942_v38 }
 0x2e4   : > { %6875 = vmatmul.msk.bf16.gmra.mxu2 %vm2875_vm2, %v7072_v34  ;;  %v6943_v34 = vld [vmem:[%s7585_s20 + $0x128] sm:$0xff] }
 0x2e5   : > { %v8155_v39 = vpop.f32.mrf.mxu3 }
 0x2e6   : > { %8618 = vst [vmem:[#allocation70_spill] sm:$0xff] %v8155_v39 }
 0x2e7   : > { %v5054_v45 = vpop.f32.mrf.mxu2  ;;  %v3226_v14 = vpop.f32.mrf.mxu0 }
 0x2e8   : > { %v8157_v47 = vadd.f32 %v5054_v45, %v4074_v27  ;;  %v4075_v9 = vpop.f32.mrf.mxu1  ;;  %v7009_v27 = vld [vmem:[%s7585_s20 + $0x230] sm:$0xff] }
 0x2e9   : > { %v4076_v10 = vadd.f32 %v4075_v9, %v3226_v14 }
 0x2ed   : > { %v8161_v32 = vpop.f32.mrf.mxu3 }
 0x2ee   : > { %8619 = vst [vmem:[#allocation71_spill] sm:$0xff] %v8161_v32  ;;  %v7074_v32 = vld [vmem:[%s7585_s20 + $0x330] sm:$0xff] }
 0x2ef   : > { %v5056_v57 = vpop.f32.mrf.mxu2  ;;  %v3229_v33 = vpop.f32.mrf.mxu0 }
 0x2f0   : > { %v8165_v38 = vadd.f32 %v5056_v57, %v4076_v10  ;;  %v4078_v39 = vpop.f32.mrf.mxu1 }
 0x2f1   : > { %v4079_v45 = vadd.f32 %v4078_v39, %v3229_v33 }
 0x2f2   : > { %8620 = vst [vmem:[#allocation72_spill] sm:$0xff] %v8165_v38  ;;  %6098 = vmatmul.msk.bf16.gmra.mxu0 %vm2875_vm2, %v7008_v53  ;;  %6892 = vmatmul.msk.bf16.gmra.mxu3 %vm2875_vm2, %v7089_v13  ;;  %v7090_v38 = vld [vmem:[%s7585_s20 + $0x3b0] sm:$0xff] }
 0x2f3   : > { %6422 = vmatmul.msk.bf16.gmra.mxu1 %vm2875_vm2, %v6943_v34 }
 0x2f4   : > { %6876 = vmatmul.msk.bf16.gmra.mxu2 %vm2875_vm2, %v7073_v55  ;;  %v6944_v55 = vld [vmem:[%s7585_s20 + $0x130] sm:$0xff] }
 0x2f5   : > { %v8175_v9 = vpop.f32.mrf.mxu3 }
 0x2f6   : > { %8621 = vst [vmem:[#allocation73_spill] sm:$0xff] %v8175_v9 }
 0x2f7   : > { %v5059_v14 = vpop.f32.mrf.mxu2  ;;  %v3231_v57 = vpop.f32.mrf.mxu0 }
 0x2f8   : > { %v8177_v10 = vadd.f32 %v5059_v14, %v4079_v45  ;;  %v4080_v46 = vpop.f32.mrf.mxu1  ;;  %v7010_v45 = vld [vmem:[%s7585_s20 + $0x238] sm:$0xff] }
 0x2f9   : > { %v4081_v39 = vadd.f32 %v4080_v46, %v3231_v57 }
 0x2fd   : > { %v8181_v53 = vpop.f32.mrf.mxu3 }
 0x2fe   : > { %8622 = vst [vmem:[#allocation74_spill] sm:$0xff] %v8181_v53  ;;  %v7075_v53 = vld [vmem:[%s7585_s20 + $0x338] sm:$0xff] }
 0x2ff   : > { %v5061_v13 = vpop.f32.mrf.mxu2  ;;  %v3234_v35 = vpop.f32.mrf.mxu0 }
 0x300   : > { %v8185_v34 = vadd.f32 %v5061_v13, %v4081_v39  ;;  %v4083_v9 = vpop.f32.mrf.mxu1 }
 0x301   : > { %v4084_v14 = vadd.f32 %v4083_v9, %v3234_v35 }
 0x302   : > { %8623 = vst [vmem:[#allocation75_spill] sm:$0xff] %v8185_v34  ;;  %6099 = vmatmul.msk.bf16.gmra.mxu0 %vm2875_vm2, %v7009_v27  ;;  %6893 = vmatmul.msk.bf16.gmra.mxu3 %vm2875_vm2, %v7090_v38  ;;  %v7091_v34 = vld [vmem:[%s7585_s20 + $0x3b8] sm:$0xff] }
 0x303   : > { %6423 = vmatmul.msk.bf16.gmra.mxu1 %vm2875_vm2, %v6944_v55 }
 0x304   : > { %6877 = vmatmul.msk.bf16.gmra.mxu2 %vm2875_vm2, %v7074_v32  ;;  %v6945_v32 = vld [vmem:[%s7585_s20 + $0x138] sm:$0xff] }
 0x305   : > { %v8195_v46 = vpop.f32.mrf.mxu3 }
 0x306   : > { %8624 = vst [vmem:[#allocation76_spill] sm:$0xff] %v8195_v46 }
 0x307   : > { %v5064_v57 = vpop.f32.mrf.mxu2  ;;  %v3236_v13 = vpop.f32.mrf.mxu0 }
 0x308   : > { %v8197_v39 = vadd.f32 %v5064_v57, %v4084_v14  ;;  %v4085_v33 = vpop.f32.mrf.mxu1  ;;  %v7011_v14 = vld [vmem:[%s7585_s20 + $0x240] sm:$0xff] }
 0x309   : > { %v4086_v9 = vadd.f32 %v4085_v33, %v3236_v13 }
 0x30d   : > { %v8201_v27 = vpop.f32.mrf.mxu3 }
 0x30e   : > { %8625 = vst [vmem:[#allocation77_spill] sm:$0xff] %v8201_v27  ;;  %v7076_v27 = vld [vmem:[%s7585_s20 + $0x340] sm:$0xff] }
 0x30f   : > { %v5066_v38 = vpop.f32.mrf.mxu2  ;;  %v3239_v18 = vpop.f32.mrf.mxu0 }
 0x310   : > { %v8205_v55 = vadd.f32 %v5066_v38, %v4086_v9  ;;  %v4088_v46 = vpop.f32.mrf.mxu1 }
 0x311   : > { %v4089_v57 = vadd.f32 %v4088_v46, %v3239_v18 }
 0x312   : > { %8626 = vst [vmem:[#allocation78_spill] sm:$0xff] %v8205_v55  ;;  %6100 = vmatmul.msk.bf16.gmra.mxu0 %vm2875_vm2, %v7010_v45  ;;  %6894 = vmatmul.msk.bf16.gmra.mxu3 %vm2875_vm2, %v7091_v34  ;;  %v7092_v55 = vld [vmem:[%s7585_s20 + $0x3c0] sm:$0xff] }
 0x313   : > { %6424 = vmatmul.msk.bf16.gmra.mxu1 %vm2875_vm2, %v6945_v32 }
 0x314   : > { %6878 = vmatmul.msk.bf16.gmra.mxu2 %vm2875_vm2, %v7075_v53  ;;  %v6946_v53 = vld [vmem:[%s7585_s20 + $0x140] sm:$0xff] }
 0x315   : > { %v8215_v33 = vpop.f32.mrf.mxu3 }
 0x316   : > { %8627 = vst [vmem:[#allocation79_spill] sm:$0xff] %v8215_v33 }
 0x317   : > { %v5069_v13 = vpop.f32.mrf.mxu2  ;;  %v3241_v38 = vpop.f32.mrf.mxu0 }
 0x318   : > { %v8217_v9 = vadd.f32 %v5069_v13, %v4089_v57  ;;  %v4090_v35 = vpop.f32.mrf.mxu1  ;;  %v4174_v13 = vadd.f32 %v7915_v51, %v7659_v54  ;;  %v4176_v54 = vadd.f32 %v7921_v19, %v7663_v60  ;;  %v8630_v19 = vmax.f32 %v7667_v0, %v7925_v50 }
 0x319   : > { %v4091_v46 = vadd.f32 %v4090_v35, %v3241_v38 }
 0x31d   : > { %v8221_v45 = vpop.f32.mrf.mxu3 }
 0x31e   : > { %8628 = vst [vmem:[#allocation80_spill] sm:$0xff] %v8221_v45 }
 0x31f   : > { %v5071_v34 = vpop.f32.mrf.mxu2  ;;  %v3244_v37 = vpop.f32.mrf.mxu0 }
 0x320   : > { %v8225_v32 = vadd.f32 %v5071_v34, %v4091_v46  ;;  %v4093_v33 = vpop.f32.mrf.mxu1 }
 0x321   : > { %v4094_v35 = vadd.f32 %v4093_v33, %v3244_v37  ;;  %v8629_v37 = vmax.f32 %v7661_v56, %v7917_v17  ;;  %v7077_v56 = vld [vmem:[%s7585_s20 + $0x348] sm:$0xff] }
 0x322   : > { %6101 = vmatmul.msk.bf16.gmra.mxu0 %vm2875_vm2, %v7011_v14  ;;  %6895 = vmatmul.msk.bf16.gmra.mxu3 %vm2875_vm2, %v7092_v55 }
 0x323   : > { %6425 = vmatmul.msk.bf16.gmra.mxu1 %vm2875_vm2, %v6946_v53 }
 0x324   : > { %6879 = vmatmul.msk.bf16.gmra.mxu2 %vm2875_vm2, %v7076_v27 }
 0x325   : > { %v5154_v38 = vpop.f32.mrf.mxu3 }
 0x326   : > { %v5330_v34 = vadd.f32 %v5154_v38, %v4174_v13  ;;  %v7093_v13 = vld [vmem:[%s7585_s20 + $0x3c8] sm:$0xff] }
 0x327   : > { %v5074_v46 = vpop.f32.mrf.mxu2  ;;  %v3246_v45 = vpop.f32.mrf.mxu0 }
 0x328   : > { %v5298_v18 = vadd.f32 %v5074_v46, %v4094_v35  ;;  %v4095_v57 = vpop.f32.mrf.mxu1  ;;  %v7012_v35 = vld [vmem:[%s7585_s20 + $0x248] sm:$0xff] }
 0x329   : > { %v4096_v51 = vadd.f32 %v4095_v57, %v3246_v45 }
 0x32a   : > { %v5394_v14 = vmax.f32 %v5298_v18, %v5330_v34  ;;  %v8249_v18 = vld [vmem:[%s8523_s2] ss:$0 sm:$0xff]  ;;  %v6947_v34 = vld [vmem:[%s7585_s20 + $0x148] sm:$0xff] }
 0x32c   : > { %v5426_v27 = vmax.f32 %v8629_v37, %v5394_v14  ;;  %v4179_v37 = vadd.f32 %v7935_v30, %v7675_v6 }
 0x32d   : > { %v5156_v55 = vpop.f32.mrf.mxu3 }
 0x32e   : > { %v5331_v53 = vadd.f32 %v5156_v55, %v4176_v54  ;;  %v5462_v60 = vadd.f32 %v8249_v18, %v5426_v27 }
 0x32f   : > { %v5076_v33 = vpop.f32.mrf.mxu2  ;;  %v3249_v46 = vpop.f32.mrf.mxu0 }
 0x330   : > { %v5299_v38 = vadd.f32 %v5076_v33, %v4096_v51  ;;  %v4098_v17 = vpop.f32.mrf.mxu1  ;;  %v5494_v27 = vmax.f32 %v5462_v60, 0.0  ;;  %v7013_v60 = vld [vmem:[%s7585_s20 + $0x250] sm:$0xff] }
 0x331   : > { %v4099_v57 = vadd.f32 %v4098_v17, %v3249_v46  ;;  %v4181_v46 = vadd.f32 %v7941_v2, %v7679_v12  ;;  %v8632_v12 = vmax.f32 %v7683_v16, %v7945_v23 }
 0x332   : > { %v5395_v14 = vmax.f32 %v5299_v38, %v5331_v53  ;;  %6102 = vmatmul.msk.bf16.gmra.mxu0 %vm2875_vm2, %v7012_v35  ;;  %6896 = vmatmul.msk.bf16.gmra.mxu3 %vm2875_vm2, %v7093_v13  ;;  %v8631_v13 = vmax.f32 %v7677_v8, %v7937_v41 }
 0x333   : > { %6426 = vmatmul.msk.bf16.gmra.mxu1 %vm2875_vm2, %v6947_v34 }
 0x334   : > { %v5427_v45 = vmax.f32 %v8630_v19, %v5395_v14  ;;  %6880 = vmatmul.msk.bf16.gmra.mxu2 %vm2875_vm2, %v7077_v56  ;;  %v7094_v19 = vld [vmem:[%s7585_s20 + $0x3d0] sm:$0xff] }
 0x335   : > { %v5159_v51 = vpop.f32.mrf.mxu3 }
 0x336   : > { %v5463_v54 = vadd.f32 %v8249_v18, %v5427_v45  ;;  %v5332_v33 = vadd.f32 %v5159_v51, %v4179_v37  ;;  %v6948_v37 = vld [vmem:[%s7585_s20 + $0x150] sm:$0xff] }
 0x337   : > { %v5079_v55 = vpop.f32.mrf.mxu2  ;;  %v3251_v50 = vpop.f32.mrf.mxu0 }
 0x338   : > { %v5495_v53 = vmax.f32 %v5463_v54, 0.0  ;;  %v5300_v0 = vadd.f32 %v5079_v55, %v4099_v57  ;;  %v4100_v6 = vpop.f32.mrf.mxu1  ;;  %v7078_v54 = vld [vmem:[%s7585_s20 + $0x350] sm:$0xff] }
 0x339   : > { %v4101_v34 = vadd.f32 %v4100_v6, %v3251_v50 }
 0x33a   : > { %v7104_v30 = vpack.c.bf16 %v5495_v53, %v5494_v27  ;;  %v5396_v35 = vmax.f32 %v5300_v0, %v5332_v33  ;;  %v4184_v33 = vadd.f32 %v7955_v43, %v7691_v22  ;;  %v8633_v22 = vmax.f32 %v7693_v24, %v7957_v31  ;;  %v8634_v31 = vld [vmem:[#allocation3_spill] sm:$0xff] }
 0x33c   : > { %7105 = vst [vmem:[%s8267_s24] sm:$0xff] %v7104_v30   ;;  %v5428_v38 = vmax.f32 %v8631_v13, %v5396_v35 }
 0x33d   : > { %v5161_v56 = vpop.f32.mrf.mxu3 }
 0x33e   : > { %v5333_v14 = vadd.f32 %v5161_v56, %v4181_v46  ;;  %v5464_v8 = vadd.f32 %v8249_v18, %v5428_v38  ;;  %v4186_v46 = vadd.f32 %v7961_v49, %v7695_v28  ;;  %v8635_v28 = vld [vmem:[#allocation42_spill] sm:$0xff] }
 0x33f   : > { %v5081_v17 = vpop.f32.mrf.mxu2  ;;  %v3254_v57 = vpop.f32.mrf.mxu0  ;;  %v8636_v49 = vmax.f32 %v8634_v31, %v8635_v28  ;;  %v8643_v28 = vld [vmem:[#allocation45_spill] sm:$0xff] }
 0x340   : > { %v5301_v45 = vadd.f32 %v5081_v17, %v4101_v34  ;;  %v4103_v51 = vpop.f32.mrf.mxu1  ;;  %v5496_v6 = vmax.f32 %v5464_v8, 0.0 }
 0x341   : > { %v4104_v2 = vadd.f32 %v4103_v51, %v3254_v57 }
 0x342   : > { %v5397_v55 = vmax.f32 %v5301_v45, %v5333_v14  ;;  %6103 = vmatmul.msk.bf16.gmra.mxu0 %vm2875_vm2, %v7013_v60  ;;  %6897 = vmatmul.msk.bf16.gmra.mxu3 %vm2875_vm2, %v7094_v19  ;;  %v7014_v60 = vld [vmem:[%s7585_s20 + $0x258] sm:$0xff] }
 0x343   : > { %6427 = vmatmul.msk.bf16.gmra.mxu1 %vm2875_vm2, %v6948_v37  ;;  %v7095_v19 = vld [vmem:[%s7585_s20 + $0x3d8] sm:$0xff] }
 0x344   : > { %v5429_v41 = vmax.f32 %v8632_v12, %v5397_v55  ;;  %6881 = vmatmul.msk.bf16.gmra.mxu2 %vm2875_vm2, %v7078_v54  ;;  %v6949_v37 = vld [vmem:[%s7585_s20 + $0x158] sm:$0xff] }
 0x345   : > { %v5164_v53 = vpop.f32.mrf.mxu3  ;;  %v7079_v54 = vld [vmem:[%s7585_s20 + $0x358] sm:$0xff] }
 0x346   : > { %v5465_v27 = vadd.f32 %v8249_v18, %v5429_v41  ;;  %v5334_v50 = vadd.f32 %v5164_v53, %v4184_v33  ;;  %v8637_v41 = vld [vmem:[#allocation4_spill] sm:$0xff] }
 0x347   : > { %v5084_v0 = vpop.f32.mrf.mxu2  ;;  %v3256_v23 = vpop.f32.mrf.mxu0 }
 0x348   : > { %v5497_v30 = vmax.f32 %v5465_v27, 0.0  ;;  %v5302_v16 = vadd.f32 %v5084_v0, %v4104_v2  ;;  %v4105_v35 = vpop.f32.mrf.mxu1  ;;  %v8638_v2 = vld [vmem:[#allocation43_spill] sm:$0xff] }
 0x349   : > { %v4106_v34 = vadd.f32 %v4105_v35, %v3256_v23  ;;  %v4189_v33 = vadd.f32 %v8638_v2, %v8637_v41  ;;  %v8645_v41 = vld [vmem:[#allocation7_spill] sm:$0xff]  ;;  %v8646_v2 = vld [vmem:[#allocation46_spill] sm:$0xff] }
 0x34a   : > { %v7109_v13 = vpack.c.bf16 %v5497_v30, %v5496_v6  ;;  %v5398_v38 = vmax.f32 %v5302_v16, %v5334_v50 }
 0x34c   : > { %7181 = vst [vmem:[%s8267_s24 + $0x8] sm:$0xff] %v7109_v13   ;;  %v5430_v43 = vmax.f32 %v8633_v22, %v5398_v38  ;;  %v8639_v22 = vmax.f32 %v7709_v40, %v7977_v42  ;;  %v8642_v42 = vld [vmem:[#allocation6_spill] sm:$0xff] }
 0x34d   : > { %v5166_v56 = vpop.f32.mrf.mxu3 }
 0x34e   : > { %v5335_v14 = vadd.f32 %v5166_v56, %v4186_v46  ;;  %v5466_v24 = vadd.f32 %v8249_v18, %v5430_v43  ;;  %v8640_v46 = vld [vmem:[#allocation5_spill] sm:$0xff] }
 0x34f   : > { %v5086_v17 = vpop.f32.mrf.mxu2  ;;  %v3259_v57 = vpop.f32.mrf.mxu0 }
 0x350   : > { %v5303_v45 = vadd.f32 %v5086_v17, %v4106_v34  ;;  %v4108_v51 = vpop.f32.mrf.mxu1  ;;  %v5498_v6 = vmax.f32 %v5466_v24, 0.0  ;;  %v8641_v34 = vld [vmem:[#allocation44_spill] sm:$0xff] }
 0x351   : > { %v4109_v12 = vadd.f32 %v4108_v51, %v3259_v57  ;;  %v4191_v56 = vadd.f32 %v8641_v34, %v8640_v46  ;;  %v7096_v57 = vld [vmem:[%s7585_s20 + $0x3e0] sm:$0xff]  ;;  %v8648_v46 = vld [vmem:[#allocation8_spill] sm:$0xff] }
 0x352   : > { %v5399_v55 = vmax.f32 %v5303_v45, %v5335_v14  ;;  %6104 = vmatmul.msk.bf16.gmra.mxu0 %vm2875_vm2, %v7014_v60  ;;  %6898 = vmatmul.msk.bf16.gmra.mxu3 %vm2875_vm2, %v7095_v19  ;;  %v7015_v45 = vld [vmem:[%s7585_s20 + $0x260] sm:$0xff] }
 0x353   : > { %6428 = vmatmul.msk.bf16.gmra.mxu1 %vm2875_vm2, %v6949_v37  ;;  %v6950_v51 = vld [vmem:[%s7585_s20 + $0x160] sm:$0xff] }
 0x354   : > { %v5431_v8 = vmax.f32 %v8636_v49, %v5399_v55  ;;  %6882 = vmatmul.msk.bf16.gmra.mxu2 %vm2875_vm2, %v7079_v54  ;;  %v7080_v55 = vld [vmem:[%s7585_s20 + $0x360] sm:$0xff]  ;;  %v8644_v49 = vmax.f32 %v8642_v42, %v8643_v28 }
 0x355   : > { %v5169_v53 = vpop.f32.mrf.mxu3  ;;  %v8649_v34 = vld [vmem:[#allocation47_spill] sm:$0xff] }
 0x356   : > { %v5467_v27 = vadd.f32 %v8249_v18, %v5431_v8  ;;  %v5336_v50 = vadd.f32 %v5169_v53, %v4189_v33  ;;  %v4194_v33 = vadd.f32 %v8646_v2, %v8645_v41 }
 0x357   : > { %v5089_v0 = vpop.f32.mrf.mxu2  ;;  %v3261_v23 = vpop.f32.mrf.mxu0 }
 0x358   : > { %v5499_v30 = vmax.f32 %v5467_v27, 0.0  ;;  %v5304_v16 = vadd.f32 %v5089_v0, %v4109_v12  ;;  %v4110_v35 = vpop.f32.mrf.mxu1 }
 0x359   : > { %v4111_v17 = vadd.f32 %v4110_v35, %v3261_v23 }
 0x35a   : > { %v7114_v13 = vpack.c.bf16 %v5499_v30, %v5498_v6  ;;  %v5400_v38 = vmax.f32 %v5304_v16, %v5336_v50 }
 0x35c   : > { %7182 = vst [vmem:[%s8267_s24 + $0x10] sm:$0xff] %v7114_v13   ;;  %v5432_v43 = vmax.f32 %v8639_v22, %v5400_v38  ;;  %v8647_v22 = vmax.f32 %v7725_v58, %v7997_v63  ;;  %v8650_v63 = vld [vmem:[#allocation9_spill] sm:$0xff] }
 0x35d   : > { %v5171_v14 = vpop.f32.mrf.mxu3 }
 0x35e   : > { %v5337_v19 = vadd.f32 %v5171_v14, %v4191_v56  ;;  %v5468_v40 = vadd.f32 %v8249_v18, %v5432_v43  ;;  %v4196_v56 = vadd.f32 %v8649_v34, %v8648_v46 }
 0x35f   : > { %v5091_v60 = vpop.f32.mrf.mxu2  ;;  %v3264_v54 = vpop.f32.mrf.mxu0 }
 0x360   : > { %v5305_v37 = vadd.f32 %v5091_v60, %v4111_v17  ;;  %v4113_v24 = vpop.f32.mrf.mxu1  ;;  %v5500_v6 = vmax.f32 %v5468_v40, 0.0  ;;  %v8651_v40 = vld [vmem:[#allocation48_spill] sm:$0xff] }
 0x361   : > { %v4114_v12 = vadd.f32 %v4113_v24, %v3264_v54  ;;  %v8652_v42 = vmax.f32 %v8650_v63, %v8651_v40  ;;  %v8661_v40 = vld [vmem:[#allocation13_spill] sm:$0xff] }
 0x362   : > { %v5401_v31 = vmax.f32 %v5305_v37, %v5337_v19  ;;  %6105 = vmatmul.msk.bf16.gmra.mxu0 %vm2875_vm2, %v7015_v45  ;;  %6899 = vmatmul.msk.bf16.gmra.mxu3 %vm2875_vm2, %v7096_v57  ;;  %v7016_v45 = vld [vmem:[%s7585_s20 + $0x268] sm:$0xff] }
 0x363   : > { %6429 = vmatmul.msk.bf16.gmra.mxu1 %vm2875_vm2, %v6950_v51  ;;  %v7097_v57 = vld [vmem:[%s7585_s20 + $0x3e8] sm:$0xff] }
 0x364   : > { %v5433_v8 = vmax.f32 %v8644_v49, %v5401_v31  ;;  %6883 = vmatmul.msk.bf16.gmra.mxu2 %vm2875_vm2, %v7080_v55  ;;  %v6951_v51 = vld [vmem:[%s7585_s20 + $0x168] sm:$0xff] }
 0x365   : > { %v5174_v53 = vpop.f32.mrf.mxu3  ;;  %v7081_v55 = vld [vmem:[%s7585_s20 + $0x368] sm:$0xff] }
 0x366   : > { %v5469_v27 = vadd.f32 %v8249_v18, %v5433_v8  ;;  %v5338_v50 = vadd.f32 %v5174_v53, %v4194_v33  ;;  %v8653_v8 = vld [vmem:[#allocation10_spill] sm:$0xff] }
 0x367   : > { %v5094_v0 = vpop.f32.mrf.mxu2  ;;  %v3266_v23 = vpop.f32.mrf.mxu0 }
 0x368   : > { %v5501_v30 = vmax.f32 %v5469_v27, 0.0  ;;  %v5306_v16 = vadd.f32 %v5094_v0, %v4114_v12  ;;  %v4115_v35 = vpop.f32.mrf.mxu1  ;;  %v8654_v12 = vld [vmem:[#allocation49_spill] sm:$0xff] }
 0x369   : > { %v4116_v17 = vadd.f32 %v4115_v35, %v3266_v23  ;;  %v4199_v41 = vadd.f32 %v8654_v12, %v8653_v8 }
 0x36a   : > { %v7119_v13 = vpack.c.bf16 %v5501_v30, %v5500_v6  ;;  %v5402_v38 = vmax.f32 %v5306_v16, %v5338_v50 }
 0x36c   : > { %7183 = vst [vmem:[%s8267_s24 + $0x18] sm:$0xff] %v7119_v13   ;;  %v5434_v43 = vmax.f32 %v8647_v22, %v5402_v38  ;;  %v8655_v13 = vmax.f32 %v7741_v15, %v8017_v3  ;;  %v8656_v22 = vld [vmem:[#allocation11_spill] sm:$0xff]  ;;  %v8658_v3 = vld [vmem:[#allocation12_spill] sm:$0xff] }
 0x36d   : > { %v5176_v14 = vpop.f32.mrf.mxu3 }
 0x36e   : > { %v5339_v19 = vadd.f32 %v5176_v14, %v4196_v56  ;;  %v5470_v58 = vadd.f32 %v8249_v18, %v5434_v43  ;;  %v8657_v43 = vld [vmem:[#allocation50_spill] sm:$0xff] }
 0x36f   : > { %v5096_v60 = vpop.f32.mrf.mxu2  ;;  %v3269_v54 = vpop.f32.mrf.mxu0  ;;  %v4201_v46 = vadd.f32 %v8657_v43, %v8656_v22 }
 0x370   : > { %v5307_v37 = vadd.f32 %v5096_v60, %v4116_v17  ;;  %v4118_v24 = vpop.f32.mrf.mxu1  ;;  %v5502_v0 = vmax.f32 %v5470_v58, 0.0  ;;  %v7017_v60 = vld [vmem:[%s7585_s20 + $0x270] sm:$0xff] }
 0x371   : > { %v4119_v49 = vadd.f32 %v4118_v24, %v3269_v54  ;;  %v7082_v54 = vld [vmem:[%s7585_s20 + $0x370] sm:$0xff]  ;;  %v8659_v24 = vld [vmem:[#allocation51_spill] sm:$0xff] }
 0x372   : > { %v5403_v31 = vmax.f32 %v5307_v37, %v5339_v19  ;;  %6106 = vmatmul.msk.bf16.gmra.mxu0 %vm2875_vm2, %v7016_v45  ;;  %6900 = vmatmul.msk.bf16.gmra.mxu3 %vm2875_vm2, %v7097_v57  ;;  %v7098_v19 = vld [vmem:[%s7585_s20 + $0x3f0] sm:$0xff] }
 0x373   : > { %6430 = vmatmul.msk.bf16.gmra.mxu1 %vm2875_vm2, %v6951_v51  ;;  %v6952_v37 = vld [vmem:[%s7585_s20 + $0x170] sm:$0xff] }
 0x374   : > { %v5435_v28 = vmax.f32 %v8652_v42, %v5403_v31  ;;  %6884 = vmatmul.msk.bf16.gmra.mxu2 %vm2875_vm2, %v7081_v55  ;;  %v8660_v31 = vmax.f32 %v8658_v3, %v8659_v24  ;;  %v8662_v42 = vld [vmem:[#allocation52_spill] sm:$0xff]  ;;  %v8670_v3 = vld [vmem:[#allocation55_spill] sm:$0xff] }
 0x375   : > { %v5179_v33 = vpop.f32.mrf.mxu3 }
 0x376   : > { %v5471_v2 = vadd.f32 %v8249_v18, %v5435_v28  ;;  %v5340_v53 = vadd.f32 %v5179_v33, %v4199_v41  ;;  %v4204_v28 = vadd.f32 %v8662_v42, %v8661_v40 }
 0x377   : > { %v5099_v27 = vpop.f32.mrf.mxu2  ;;  %v3271_v30 = vpop.f32.mrf.mxu0 }
 0x378   : > { %v5503_v50 = vmax.f32 %v5471_v2, 0.0  ;;  %v5308_v6 = vadd.f32 %v5099_v27, %v4119_v49  ;;  %v4120_v16 = vpop.f32.mrf.mxu1 }
 0x379   : > { %v4121_v34 = vadd.f32 %v4120_v16, %v3271_v30  ;;  %v8663_v30 = vmax.f32 %v7757_v36, %v8037_v20  ;;  %v8666_v20 = vld [vmem:[#allocation15_spill] sm:$0xff] }
 0x37a   : > { %v7124_v23 = vpack.c.bf16 %v5503_v50, %v5502_v0  ;;  %v5404_v35 = vmax.f32 %v5308_v6, %v5340_v53 }
 0x37c   : > { %7184 = vst [vmem:[%s8267_s24 + $0x20] sm:$0xff] %v7124_v23   ;;  %v5436_v38 = vmax.f32 %v8655_v13, %v5404_v35  ;;  %v8664_v23 = vld [vmem:[#allocation14_spill] sm:$0xff]  ;;  %v8665_v35 = vld [vmem:[#allocation53_spill] sm:$0xff] }
 0x37d   : > { %v5181_v56 = vpop.f32.mrf.mxu3  ;;  %v4206_v13 = vadd.f32 %v8665_v35, %v8664_v23 }
 0x37e   : > { %v5341_v14 = vadd.f32 %v5181_v56, %v4201_v46  ;;  %v5472_v15 = vadd.f32 %v8249_v18, %v5436_v38  ;;  %v7099_v56 = vld [vmem:[%s7585_s20 + $0x3f8] sm:$0xff] }
 0x37f   : > { %v5101_v17 = vpop.f32.mrf.mxu2  ;;  %v3274_v57 = vpop.f32.mrf.mxu0 }
 0x380   : > { %v5309_v45 = vadd.f32 %v5101_v17, %v4121_v34  ;;  %v4123_v51 = vpop.f32.mrf.mxu1  ;;  %v5504_v2 = vmax.f32 %v5472_v15, 0.0  ;;  %v7018_v34 = vld [vmem:[%s7585_s20 + $0x278] sm:$0xff]  ;;  %v8669_v15 = vld [vmem:[#allocation16_spill] sm:$0xff] }
 0x381   : > { %v4124_v63 = vadd.f32 %v4123_v51, %v3274_v57  ;;  %v4209_v24 = vadd.f32 %v8670_v3, %v8669_v15 }
 0x382   : > { %v5405_v55 = vmax.f32 %v5309_v45, %v5341_v14  ;;  %6107 = vmatmul.msk.bf16.gmra.mxu0 %vm2875_vm2, %v7017_v60  ;;  %6901 = vmatmul.msk.bf16.gmra.mxu3 %vm2875_vm2, %v7098_v19  ;;  %v6953_v60 = vld [vmem:[%s7585_s20 + $0x178] sm:$0xff] }
 0x383   : > { %6431 = vmatmul.msk.bf16.gmra.mxu1 %vm2875_vm2, %v6952_v37  ;;  %v7083_v19 = vld [vmem:[%s7585_s20 + $0x378] sm:$0xff] }
 0x384   : > { %v5437_v58 = vmax.f32 %v8660_v31, %v5405_v55  ;;  %6885 = vmatmul.msk.bf16.gmra.mxu2 %vm2875_vm2, %v7082_v54  ;;  %v8667_v37 = vld [vmem:[#allocation54_spill] sm:$0xff] }
 0x385   : > { %v5184_v8 = vpop.f32.mrf.mxu3  ;;  %v8668_v54 = vmax.f32 %v8666_v20, %v8667_v37 }
 0x386   : > { %v5473_v49 = vadd.f32 %v8249_v18, %v5437_v58  ;;  %v5342_v41 = vadd.f32 %v5184_v8, %v4204_v28 }
 0x387   : > { %v5104_v12 = vpop.f32.mrf.mxu2  ;;  %v3276_v53 = vpop.f32.mrf.mxu0 }
 0x388   : > { %v5505_v33 = vmax.f32 %v5473_v49, 0.0  ;;  %v5310_v27 = vadd.f32 %v5104_v12, %v4124_v63  ;;  %v4125_v0 = vpop.f32.mrf.mxu1 }
 0x389   : > { %v4126_v38 = vadd.f32 %v4125_v0, %v3276_v53  ;;  %v8672_v53 = vld [vmem:[#allocation17_spill] sm:$0xff]  ;;  %v8673_v0 = vld [vmem:[#allocation56_spill] sm:$0xff] }
 0x38a   : > { %v7129_v50 = vpack.c.bf16 %v5505_v33, %v5504_v2  ;;  %v5406_v6 = vmax.f32 %v5310_v27, %v5342_v41  ;;  %v8671_v33 = vmax.f32 %v7773_v61, %v8057_v44  ;;  %v8677_v44 = vld [vmem:[#allocation19_spill] sm:$0xff] }
 0x38c   : > { %7185 = vst [vmem:[%s8267_s24 + $0x28] sm:$0xff] %v7129_v50   ;;  %v5438_v16 = vmax.f32 %v8663_v30, %v5406_v6  ;;  %v4211_v50 = vadd.f32 %v8673_v0, %v8672_v53  ;;  %v8682_v53 = vld [vmem:[#allocation21_spill] sm:$0xff]  ;;  %v8683_v0 = vld [vmem:[#allocation60_spill] sm:$0xff] }
 0x38d   : > { %v5186_v22 = vpop.f32.mrf.mxu3 }
 0x38e   : > { %v5343_v46 = vadd.f32 %v5186_v22, %v4206_v13  ;;  %v5474_v36 = vadd.f32 %v8249_v18, %v5438_v16 }
 0x38f   : > { %v5106_v43 = vpop.f32.mrf.mxu2  ;;  %v3279_v14 = vpop.f32.mrf.mxu0 }
 0x390   : > { %v5311_v17 = vadd.f32 %v5106_v43, %v4126_v38  ;;  %v4128_v45 = vpop.f32.mrf.mxu1  ;;  %v5506_v42 = vmax.f32 %v5474_v36, 0.0 }
 0x391   : > { %v4129_v55 = vadd.f32 %v4128_v45, %v3279_v14  ;;  %v8678_v14 = vld [vmem:[#allocation58_spill] sm:$0xff] }
 0x392   : > { %v5407_v57 = vmax.f32 %v5311_v17, %v5343_v46  ;;  %6108 = vmatmul.msk.bf16.gmra.mxu0 %vm2875_vm2, %v7018_v34  ;;  %6902 = vmatmul.msk.bf16.gmra.mxu3 %vm2875_vm2, %v7099_v56  ;;  %v8674_v46 = vld [vmem:[#allocation18_spill] sm:$0xff]  ;;  %v8675_v34 = vld [vmem:[#allocation57_spill] sm:$0xff] }
 0x393   : > { %6432 = vmatmul.msk.bf16.gmra.mxu1 %vm2875_vm2, %v6953_v60  ;;  %v8676_v56 = vmax.f32 %v8674_v46, %v8675_v34  ;;  %v4214_v60 = vadd.f32 %v8678_v14, %v8677_v44  ;;  %v8687_v44 = vmax.f32 %v7805_v52, %v8097_v48  ;;  %v8693_v48 = vld [vmem:[#allocation25_spill] sm:$0xff] }
 0x394   : > { %v5439_v51 = vmax.f32 %v8668_v54, %v5407_v57  ;;  %6886 = vmatmul.msk.bf16.gmra.mxu2 %vm2875_vm2, %v7083_v19 }
 0x395   : > { %v5189_v58 = vpop.f32.mrf.mxu3 }
 0x396   : > { %v5475_v31 = vadd.f32 %v8249_v18, %v5439_v51  ;;  %v5344_v40 = vadd.f32 %v5189_v58, %v4209_v24  ;;  %v8679_v24 = vmax.f32 %v7789_v25, %v8077_v21  ;;  %v8680_v58 = vld [vmem:[#allocation20_spill] sm:$0xff]  ;;  %v8685_v21 = vld [vmem:[#allocation22_spill] sm:$0xff] }
 0x397   : > { %v5109_v63 = vpop.f32.mrf.mxu2  ;;  %v3281_v8 = vpop.f32.mrf.mxu0 }
 0x398   : > { %v5507_v28 = vmax.f32 %v5475_v31, 0.0  ;;  %v5312_v49 = vadd.f32 %v5109_v63, %v4129_v55  ;;  %v4130_v12 = vpop.f32.mrf.mxu1  ;;  %v8681_v63 = vld [vmem:[#allocation59_spill] sm:$0xff] }
 0x399   : > { %v4131_v6 = vadd.f32 %v4130_v12, %v3281_v8 }
 0x39a   : > { %v7134_v41 = vpack.c.bf16 %v5507_v28, %v5506_v42  ;;  %v5408_v2 = vmax.f32 %v5312_v49, %v5344_v40  ;;  %v4216_v40 = vadd.f32 %v8681_v63, %v8680_v58 }
 0x39c   : > { %7186 = vst [vmem:[%s8267_s24 + $0x30] sm:$0xff] %v7134_v41   ;;  %v5440_v27 = vmax.f32 %v8671_v33, %v5408_v2 }
 0x39d   : > { %v5191_v30 = vpop.f32.mrf.mxu3 }
 0x39e   : > { %v5345_v23 = vadd.f32 %v5191_v30, %v4211_v50  ;;  %v5476_v43 = vadd.f32 %v8249_v18, %v5440_v27  ;;  %v8684_v50 = vmax.f32 %v8682_v53, %v8683_v0  ;;  %v8686_v30 = vld [vmem:[#allocation61_spill] sm:$0xff] }
 0x39f   : > { %v5111_v16 = vpop.f32.mrf.mxu2  ;;  %v3284_v13 = vpop.f32.mrf.mxu0 }
 0x3a0   : > { %v5313_v35 = vadd.f32 %v5111_v16, %v4131_v6  ;;  %v4133_v38 = vpop.f32.mrf.mxu1  ;;  %v5508_v20 = vmax.f32 %v5476_v43, 0.0  ;;  %v4219_v16 = vadd.f32 %v8686_v30, %v8685_v21  ;;  %v8696_v21 = vld [vmem:[#allocation26_spill] sm:$0xff]  ;;  %v8697_v30 = vld [vmem:[#allocation65_spill] sm:$0xff] }
 0x3a1   : > { %v4134_v61 = vadd.f32 %v4133_v38, %v3284_v13 }
 0x3a2   : > { %v5409_v22 = vmax.f32 %v5313_v35, %v5345_v23 }
 0x3a4   : > { %v5441_v17 = vmax.f32 %v8676_v56, %v5409_v22 }
 0x3a5   : > { %v5194_v45 = vpop.f32.mrf.mxu3 }
 0x3a6   : > { %v5477_v19 = vadd.f32 %v8249_v18, %v5441_v17  ;;  %v5346_v36 = vadd.f32 %v5194_v45, %v4214_v60  ;;  %v8688_v60 = vld [vmem:[#allocation23_spill] sm:$0xff] }
 0x3a7   : > { %v5114_v57 = vpop.f32.mrf.mxu2  ;;  %v3286_v51 = vpop.f32.mrf.mxu0 }
 0x3a8   : > { %v5509_v37 = vmax.f32 %v5477_v19, 0.0  ;;  %v5314_v54 = vadd.f32 %v5114_v57, %v4134_v61  ;;  %v4135_v55 = vpop.f32.mrf.mxu1  ;;  %v8689_v19 = vld [vmem:[#allocation62_spill] sm:$0xff] }
 0x3a9   : > { %v4136_v42 = vadd.f32 %v4135_v55, %v3286_v51  ;;  %v4221_v45 = vadd.f32 %v8689_v19, %v8688_v60  ;;  %v8702_v60 = vld [vmem:[#allocation67_spill] sm:$0xff] }
 0x3aa   : > { %v7139_v15 = vpack.c.bf16 %v5509_v37, %v5508_v20  ;;  %v5410_v3 = vmax.f32 %v5314_v54, %v5346_v36 }
 0x3ac   : > { %7187 = vst [vmem:[%s8267_s24 + $0x38] sm:$0xff] %v7139_v15   ;;  %v5442_v31 = vmax.f32 %v8679_v24, %v5410_v3  ;;  %v8690_v24 = vld [vmem:[#allocation24_spill] sm:$0xff] }
 0x3ad   : > { %v5196_v28 = vpop.f32.mrf.mxu3 }
 0x3ae   : > { %v5347_v8 = vadd.f32 %v5196_v28, %v4216_v40  ;;  %v5478_v27 = vadd.f32 %v8249_v18, %v5442_v31  ;;  %v8691_v31 = vld [vmem:[#allocation63_spill] sm:$0xff]  ;;  %v8694_v40 = vld [vmem:[#allocation64_spill] sm:$0xff] }
 0x3af   : > { %v5116_v49 = vpop.f32.mrf.mxu2  ;;  %v3289_v41 = vpop.f32.mrf.mxu0  ;;  %v8692_v58 = vmax.f32 %v8690_v24, %v8691_v31  ;;  %v8703_v31 = vmax.f32 %v7837_v7, %v8137_v26  ;;  %v8709_v26 = vld [vmem:[#allocation31_spill] sm:$0xff] }
 0x3b0   : > { %v5315_v12 = vadd.f32 %v5116_v49, %v4136_v42  ;;  %v4138_v2 = vpop.f32.mrf.mxu1  ;;  %v5510_v22 = vmax.f32 %v5478_v27, 0.0  ;;  %v4224_v42 = vadd.f32 %v8694_v40, %v8693_v48 }
 0x3b1   : > { %v4139_v25 = vadd.f32 %v4138_v2, %v3289_v41 }
 0x3b2   : > { %v5411_v33 = vmax.f32 %v5315_v12, %v5347_v8 }
 0x3b4   : > { %v5443_v6 = vmax.f32 %v8684_v50, %v5411_v33 }
 0x3b5   : > { %v5199_v35 = vpop.f32.mrf.mxu3 }
 0x3b6   : > { %v5479_v23 = vadd.f32 %v8249_v18, %v5443_v6  ;;  %v5348_v38 = vadd.f32 %v5199_v35, %v4219_v16  ;;  %v8695_v6 = vmax.f32 %v7821_v29, %v8117_v4  ;;  %v4226_v16 = vadd.f32 %v8697_v30, %v8696_v21  ;;  %v8701_v4 = vld [vmem:[#allocation28_spill] sm:$0xff] }
 0x3b7   : > { %v5119_v13 = vpop.f32.mrf.mxu2  ;;  %v3291_v34 = vpop.f32.mrf.mxu0  ;;  %v4229_v19 = vadd.f32 %v8702_v60, %v8701_v4 }
 0x3b8   : > { %v5511_v43 = vmax.f32 %v5479_v23, 0.0  ;;  %v5316_v46 = vadd.f32 %v5119_v13, %v4139_v25  ;;  %v4140_v56 = vpop.f32.mrf.mxu1 }
 0x3b9   : > { %v4141_v57 = vadd.f32 %v4140_v56, %v3291_v34 }
 0x3ba   : > { %v7144_v17 = vpack.c.bf16 %v5511_v43, %v5510_v22  ;;  %v5412_v61 = vmax.f32 %v5316_v46, %v5348_v38 }
 0x3bc   : > { %7188 = vst [vmem:[%s8267_s24 + $0x40] sm:$0xff] %v7144_v17   ;;  %v5444_v14 = vmax.f32 %v8687_v44, %v5412_v61  ;;  %v8698_v17 = vld [vmem:[#allocation27_spill] sm:$0xff]  ;;  %v8699_v61 = vld [vmem:[#allocation66_spill] sm:$0xff] }
 0x3bd   : > { %v5201_v36 = vpop.f32.mrf.mxu3  ;;  %v8700_v44 = vmax.f32 %v8698_v17, %v8699_v61  ;;  %v8712_v61 = vld [vmem:[#allocation32_spill] sm:$0xff] }
 0x3be   : > { %v5349_v37 = vadd.f32 %v5201_v36, %v4221_v45  ;;  %v5480_v3 = vadd.f32 %v8249_v18, %v5444_v14 }
 0x3bf   : > { %v5121_v20 = vpop.f32.mrf.mxu2  ;;  %v3294_v51 = vpop.f32.mrf.mxu0 }
 0x3c0   : > { %v5317_v54 = vadd.f32 %v5121_v20, %v4141_v57  ;;  %v4143_v55 = vpop.f32.mrf.mxu1  ;;  %v5512_v41 = vmax.f32 %v5480_v3, 0.0 }
 0x3c1   : > { %v4144_v52 = vadd.f32 %v4143_v55, %v3294_v51 }
 0x3c2   : > { %v5413_v15 = vmax.f32 %v5317_v54, %v5349_v37 }
 0x3c4   : > { %v5445_v63 = vmax.f32 %v8692_v58, %v5413_v15 }
 0x3c5   : > { %v5204_v49 = vpop.f32.mrf.mxu3 }
 0x3c6   : > { %v5481_v28 = vadd.f32 %v8249_v18, %v5445_v63  ;;  %v5350_v12 = vadd.f32 %v5204_v49, %v4224_v42  ;;  %v8704_v63 = vld [vmem:[#allocation29_spill] sm:$0xff] }
 0x3c7   : > { %v5124_v8 = vpop.f32.mrf.mxu2  ;;  %v3296_v27 = vpop.f32.mrf.mxu0 }
 0x3c8   : > { %v5513_v2 = vmax.f32 %v5481_v28, 0.0  ;;  %v5318_v33 = vadd.f32 %v5124_v8, %v4144_v52  ;;  %v4145_v53 = vpop.f32.mrf.mxu1  ;;  %v8705_v52 = vld [vmem:[#allocation68_spill] sm:$0xff] }
 0x3c9   : > { %v4146_v23 = vadd.f32 %v4145_v53, %v3296_v27  ;;  %v4231_v48 = vadd.f32 %v8705_v52, %v8704_v63  ;;  %v8706_v27 = vld [vmem:[#allocation30_spill] sm:$0xff]  ;;  %v8707_v53 = vld [vmem:[#allocation69_spill] sm:$0xff] }
 0x3ca   : > { %v7149_v0 = vpack.c.bf16 %v5513_v2, %v5512_v41  ;;  %v5414_v50 = vmax.f32 %v5318_v33, %v5350_v12 }
 0x3cc   : > { %7189 = vst [vmem:[%s8267_s24 + $0x48] sm:$0xff] %v7149_v0   ;;  %v5446_v25 = vmax.f32 %v8695_v6, %v5414_v50  ;;  %v8708_v0 = vmax.f32 %v8706_v27, %v8707_v53  ;;  %v8710_v6 = vld [vmem:[#allocation70_spill] sm:$0xff] }
 0x3cd   : > { %v5206_v35 = vpop.f32.mrf.mxu3  ;;  %v8721_v27 = vld [vmem:[#allocation74_spill] sm:$0xff] }
 0x3ce   : > { %v5351_v38 = vadd.f32 %v5206_v35, %v4226_v16  ;;  %v5482_v56 = vadd.f32 %v8249_v18, %v5446_v25  ;;  %v4234_v25 = vadd.f32 %v8710_v6, %v8709_v26 }
 0x3cf   : > { %v5126_v13 = vpop.f32.mrf.mxu2  ;;  %v3299_v43 = vpop.f32.mrf.mxu0 }
 0x3d0   : > { %v5319_v22 = vadd.f32 %v5126_v13, %v4146_v23  ;;  %v4148_v46 = vpop.f32.mrf.mxu1  ;;  %v5514_v37 = vmax.f32 %v5482_v56, 0.0  ;;  %v8711_v56 = vmax.f32 %v7853_v59, %v8157_v47  ;;  %v8717_v47 = vld [vmem:[#allocation34_spill] sm:$0xff] }
 0x3d1   : > { %v4149_v29 = vadd.f32 %v4148_v46, %v3299_v43 }
 0x3d2   : > { %v5415_v34 = vmax.f32 %v5319_v22, %v5351_v38 }
 0x3d4   : > { %v5447_v14 = vmax.f32 %v8700_v44, %v5415_v34  ;;  %v8713_v44 = vld [vmem:[#allocation71_spill] sm:$0xff] }
 0x3d5   : > { %v5209_v57 = vpop.f32.mrf.mxu3 }
 0x3d6   : > { %v5483_v45 = vadd.f32 %v8249_v18, %v5447_v14  ;;  %v5352_v20 = vadd.f32 %v5209_v57, %v4229_v19  ;;  %v4236_v14 = vadd.f32 %v8713_v44, %v8712_v61 }
 0x3d7   : > { %v5129_v36 = vpop.f32.mrf.mxu2  ;;  %v3301_v55 = vpop.f32.mrf.mxu0 }
 0x3d8   : > { %v5515_v54 = vmax.f32 %v5483_v45, 0.0  ;;  %v5320_v51 = vadd.f32 %v5129_v36, %v4149_v29  ;;  %v4150_v15 = vpop.f32.mrf.mxu1 }
 0x3d9   : > { %v4151_v40 = vadd.f32 %v4150_v15, %v3301_v55 }
 0x3da   : > { %v7154_v3 = vpack.c.bf16 %v5515_v54, %v5514_v37  ;;  %v5416_v24 = vmax.f32 %v5320_v51, %v5352_v20  ;;  %v8714_v54 = vld [vmem:[#allocation33_spill] sm:$0xff]  ;;  %v8715_v51 = vld [vmem:[#allocation72_spill] sm:$0xff] }
 0x3db   : > { %v8716_v55 = vmax.f32 %v8714_v54, %v8715_v51 }
 0x3dc   : > { %7190 = vst [vmem:[%s8267_s24 + $0x50] sm:$0xff] %v7154_v3   ;;  %v5448_v58 = vmax.f32 %v8703_v31, %v5416_v24  ;;  %v8718_v3 = vld [vmem:[#allocation73_spill] sm:$0xff] }
 0x3dd   : > { %v5211_v42 = vpop.f32.mrf.mxu3  ;;  %v4239_v24 = vadd.f32 %v8718_v3, %v8717_v47 }
 0x3de   : > { %v5353_v49 = vadd.f32 %v5211_v42, %v4231_v48  ;;  %v5484_v33 = vadd.f32 %v8249_v18, %v5448_v58 }
 0x3df   : > { %v5131_v28 = vpop.f32.mrf.mxu2  ;;  %v3304_v12 = vpop.f32.mrf.mxu0 }
 0x3e0   : > { %v5321_v8 = vadd.f32 %v5131_v28, %v4151_v40  ;;  %v4153_v41 = vpop.f32.mrf.mxu1  ;;  %v5516_v35 = vmax.f32 %v5484_v33, 0.0  ;;  %v8720_v33 = vld [vmem:[#allocation35_spill] sm:$0xff] }
 0x3e1   : > { %v4154_v7 = vadd.f32 %v4153_v41, %v3304_v12  ;;  %v8719_v41 = vmax.f32 %v7869_v62, %v8177_v10  ;;  %v4241_v53 = vadd.f32 %v8721_v27, %v8720_v33  ;;  %v8725_v10 = vld [vmem:[#allocation37_spill] sm:$0xff] }
 0x3e2   : > { %v5417_v2 = vmax.f32 %v5321_v8, %v5353_v49 }
 0x3e4   : > { %v5449_v50 = vmax.f32 %v8708_v0, %v5417_v2 }
 0x3e5   : > { %v5214_v30 = vpop.f32.mrf.mxu3 }
 0x3e6   : > { %v5485_v21 = vadd.f32 %v8249_v18, %v5449_v50  ;;  %v5354_v23 = vadd.f32 %v5214_v30, %v4234_v25 }
 0x3e7   : > { %v5134_v16 = vpop.f32.mrf.mxu2  ;;  %v3306_v22 = vpop.f32.mrf.mxu0 }
 0x3e8   : > { %v5517_v13 = vmax.f32 %v5485_v21, 0.0  ;;  %v5322_v38 = vadd.f32 %v5134_v16, %v4154_v7  ;;  %v4155_v43 = vpop.f32.mrf.mxu1 }
 0x3e9   : > { %v4156_v29 = vadd.f32 %v4155_v43, %v3306_v22  ;;  %v8726_v22 = vld [vmem:[#allocation76_spill] sm:$0xff] }
 0x3ea   : > { %v7159_v46 = vpack.c.bf16 %v5517_v13, %v5516_v35  ;;  %v5418_v34 = vmax.f32 %v5322_v38, %v5354_v23  ;;  %v8722_v23 = vld [vmem:[#allocation36_spill] sm:$0xff]  ;;  %v8723_v35 = vld [vmem:[#allocation75_spill] sm:$0xff]  ;;  %v4244_v43 = vadd.f32 %v8726_v22, %v8725_v10  ;;  %v8738_v10 = vmax.f32 %v7907_v1, %v8225_v32 }
 0x3eb   : > { %v8724_v13 = vmax.f32 %v8722_v23, %v8723_v35 }
 0x3ec   : > { %7191 = vst [vmem:[%s8267_s24 + $0x58] sm:$0xff] %v7159_v46   ;;  %v5450_v17 = vmax.f32 %v8711_v56, %v5418_v34 }
 0x3ed   : > { %v5216_v4 = vpop.f32.mrf.mxu3 }
 0x3ee   : > { %v5355_v19 = vadd.f32 %v5216_v4, %v4236_v14  ;;  %v5486_v37 = vadd.f32 %v8249_v18, %v5450_v17 }
 0x3ef   : > { %v5136_v60 = vpop.f32.mrf.mxu2  ;;  %v3309_v57 = vpop.f32.mrf.mxu0 }
 0x3f0   : > { %v5323_v45 = vadd.f32 %v5136_v60, %v4156_v29  ;;  %v4158_v36 = vpop.f32.mrf.mxu1  ;;  %v5518_v48 = vmax.f32 %v5486_v37, 0.0 }
 0x3f1   : > { %v4159_v59 = vadd.f32 %v4158_v36, %v3309_v57  ;;  %v8728_v36 = vld [vmem:[#allocation38_spill] sm:$0xff] }
 0x3f2   : > { %v5419_v20 = vmax.f32 %v5323_v45, %v5355_v19  ;;  %v8727_v45 = vmax.f32 %v7885_v5, %v8197_v39  ;;  %v8733_v39 = vld [vmem:[#allocation40_spill] sm:$0xff] }
 0x3f4   : > { %v5451_v15 = vmax.f32 %v8716_v55, %v5419_v20  ;;  %v8729_v20 = vld [vmem:[#allocation77_spill] sm:$0xff] }
 0x3f5   : > { %v5219_v58 = vpop.f32.mrf.mxu3  ;;  %v4246_v37 = vadd.f32 %v8729_v20, %v8728_v36 }
 0x3f6   : > { %v5487_v31 = vadd.f32 %v8249_v18, %v5451_v15  ;;  %v5356_v52 = vadd.f32 %v5219_v58, %v4239_v24  ;;  %v8730_v58 = vld [vmem:[#allocation39_spill] sm:$0xff] }
 0x3f7   : > { %v5139_v63 = vpop.f32.mrf.mxu2  ;;  %v3311_v28 = vpop.f32.mrf.mxu0 }
 0x3f8   : > { %v5519_v40 = vmax.f32 %v5487_v31, 0.0  ;;  %v5324_v42 = vadd.f32 %v5139_v63, %v4159_v59  ;;  %v4160_v49 = vpop.f32.mrf.mxu1  ;;  %v8731_v63 = vld [vmem:[#allocation78_spill] sm:$0xff] }
 0x3f9   : > { %v4161_v0 = vadd.f32 %v4160_v49, %v3311_v28 }
 0x3fa   : > { %v7164_v8 = vpack.c.bf16 %v5519_v40, %v5518_v48  ;;  %v5420_v12 = vmax.f32 %v5324_v42, %v5356_v52  ;;  %v8732_v52 = vmax.f32 %v8730_v58, %v8731_v63  ;;  %v8734_v40 = vld [vmem:[#allocation79_spill] sm:$0xff] }
 0x3fb   : > { %v4249_v42 = vadd.f32 %v8734_v40, %v8733_v39 }
 0x3fc   : > { %7192 = vst [vmem:[%s8267_s24 + $0x60] sm:$0xff] %v7164_v8   ;;  %v5452_v2 = vmax.f32 %v8719_v41, %v5420_v12 }
 0x3fd   : > { %v5221_v50 = vpop.f32.mrf.mxu3 }
 0x3fe   : > { %v5357_v26 = vadd.f32 %v5221_v50, %v4241_v53  ;;  %v5488_v16 = vadd.f32 %v8249_v18, %v5452_v2 }
 0x3ff   : > { %v5141_v7 = vpop.f32.mrf.mxu2  ;;  %v3314_v25 = vpop.f32.mrf.mxu0 }
 0x400   : > { %v5325_v6 = vadd.f32 %v5141_v7, %v4161_v0  ;;  %v4163_v21 = vpop.f32.mrf.mxu1  ;;  %v5520_v61 = vmax.f32 %v5488_v16, 0.0  ;;  %v8735_v7 = vmax.f32 %v7901_v11, %v8217_v9 }
 0x401   : > { %v4164_v62 = vadd.f32 %v4163_v21, %v3314_v25  ;;  %v8737_v25 = vld [vmem:[#allocation80_spill] sm:$0xff] }
 0x402   : > { %v5421_v30 = vmax.f32 %v5325_v6, %v5357_v26  ;;  %v8736_v6 = vld [vmem:[#allocation41_spill] sm:$0xff] }
 0x403   : > { %v4251_v21 = vadd.f32 %v8737_v25, %v8736_v6 }
 0x404   : > { %v5453_v38 = vmax.f32 %v8724_v13, %v5421_v30 }
 0x405   : > { %v5224_v34 = vpop.f32.mrf.mxu3 }
 0x406   : > { %v5489_v46 = vadd.f32 %v8249_v18, %v5453_v38  ;;  %v5358_v17 = vadd.f32 %v5224_v34, %v4244_v43 }
 0x407   : > { %v5144_v56 = vpop.f32.mrf.mxu2  ;;  %v3316_v29 = vpop.f32.mrf.mxu0 }
 0x408   : > { %v5521_v44 = vmax.f32 %v5489_v46, 0.0  ;;  %v5326_v14 = vadd.f32 %v5144_v56, %v4164_v62  ;;  %v4165_v4 = vpop.f32.mrf.mxu1 }
 0x409   : > { %v4166_v54 = vadd.f32 %v4165_v4, %v3316_v29 }
 0x40a   : > { %v7169_v60 = vpack.c.bf16 %v5521_v44, %v5520_v61  ;;  %v5422_v19 = vmax.f32 %v5326_v14, %v5358_v17 }
 0x40c   : > { %7193 = vst [vmem:[%s8267_s24 + $0x68] sm:$0xff] %v7169_v60   ;;  %v5454_v57 = vmax.f32 %v8727_v45, %v5422_v19 }
 0x40d   : > { %v5226_v51 = vpop.f32.mrf.mxu3 }
 0x40e   : > { %v5359_v15 = vadd.f32 %v5226_v51, %v4246_v37  ;;  %v5490_v31 = vadd.f32 %v8249_v18, %v5454_v57 }
 0x40f   : > { %v5146_v55 = vpop.f32.mrf.mxu2  ;;  %v3319_v47 = vpop.f32.mrf.mxu0 }
 0x410   : > { %v5327_v59 = vadd.f32 %v5146_v55, %v4166_v54  ;;  %v4168_v3 = vpop.f32.mrf.mxu1  ;;  %v5522_v41 = vmax.f32 %v5490_v31, 0.0 }
 0x411   : > { %v4169_v5 = vadd.f32 %v4168_v3, %v3319_v47 }
 0x412   : > { %v5423_v24 = vmax.f32 %v5327_v59, %v5359_v15 }
 0x414   : > { %v5455_v48 = vmax.f32 %v8732_v52, %v5423_v24 }
 0x415   : > { %v5229_v49 = vpop.f32.mrf.mxu3 }
 0x416   : > { %v5491_v28 = vadd.f32 %v8249_v18, %v5455_v48  ;;  %v5360_v12 = vadd.f32 %v5229_v49, %v4249_v42 }
 0x417   : > { %v5149_v8 = vpop.f32.mrf.mxu2  ;;  %v3321_v0 = vpop.f32.mrf.mxu0 }
 0x418   : > { %v5523_v2 = vmax.f32 %v5491_v28, 0.0  ;;  %v5328_v33 = vadd.f32 %v5149_v8, %v4169_v5  ;;  %v4170_v50 = vpop.f32.mrf.mxu1 }
 0x419   : > { %v4171_v30 = vadd.f32 %v4170_v50, %v3321_v0 }
 0x41a   : > { %v7174_v27 = vpack.c.bf16 %v5523_v2, %v5522_v41  ;;  %v5424_v53 = vmax.f32 %v5328_v33, %v5360_v12 }
 0x41c   : > { %7194 = vst [vmem:[%s8267_s24 + $0x70] sm:$0xff] %v7174_v27   ;;  %v5456_v26 = vmax.f32 %v8735_v7, %v5424_v53 }
 0x41d   : > { %v5231_v16 = vpop.f32.mrf.mxu3 }
 0x41e   : > { %v5361_v35 = vadd.f32 %v5231_v16, %v4251_v21  ;;  %v5492_v62 = vadd.f32 %v8249_v18, %v5456_v26 }
 0x41f   : > { %v5151_v23 = vpop.f32.mrf.mxu2 }
 0x420   : > { %v5329_v13 = vadd.f32 %v5151_v23, %v4171_v30  ;;  %v5524_v46 = vmax.f32 %v5492_v62, 0.0 }
 0x422   : > { %v5425_v38 = vmax.f32 %v5329_v13, %v5361_v35 }
 0x424   : > { %v5457_v22 = vmax.f32 %v8738_v10, %v5425_v38 }
 0x426   : > { %v5493_v43 = vadd.f32 %v8249_v18, %v5457_v22 }
 0x428   : > { %v5525_v11 = vmax.f32 %v5493_v43, 0.0 }
 0x42a   : > { %v7179_v9 = vpack.c.bf16 %v5525_v11, %v5524_v46 }
 0x42c   : > { %7195 = vst [vmem:[%s8267_s24 + $0x78] sm:$0xff] %v7179_v9  }
 0x42d PF: > { %p10_p9 = scmp.ge.s32.totalorder %s7287_s16, 4   ;;  %s8739_s12 = smov %s7243_s13 }
 0x42e   : > { %s8740_s13 = smov %s7296_s19  ;;  %s8741_s14 = smov %s7287_s16 }
 0x42f   :  { %12 = sbr.rel (!%p10_p9) target bundleno = 2 (0x2), region = 127 }

// kernel: cifar10_cnn_forward.6
= control target key start
LH: loop header
LB: loop body
LE: loop exit
PB: predicated region body
PF: predicated region fallthrough
CT: control target
= control target key end

     0   :  { %vm149_vm0 = vcmask 785408   ;;  %s1115_s1 = inlined_call_operand.vmem [shape: bf16[3,96,128], index: 1, kind: input, shape index: {}]   ;;  %s1116_s0 = inlined_call_operand.vmem [shape: bf16[8,32,96], index: 0, kind: input, shape index: {}]   ;;  %s1117_s2 = inlined_call_operand.vmem [shape: f32[1,128], index: 2, kind: input, shape index: {}]   ;;  %s1118_s3 = inlined_call_operand.vmem [shape: bf16[32,128], index: 3, kind: output, shape index: {}]  }
   0x1   :  { %v878_v0 = vld [vmem:[%s1115_s1 + $0x58] sm:$0xff]  ;;  %v864_v1 = vld [vmem:[%s1115_s1 + $0x28] sm:$0xff]  ;;  %v877_v3 = vld [vmem:[%s1115_s1 + $0x50] sm:$0xff] }
   0x2   :  { %v952_v2 = vld [vmem:[%s1115_s1 + $0x88] sm:$0xff]  ;;  %176 = vmatpush.bf16.msra.mxu0 %v878_v0  ;;  %904 = vmatpush.bf16.msra.mxu3 %v878_v0  ;;  %v863_v4 = vld [vmem:[%s1115_s1 + $0x20] sm:$0xff]  ;;  %v862_v7 = vld [vmem:[%s1115_s1 + $0x18] sm:$0xff] }
   0x3   :  { %325 = vmatpush.bf16.msra.mxu1 %v864_v1  ;;  %504 = vmatpush.bf16.msra.mxu2 %v952_v2  ;;  %v891_v5 = vld [vmem:[%s1115_s1 + $0x80] sm:$0xff]  ;;  %v876_v6 = vld [vmem:[%s1115_s1 + $0x48] sm:$0xff]  ;;  %v890_v8 = vld [vmem:[%s1115_s1 + $0x78] sm:$0xff] }
   0x4   :  { %v875_v9 = vld [vmem:[%s1115_s1 + $0x40] sm:$0xff]  ;;  %v861_v10 = vld [vmem:[%s1115_s1 + $0x10] sm:$0xff]  ;;  %v874_v12 = vld [vmem:[%s1115_s1 + $0x38] sm:$0xff] }
   0x5   :  { %v889_v11 = vld [vmem:[%s1115_s1 + $0x70] sm:$0xff]  ;;  %v860_v13 = vld [vmem:[%s1115_s1 + $0x8] sm:$0xff]  ;;  %v859_v16 = vld [vmem:[%s1115_s1] sm:$0xff] }
   0x6   :  { %177 = vmatpush.bf16.msra.mxu0 %v877_v3  ;;  %905 = vmatpush.bf16.msra.mxu3 %v877_v3  ;;  %v888_v14 = vld [vmem:[%s1115_s1 + $0x68] sm:$0xff]  ;;  %v873_v15 = vld [vmem:[%s1115_s1 + $0x30] sm:$0xff]  ;;  %v887_v17 = vld [vmem:[%s1115_s1 + $0x60] sm:$0xff] }
   0x7   :  { %326 = vmatpush.bf16.msra.mxu1 %v863_v4  ;;  %505 = vmatpush.bf16.msra.mxu2 %v891_v5  ;;  %v865_v18 = vld [vmem:[%s1116_s0 + $0x20] sm:$0xff]  ;;  %v871_v19 = vld [vmem:[%s1116_s0 + $0x50] sm:$0xff]  ;;  %v866_v22 = vld [vmem:[%s1116_s0 + $0x28] sm:$0xff] }
   0x8   :  { %v851_v20 = vld [vmem:[%s1116_s0] sm:$0xff]  ;;  %v872_v23 = vld [vmem:[%s1116_s0 + $0x58] sm:$0xff]  ;;  %v852_v24 = vld [vmem:[%s1116_s0 + $0x8] sm:$0xff] }
   0x9   :  { %v879_v21 = vld [vmem:[%s1116_s0 + $0x40] sm:$0xff]  ;;  %v880_v25 = vld [vmem:[%s1116_s0 + $0x48] sm:$0xff]  ;;  %v867_v26 = vld [vmem:[%s1116_s0 + $0x30] sm:$0xff] }
   0xa   :  { %178 = vmatpush.bf16.msra.mxu0 %v876_v6  ;;  %906 = vmatpush.bf16.msra.mxu3 %v876_v6  ;;  %v857_v27 = vld [vmem:[%s1116_s0 + $0x30] sm:$0xff]  ;;  %v868_v30 = vld [vmem:[%s1116_s0 + $0x38] sm:$0xff]  ;;  %v869_v34 = vld [vmem:[%s1116_s0 + $0x40] sm:$0xff] }
   0xb   :  { %327 = vmatpush.bf16.msra.mxu1 %v862_v7  ;;  %506 = vmatpush.bf16.msra.mxu2 %v890_v8  ;;  %v853_v28 = vld [vmem:[%s1116_s0 + $0x10] sm:$0xff]  ;;  %v858_v31 = vld [vmem:[%s1116_s0 + $0x38] sm:$0xff]  ;;  %v855_v36 = vld [vmem:[%s1116_s0 + $0x20] sm:$0xff] }
   0xc   :  { %v881_v29 = vld [vmem:[%s1116_s0 + $0x50] sm:$0xff]  ;;  %v854_v32 = vld [vmem:[%s1116_s0 + $0x18] sm:$0xff]  ;;  %v883_v37 = vld [vmem:[%s1116_s0 + $0x60] sm:$0xff] }
   0xd   :  { %v882_v33 = vld [vmem:[%s1116_s0 + $0x58] sm:$0xff]  ;;  %v885_v35 = vld [vmem:[%s1116_s0 + $0x70] sm:$0xff]  ;;  %v870_v38 = vld [vmem:[%s1116_s0 + $0x48] sm:$0xff] }
   0xe   :  { %179 = vmatpush.bf16.msra.mxu0 %v875_v9  ;;  %907 = vmatpush.bf16.msra.mxu3 %v875_v9  ;;  %v886_v39 = vld [vmem:[%s1116_s0 + $0x78] sm:$0xff]  ;;  %v856_v40 = vld [vmem:[%s1116_s0 + $0x28] sm:$0xff] }
   0xf   :  { %328 = vmatpush.bf16.msra.mxu1 %v861_v10  ;;  %507 = vmatpush.bf16.msra.mxu2 %v889_v11  ;;  %v884_v41 = vld [vmem:[%s1116_s0 + $0x68] sm:$0xff] }
  0x12   :  { %180 = vmatpush.bf16.msra.mxu0 %v874_v12  ;;  %908 = vmatpush.bf16.msra.mxu3 %v874_v12 }
  0x13   :  { %329 = vmatpush.bf16.msra.mxu1 %v860_v13  ;;  %508 = vmatpush.bf16.msra.mxu2 %v888_v14 }
  0x16   :  { %181 = vmatpush.bf16.msra.mxu0 %v873_v15  ;;  %909 = vmatpush.bf16.msra.mxu3 %v873_v15 }
  0x17   :  { %330 = vmatpush.bf16.msra.mxu1 %v859_v16  ;;  %509 = vmatpush.bf16.msra.mxu2 %v887_v17 }
  0x19   :  { %687 = vmatmul.msk.bf16.vlgmr.msra.gmra.mxu0 %vm149_vm0, %v865_v18  ;;  %693 = vmatmul.msk.bf16.vlgmr.msra.gmra.mxu3 %vm149_vm0, %v871_v19 }
  0x1a   :  { %910 = vmatpush.bf16.msrb.mxu3 %v864_v1  ;;  %751 = vmatmul.msk.bf16.vlgmr.msra.gmra.mxu1 %vm149_vm0, %v851_v20 }
  0x1b   :  { %843 = vmatmul.msk.bf16.vlgmr.msra.gmra.mxu2 %vm149_vm0, %v879_v21 }
  0x1e   :  { %911 = vmatpush.bf16.msrb.mxu3 %v863_v4 }
  0x22   :  { %912 = vmatpush.bf16.msrb.mxu3 %v862_v7 }
  0x26   :  { %913 = vmatpush.bf16.msrb.mxu3 %v861_v10 }
  0x29   :  { %688 = vmatmul.msk.bf16.gmra.mxu0 %vm149_vm0, %v866_v22  ;;  %694 = vmatmul.msk.bf16.gmra.mxu3 %vm149_vm0, %v872_v23 }
  0x2a   :  { %914 = vmatpush.bf16.msrb.mxu3 %v860_v13  ;;  %752 = vmatmul.msk.bf16.gmra.mxu1 %vm149_vm0, %v852_v24 }
  0x2b   :  { %844 = vmatmul.msk.bf16.gmra.mxu2 %vm149_vm0, %v880_v25 }
  0x2e   :  { %915 = vmatpush.bf16.msrb.mxu3 %v859_v16 }
  0x32   :  { %916 = vmatpush.bf16.msra.mxu3 %v952_v2 }
  0x36   :  { %917 = vmatpush.bf16.msra.mxu3 %v891_v5 }
  0x39   :  { %689 = vmatmul.msk.bf16.gmra.mxu0 %vm149_vm0, %v867_v26  ;;  %757 = vmatmul.msk.bf16.vlgmr.msrb.gmra.mxu3 %vm149_vm0, %v857_v27 }
  0x3a   :  { %918 = vmatpush.bf16.msra.mxu3 %v890_v8  ;;  %753 = vmatmul.msk.bf16.gmra.mxu1 %vm149_vm0, %v853_v28 }
  0x3b   :  { %845 = vmatmul.msk.bf16.gmra.mxu2 %vm149_vm0, %v881_v29 }
  0x3e   :  { %919 = vmatpush.bf16.msra.mxu3 %v889_v11 }
  0x42   :  { %920 = vmatpush.bf16.msra.mxu3 %v888_v14 }
  0x46   :  { %921 = vmatpush.bf16.msra.mxu3 %v887_v17 }
  0x49   :  { %690 = vmatmul.msk.bf16.gmra.mxu0 %vm149_vm0, %v868_v30  ;;  %758 = vmatmul.msk.bf16.gmra.mxu3 %vm149_vm0, %v858_v31 }
  0x4a   :  { %754 = vmatmul.msk.bf16.gmra.mxu1 %vm149_vm0, %v854_v32 }
  0x4b   :  { %846 = vmatmul.msk.bf16.gmra.mxu2 %vm149_vm0, %v882_v33 }
  0x59   :  { %691 = vmatmul.msk.bf16.gmra.mxu0 %vm149_vm0, %v869_v34  ;;  %849 = vmatmul.msk.bf16.vlgmr.msra.gmra.mxu3 %vm149_vm0, %v885_v35 }
  0x5a   :  { %755 = vmatmul.msk.bf16.gmra.mxu1 %vm149_vm0, %v855_v36 }
  0x5b   :  { %847 = vmatmul.msk.bf16.gmra.mxu2 %vm149_vm0, %v883_v37 }
  0x69   :  { %692 = vmatmul.msk.bf16.gmra.mxu0 %vm149_vm0, %v870_v38  ;;  %850 = vmatmul.msk.bf16.gmra.mxu3 %vm149_vm0, %v886_v39 }
  0x6a   :  { %756 = vmatmul.msk.bf16.gmra.mxu1 %vm149_vm0, %v856_v40  ;;  %v922_v40 = vld [vmem:[%s1117_s2] ss:$0 sm:$0xff] }
  0x6b   :  { %848 = vmatmul.msk.bf16.gmra.mxu2 %vm149_vm0, %v884_v41 }
  0x96   :  { %v183_v42 = vpop.f32.mrf.mxu0 }
  0x97   :  { %v332_v43 = vpop.f32.mrf.mxu1 }
  0x98   :  { %v333_v44 = vadd.f32 %v332_v43, %v183_v42 }
  0x9c   :  { %v213_v45 = vpop.f32.mrf.mxu3 }
  0x9e   :  { %v511_v46 = vpop.f32.mrf.mxu2  ;;  %v185_v48 = vpop.f32.mrf.mxu0 }
  0x9f   :  { %v551_v47 = vadd.f32 %v511_v46, %v333_v44  ;;  %v334_v49 = vpop.f32.mrf.mxu1 }
  0xa0   :  { %v335_v50 = vadd.f32 %v334_v49, %v185_v48 }
  0xa4   :  { %v215_v51 = vpop.f32.mrf.mxu3 }
  0xa6   :  { %v513_v52 = vpop.f32.mrf.mxu2  ;;  %v188_v54 = vpop.f32.mrf.mxu0 }
  0xa7   :  { %v552_v53 = vadd.f32 %v513_v52, %v335_v50  ;;  %v337_v55 = vpop.f32.mrf.mxu1 }
  0xa8   :  { %v338_v56 = vadd.f32 %v337_v55, %v188_v54 }
  0xac   :  { %v218_v57 = vpop.f32.mrf.mxu3 }
  0xae   :  { %v516_v58 = vpop.f32.mrf.mxu2  ;;  %v190_v60 = vpop.f32.mrf.mxu0 }
  0xaf   :  { %v1097_v59 = vadd.f32 %v516_v58, %v338_v56  ;;  %v339_v61 = vpop.f32.mrf.mxu1 }
  0xb0   :  { %v340_v62 = vadd.f32 %v339_v61, %v190_v60 }
  0xb4   :  { %v1099_v63 = vpop.f32.mrf.mxu3 }
  0xb6   :  { %v518_v0 = vpop.f32.mrf.mxu2  ;;  %v193_v2 = vpop.f32.mrf.mxu0 }
  0xb7   :  { %v1101_v1 = vadd.f32 %v518_v0, %v340_v62  ;;  %v342_v3 = vpop.f32.mrf.mxu1 }
  0xb8   :  { %v343_v20 = vadd.f32 %v342_v3, %v193_v2 }
  0xbc   :  { %v362_v4 = vpop.f32.mrf.mxu3 }
  0xbd   :  { %v363_v22 = vadd.f32 %v362_v4, %v213_v45 }
  0xbe   :  { %v521_v5 = vpop.f32.mrf.mxu2  ;;  %v195_v6 = vpop.f32.mrf.mxu0 }
  0xbf   :  { %v344_v7 = vpop.f32.mrf.mxu1  ;;  %v555_v23 = vadd.f32 %v521_v5, %v343_v20 }
  0xc0   :  { %v345_v32 = vadd.f32 %v344_v7, %v195_v6 }
  0xc1   :  { %v567_v30 = vmax.f32 %v551_v47, %v555_v23 }
  0xc4   :  { %v364_v8 = vpop.f32.mrf.mxu3 }
  0xc5   :  { %v365_v34 = vadd.f32 %v364_v8, %v215_v51 }
  0xc6   :  { %v523_v9 = vpop.f32.mrf.mxu2  ;;  %v198_v10 = vpop.f32.mrf.mxu0 }
  0xc7   :  { %v347_v11 = vpop.f32.mrf.mxu1  ;;  %v556_v35 = vadd.f32 %v523_v9, %v345_v32 }
  0xc8   :  { %v348_v45 = vadd.f32 %v347_v11, %v198_v10 }
  0xc9   :  { %v568_v44 = vmax.f32 %v552_v53, %v556_v35 }
  0xcc   :  { %v367_v12 = vpop.f32.mrf.mxu3 }
  0xcd   :  { %v368_v50 = vadd.f32 %v367_v12, %v218_v57 }
  0xce   :  { %v526_v13 = vpop.f32.mrf.mxu2  ;;  %v200_v14 = vpop.f32.mrf.mxu0 }
  0xcf   :  { %v349_v15 = vpop.f32.mrf.mxu1  ;;  %v557_v51 = vadd.f32 %v526_v13, %v348_v45 }
  0xd0   :  { %v350_v4 = vadd.f32 %v349_v15, %v200_v14 }
  0xd1   :  { %v569_v62 = vmax.f32 %v1097_v59, %v557_v51 }
  0xd4   :  { %v369_v16 = vpop.f32.mrf.mxu3 }
  0xd5   :  { %v370_v5 = vadd.f32 %v369_v16, %v1099_v63 }
  0xd6   :  { %v528_v17 = vpop.f32.mrf.mxu2  ;;  %v203_v18 = vpop.f32.mrf.mxu0 }
  0xd7   :  { %v352_v19 = vpop.f32.mrf.mxu1  ;;  %v558_v6 = vadd.f32 %v528_v17, %v350_v4 }
  0xd8   :  { %v353_v21 = vadd.f32 %v352_v19, %v203_v18 }
  0xd9   :  { %v570_v59 = vmax.f32 %v1101_v1, %v558_v6 }
  0xdc   :  { %v541_v24 = vpop.f32.mrf.mxu3 }
  0xdd   :  { %v563_v26 = vadd.f32 %v541_v24, %v363_v22 }
  0xde   :  { %v531_v25 = vpop.f32.mrf.mxu2  ;;  %v205_v28 = vpop.f32.mrf.mxu0 }
  0xdf   :  { %v559_v27 = vadd.f32 %v531_v25, %v353_v21  ;;  %v354_v29 = vpop.f32.mrf.mxu1 }
  0xe0   :  { %v355_v36 = vadd.f32 %v354_v29, %v205_v28 }
  0xe1   :  { %v571_v31 = vmax.f32 %v559_v27, %v563_v26 }
  0xe3   :  { %v575_v33 = vmax.f32 %v567_v30, %v571_v31 }
  0xe4   :  { %v543_v37 = vpop.f32.mrf.mxu3 }
  0xe5   :  { %v564_v39 = vadd.f32 %v543_v37, %v365_v34  ;;  %v583_v47 = vadd.f32 %v922_v40, %v575_v33 }
  0xe6   :  { %v533_v38 = vpop.f32.mrf.mxu2  ;;  %v208_v42 = vpop.f32.mrf.mxu0 }
  0xe7   :  { %v560_v41 = vadd.f32 %v533_v38, %v355_v36  ;;  %v357_v43 = vpop.f32.mrf.mxu1  ;;  %v587_v58 = vmax.f32 %v583_v47, 0.0 }
  0xe8   :  { %v358_v49 = vadd.f32 %v357_v43, %v208_v42 }
  0xe9   :  { %v572_v46 = vmax.f32 %v560_v41, %v564_v39 }
  0xeb   :  { %v576_v48 = vmax.f32 %v568_v44, %v572_v46 }
  0xec   :  { %v546_v54 = vpop.f32.mrf.mxu3 }
  0xed   :  { %v584_v52 = vadd.f32 %v922_v40, %v576_v48  ;;  %v565_v56 = vadd.f32 %v546_v54, %v368_v50 }
  0xee   :  { %v536_v55 = vpop.f32.mrf.mxu2  ;;  %v210_v3 = vpop.f32.mrf.mxu0 }
  0xef   :  { %v588_v60 = vmax.f32 %v584_v52, 0.0  ;;  %v561_v61 = vadd.f32 %v536_v55, %v358_v49  ;;  %v359_v53 = vpop.f32.mrf.mxu1 }
  0xf0   :  { %v360_v7 = vadd.f32 %v359_v53, %v210_v3 }
  0xf1   :  { %v896_v0 = vpack.c.bf16 %v588_v60, %v587_v58  ;;  %v573_v2 = vmax.f32 %v561_v61, %v565_v56 }
  0xf3   :  { %897 = vst [vmem:[%s1118_s3] sm:$0xff] %v896_v0   ;;  %v577_v57 = vmax.f32 %v569_v62, %v573_v2 }
  0xf4   :  { %v548_v8 = vpop.f32.mrf.mxu3 }
  0xf5   :  { %v566_v10 = vadd.f32 %v548_v8, %v370_v5  ;;  %v585_v13 = vadd.f32 %v922_v40, %v577_v57 }
  0xf6   :  { %v538_v9 = vpop.f32.mrf.mxu2 }
  0xf7   :  { %v562_v11 = vadd.f32 %v538_v9, %v360_v7  ;;  %v589_v14 = vmax.f32 %v585_v13, 0.0 }
  0xf9   :  { %v574_v12 = vmax.f32 %v562_v11, %v566_v10 }
  0xfb   :  { %v578_v18 = vmax.f32 %v570_v59, %v574_v12 }
  0xfd   :  { %v586_v19 = vadd.f32 %v922_v40, %v578_v18 }
  0xff   :  { %v590_v15 = vmax.f32 %v586_v19, 0.0 }
 0x101   :  { %v901_v20 = vpack.c.bf16 %v590_v15, %v589_v14 }
 0x103   :  { %903 = vst [vmem:[%s1118_s3 + $0x8] sm:$0xff] %v901_v20  }

// kernel: cifar10_cnn_forward.7
= control target key start
LH: loop header
LB: loop body
LE: loop exit
PB: predicated region body
PF: predicated region fallthrough
CT: control target
= control target key end

     0   :  { %13 = vsyncpa [#allocation3], 0  ;;  %s1461_s0 = inlined_call_operand.vmem [shape: bf16[2,1024], index: 0, kind: input, shape index: {}]   ;;  %s1462_s1 = inlined_call_operand.vmem [shape: bf16[1024,128], index: 1, kind: input, shape index: {}]   ;;  %s1463_s2 = inlined_call_operand.vmem [shape: f32[1,128], index: 2, kind: input, shape index: {}]   ;;  %s1464_s3 = inlined_call_operand.vmem [shape: f32[128,10], index: 3, kind: input, shape index: {}]   ;;  %s1465_s4 = inlined_call_operand.vmem [shape: f32[1,10], index: 4, kind: input, shape index: {}]   ;;  %s1466_s5 = inlined_call_operand.vmem [shape: f32[2,10], index: 5, kind: input, shape index: {}]   ;;  %s1467_s6 = inlined_call_operand.hbm [shape: f32[2,10], index: 6, kind: output, shape index: {0}]   ;;  %s1468_s7 = inlined_call_operand.hbm [shape: f32[1,1], index: 7, kind: output, shape index: {1}]  }
   0x1   :  { %v1040_v0 = vld [vmem:[%s1462_s1 + $0x38] sm:$0xff]  ;;  %v1039_v4 = vld [vmem:[%s1462_s1 + $0x30] sm:$0xff]  ;;  %v1038_v8 = vld [vmem:[%s1462_s1 + $0x28] sm:$0xff] }
   0x2   :  { %v1048_v1 = vld [vmem:[%s1462_s1 + $0x78] sm:$0xff]  ;;  %562 = vmatpush.bf16.msra.mxu0 %v1040_v0  ;;  %v1047_v5 = vld [vmem:[%s1462_s1 + $0x70] sm:$0xff]  ;;  %v1046_v9 = vld [vmem:[%s1462_s1 + $0x68] sm:$0xff] }
   0x3   :  { %v1056_v2 = vld [vmem:[%s1462_s1 + $0xb8] sm:$0xff]  ;;  %575 = vmatpush.bf16.msra.mxu1 %v1048_v1  ;;  %v1055_v6 = vld [vmem:[%s1462_s1 + $0xb0] sm:$0xff]  ;;  %v1054_v10 = vld [vmem:[%s1462_s1 + $0xa8] sm:$0xff] }
   0x4   :  { %v1064_v3 = vld [vmem:[%s1462_s1 + $0xf8] sm:$0xff]  ;;  %588 = vmatpush.bf16.msra.mxu2 %v1056_v2  ;;  %v1063_v7 = vld [vmem:[%s1462_s1 + $0xf0] sm:$0xff]  ;;  %v1062_v11 = vld [vmem:[%s1462_s1 + $0xe8] sm:$0xff] }
   0x5   :  { %601 = vmatpush.bf16.msra.mxu3 %v1064_v3  ;;  %v1037_v12 = vld [vmem:[%s1462_s1 + $0x20] sm:$0xff]  ;;  %v1036_v17 = vld [vmem:[%s1462_s1 + $0x18] sm:$0xff]  ;;  %v1035_v21 = vld [vmem:[%s1462_s1 + $0x10] sm:$0xff] }
   0x6   :  { %563 = vmatpush.bf16.msra.mxu0 %v1039_v4  ;;  %v1045_v13 = vld [vmem:[%s1462_s1 + $0x60] sm:$0xff]  ;;  %v1044_v18 = vld [vmem:[%s1462_s1 + $0x58] sm:$0xff]  ;;  %v1043_v22 = vld [vmem:[%s1462_s1 + $0x50] sm:$0xff] }
   0x7   :  { %576 = vmatpush.bf16.msra.mxu1 %v1047_v5  ;;  %v1053_v14 = vld [vmem:[%s1462_s1 + $0xa0] sm:$0xff]  ;;  %v1052_v19 = vld [vmem:[%s1462_s1 + $0x98] sm:$0xff] }
   0x8   :  { %589 = vmatpush.bf16.msra.mxu2 %v1055_v6  ;;  %v1061_v15 = vld [vmem:[%s1462_s1 + $0xe0] sm:$0xff]  ;;  %v1060_v20 = vld [vmem:[%s1462_s1 + $0xd8] sm:$0xff] }
   0x9   :  { %602 = vmatpush.bf16.msra.mxu3 %v1063_v7  ;;  %v27_v16 = vld [vmem:[%s1461_s0] sm:$0xff] }
   0xa   :  { %564 = vmatpush.bf16.msra.mxu0 %v1038_v8  ;;  %161 = vst [vmem:[#allocation1] ss:$9 sm:$0xff] %v27_v16 }
   0xb   :  { %577 = vmatpush.bf16.msra.mxu1 %v1046_v9 }
   0xc   :  { %590 = vmatpush.bf16.msra.mxu2 %v1054_v10 }
   0xd   :  { %603 = vmatpush.bf16.msra.mxu3 %v1062_v11 }
   0xe   :  { %565 = vmatpush.bf16.msra.mxu0 %v1037_v12 }
   0xf   :  { %578 = vmatpush.bf16.msra.mxu1 %v1045_v13 }
  0x10   :  { %591 = vmatpush.bf16.msra.mxu2 %v1053_v14 }
  0x11   :  { %604 = vmatpush.bf16.msra.mxu3 %v1061_v15 }
  0x12   :  { %566 = vmatpush.bf16.msra.mxu0 %v1036_v17 }
  0x13   :  { %579 = vmatpush.bf16.msra.mxu1 %v1044_v18 }
  0x14   :  { %14 = vsyncpa [#allocation5], 0  ;;  %592 = vmatpush.bf16.msra.mxu2 %v1052_v19  ;;  %v1051_v23 = vld [vmem:[%s1462_s1 + $0x90] sm:$0xff]  ;;  %v1034_v25 = vld [vmem:[%s1462_s1 + $0x8] sm:$0xff]  ;;  %vm707_vm0 = vcmask 74752   ;;  %s752_s22 = sshll.u32 %s1467_s6, 4  ;;  %s753_s22 = int_to_ptr.hbm [resolvable:$true] %s752_s22 }
  0x15   :  { %605 = vmatpush.bf16.msra.mxu3 %v1060_v20  ;;  %v1059_v24 = vld [vmem:[%s1462_s1 + $0xd0] sm:$0xff]  ;;  %v1042_v26 = vld [vmem:[%s1462_s1 + $0x48] sm:$0xff]  ;;  %v1033_v29 = vld [vmem:[%s1462_s1] sm:$0xff]  ;;  %s1160_s23 = smov [#allocation2]   ;;  %vm727_vm1 = vcmask 1041408   ;;  %s1162_s6 = smov [#allocation4]  }
  0x16   :  { %567 = vmatpush.bf16.msra.mxu0 %v1035_v21  ;;  %v1050_v27 = vld [vmem:[%s1462_s1 + $0x88] sm:$0xff]  ;;  %v1041_v30 = vld [vmem:[%s1462_s1 + $0x40] sm:$0xff]  ;;  %v1072_v33 = vld [vmem:[%s1462_s1 + $0x138] sm:$0xff]  ;;  %s761_s24 = sshll.u32 %s1162_s6, 4  ;;  %s763_s27 = sshll.u32 %s1468_s7, 4  ;;  %vm743_vm3 = vcmask 0   ;;  %s762_s24 = int_to_ptr.vmem [resolvable:$true] %s761_s24  ;;  %s764_s27 = int_to_ptr.hbm [resolvable:$true] %s763_s27 }
  0x17   :  { %580 = vmatpush.bf16.msra.mxu1 %v1043_v22  ;;  %v1058_v28 = vld [vmem:[%s1462_s1 + $0xc8] sm:$0xff]  ;;  %v1049_v31 = vld [vmem:[%s1462_s1 + $0x80] sm:$0xff]  ;;  %v1080_v34 = vld [vmem:[%s1462_s1 + $0x178] sm:$0xff] }
  0x18   :  { %593 = vmatpush.bf16.msra.mxu2 %v1051_v23  ;;  %v1057_v32 = vld [vmem:[%s1462_s1 + $0xc0] sm:$0xff]  ;;  %v1088_v35 = vld [vmem:[%s1462_s1 + $0x1b8] sm:$0xff]  ;;  %v1071_v37 = vld [vmem:[%s1462_s1 + $0x130] sm:$0xff] }
  0x19   :  { %606 = vmatpush.bf16.msra.mxu3 %v1059_v24  ;;  %v1096_v36 = vld [vmem:[%s1462_s1 + $0x1f8] sm:$0xff]  ;;  %v162_v39 = vld [vmem:[#allocation1] sm:$0xff]  ;;  %v1079_v40 = vld [vmem:[%s1462_s1 + $0x170] sm:$0xff] }
  0x1a   :  { %568 = vmatpush.bf16.msra.mxu0 %v1034_v25  ;;  %v164_v38 = vld [vmem:[#allocation1 + $0x12] sm:$0xff]  ;;  %v165_v41 = vld [vmem:[#allocation1 + $0x1b] sm:$0xff]  ;;  %v163_v42 = vld [vmem:[#allocation1 + $0x9] sm:$0xff] }
  0x1b   :  { %581 = vmatpush.bf16.msra.mxu1 %v1042_v26  ;;  %v1087_v43 = vld [vmem:[%s1462_s1 + $0x1b0] sm:$0xff]  ;;  %v1070_v45 = vld [vmem:[%s1462_s1 + $0x128] sm:$0xff]  ;;  %v1069_v49 = vld [vmem:[%s1462_s1 + $0x120] sm:$0xff] }
  0x1c   :  { %594 = vmatpush.bf16.msra.mxu2 %v1050_v27  ;;  %v1095_v44 = vld [vmem:[%s1462_s1 + $0x1f0] sm:$0xff]  ;;  %v1078_v46 = vld [vmem:[%s1462_s1 + $0x168] sm:$0xff]  ;;  %v1077_v50 = vld [vmem:[%s1462_s1 + $0x160] sm:$0xff] }
  0x1d   :  { %607 = vmatpush.bf16.msra.mxu3 %v1058_v28  ;;  %v1086_v47 = vld [vmem:[%s1462_s1 + $0x1a8] sm:$0xff]  ;;  %v1085_v51 = vld [vmem:[%s1462_s1 + $0x1a0] sm:$0xff]  ;;  %v1068_v53 = vld [vmem:[%s1462_s1 + $0x118] sm:$0xff] }
  0x1e   :  { %569 = vmatpush.bf16.msra.mxu0 %v1033_v29  ;;  %v1094_v48 = vld [vmem:[%s1462_s1 + $0x1e8] sm:$0xff]  ;;  %v1093_v52 = vld [vmem:[%s1462_s1 + $0x1e0] sm:$0xff]  ;;  %v1076_v54 = vld [vmem:[%s1462_s1 + $0x158] sm:$0xff] }
  0x1f   :  { %582 = vmatpush.bf16.msra.mxu1 %v1041_v30  ;;  %v1084_v55 = vld [vmem:[%s1462_s1 + $0x198] sm:$0xff]  ;;  %v1067_v57 = vld [vmem:[%s1462_s1 + $0x110] sm:$0xff]  ;;  %v1066_v61 = vld [vmem:[%s1462_s1 + $0x108] sm:$0xff] }
  0x20   :  { %595 = vmatpush.bf16.msra.mxu2 %v1049_v31  ;;  %v1092_v56 = vld [vmem:[%s1462_s1 + $0x1d8] sm:$0xff]  ;;  %v1075_v58 = vld [vmem:[%s1462_s1 + $0x150] sm:$0xff]  ;;  %v1074_v62 = vld [vmem:[%s1462_s1 + $0x148] sm:$0xff] }
  0x21   :  { %608 = vmatpush.bf16.msra.mxu3 %v1057_v32  ;;  %570 = vmatmul.bf16.vlgmr.msra.gmra.mxu0 %v162_v39  ;;  %v1083_v59 = vld [vmem:[%s1462_s1 + $0x190] sm:$0xff]  ;;  %v1082_v63 = vld [vmem:[%s1462_s1 + $0x188] sm:$0xff]  ;;  %v1065_v1 = vld [vmem:[%s1462_s1 + $0x100] sm:$0xff] }
  0x22   :  { %614 = vmatpush.bf16.msrb.mxu0 %v1072_v33  ;;  %583 = vmatmul.bf16.vlgmr.msra.gmra.mxu1 %v163_v42  ;;  %v1091_v60 = vld [vmem:[%s1462_s1 + $0x1d0] sm:$0xff]  ;;  %v1090_v0 = vld [vmem:[%s1462_s1 + $0x1c8] sm:$0xff]  ;;  %v1073_v2 = vld [vmem:[%s1462_s1 + $0x140] sm:$0xff] }
  0x23   :  { %627 = vmatpush.bf16.msrb.mxu1 %v1080_v34  ;;  %596 = vmatmul.bf16.vlgmr.msra.gmra.mxu2 %v164_v38  ;;  %v1081_v3 = vld [vmem:[%s1462_s1 + $0x180] sm:$0xff]  ;;  %v167_v6 = vld [vmem:[#allocation1 + $0x2d] sm:$0xff]  ;;  %v168_v7 = vld [vmem:[#allocation1 + $0x36] sm:$0xff] }
  0x24   :  { %640 = vmatpush.bf16.msrb.mxu2 %v1088_v35  ;;  %609 = vmatmul.bf16.vlgmr.msra.gmra.mxu3 %v165_v41  ;;  %v1089_v4 = vld [vmem:[%s1462_s1 + $0x1c0] sm:$0xff]  ;;  %v682_v9 = vld [vmem:[%s1464_s3 + $0x78] sm:$0xff]  ;;  %v681_v10 = vld [vmem:[%s1464_s3 + $0x70] sm:$0xff] }
  0x25   :  { %653 = vmatpush.bf16.msrb.mxu3 %v1096_v36  ;;  %v166_v5 = vld [vmem:[#allocation1 + $0x24] sm:$0xff]  ;;  %v678_v13 = vld [vmem:[%s1464_s3 + $0x58] sm:$0xff]  ;;  %v677_v14 = vld [vmem:[%s1464_s3 + $0x50] sm:$0xff] }
  0x26   :  { %615 = vmatpush.bf16.msrb.mxu0 %v1071_v37  ;;  %v169_v8 = vld [vmem:[#allocation1 + $0x3f] sm:$0xff]  ;;  %v680_v11 = vld [vmem:[%s1464_s3 + $0x68] sm:$0xff]  ;;  %v673_v18 = vld [vmem:[%s1464_s3 + $0x30] sm:$0xff] }
  0x27   :  { %628 = vmatpush.bf16.msrb.mxu1 %v1079_v40  ;;  %v679_v12 = vld [vmem:[%s1464_s3 + $0x60] sm:$0xff]  ;;  %v676_v15 = vld [vmem:[%s1464_s3 + $0x48] sm:$0xff]  ;;  %v674_v17 = vld [vmem:[%s1464_s3 + $0x38] sm:$0xff] }
  0x28   :  { %641 = vmatpush.bf16.msrb.mxu2 %v1087_v43  ;;  %v675_v16 = vld [vmem:[%s1464_s3 + $0x40] sm:$0xff]  ;;  %v672_v19 = vld [vmem:[%s1464_s3 + $0x28] sm:$0xff]  ;;  %v670_v23 = vld [vmem:[%s1464_s3 + $0x18] sm:$0xff] }
  0x29   :  { %654 = vmatpush.bf16.msrb.mxu3 %v1095_v44  ;;  %v671_v21 = vld [vmem:[%s1464_s3 + $0x20] sm:$0xff]  ;;  %v669_v24 = vld [vmem:[%s1464_s3 + $0x10] sm:$0xff]  ;;  %v668_v27 = vld [vmem:[%s1464_s3 + $0x8] sm:$0xff] }
  0x2a   :  { %616 = vmatpush.bf16.msrb.mxu0 %v1070_v45  ;;  %v667_v30 = vld [vmem:[%s1464_s3] sm:$0xff] }
  0x2b   :  { %629 = vmatpush.bf16.msrb.mxu1 %v1078_v46  ;;  %v1100_v31 = vld [vmem:[%s1463_s2] ss:$0 sm:$0xff] }
  0x2c   :  { %642 = vmatpush.bf16.msrb.mxu2 %v1086_v47 }
  0x2d   :  { %655 = vmatpush.bf16.msrb.mxu3 %v1094_v48 }
  0x2e   :  { %617 = vmatpush.bf16.msrb.mxu0 %v1069_v49 }
  0x2f   :  { %630 = vmatpush.bf16.msrb.mxu1 %v1077_v50 }
  0x30   :  { %643 = vmatpush.bf16.msrb.mxu2 %v1085_v51  ;;  %v1101_v51 = vld [vmem:[%s1465_s4] ss:$0 sm:$0xff] }
  0x31   :  { %656 = vmatpush.bf16.msrb.mxu3 %v1093_v52 }
  0x32   :  { %618 = vmatpush.bf16.msrb.mxu0 %v1068_v53  ;;  %v721_v53 = vld [vmem:[%s1466_s5] sm:$0x3]  ;;  %s750_s5 = sshll.u32 %s1160_s23, 4  ;;  %s751_s5 = int_to_ptr.vmem [resolvable:$true] %s750_s5 }
  0x33   :  { %631 = vmatpush.bf16.msrb.mxu1 %v1076_v54 }
  0x34   :  { %644 = vmatpush.bf16.msrb.mxu2 %v1084_v55 }
  0x35   :  { %657 = vmatpush.bf16.msrb.mxu3 %v1092_v56 }
  0x36   :  { %619 = vmatpush.bf16.msrb.mxu0 %v1067_v57 }
  0x37   :  { %632 = vmatpush.bf16.msrb.mxu1 %v1075_v58 }
  0x38   :  { %645 = vmatpush.bf16.msrb.mxu2 %v1083_v59 }
  0x39   :  { %658 = vmatpush.bf16.msrb.mxu3 %v1091_v60 }
  0x3a   :  { %620 = vmatpush.bf16.msrb.mxu0 %v1066_v61 }
  0x3b   :  { %633 = vmatpush.bf16.msrb.mxu1 %v1074_v62 }
  0x3c   :  { %646 = vmatpush.bf16.msrb.mxu2 %v1082_v63  ;;  %v1161_v63 = vmov 2.0  }
  0x3d   :  { %659 = vmatpush.bf16.msrb.mxu3 %v1090_v0 }
  0x3e   :  { %621 = vmatpush.bf16.msrb.mxu0 %v1065_v1 }
  0x3f   :  { %634 = vmatpush.bf16.msrb.mxu1 %v1073_v2 }
  0x40   :  { %647 = vmatpush.bf16.msrb.mxu2 %v1081_v3 }
  0x41   :  { %660 = vmatpush.bf16.msrb.mxu3 %v1089_v4  ;;  %622 = vmatmul.bf16.vlgmr.msrb.gmra.mxu0 %v166_v5 }
  0x42   :  { %635 = vmatmul.bf16.vlgmr.msrb.gmra.mxu1 %v167_v6  ;;  %687 = vmatpush.msra.mxu0 %v682_v9 }
  0x43   :  { %648 = vmatmul.bf16.vlgmr.msrb.gmra.mxu2 %v168_v7 }
  0x44   :  { %661 = vmatmul.bf16.vlgmr.msrb.gmra.mxu3 %v169_v8  ;;  %688 = vmatpush.msra.mxu0 %v681_v10 }
  0x46   :  { %689 = vmatpush.msra.mxu0 %v680_v11 }
  0x48   :  { %690 = vmatpush.msra.mxu0 %v679_v12 }
  0x4a   :  { %691 = vmatpush.msra.mxu0 %v678_v13 }
  0x4c   :  { %692 = vmatpush.msra.mxu0 %v677_v14 }
  0x4e   :  { %693 = vmatpush.msra.mxu0 %v676_v15 }
  0x50   :  { %694 = vmatpush.msra.mxu0 %v675_v16 }
  0x52   :  { %695 = vmatpush.msra.mxu0 %v674_v17 }
  0x54   :  { %696 = vmatpush.msra.mxu0 %v673_v18 }
  0x56   :  { %697 = vmatpush.msra.mxu0 %v672_v19 }
  0x58   :  { %698 = vmatpush.msra.mxu0 %v671_v21 }
  0x5a   :  { %699 = vmatpush.msra.mxu0 %v670_v23 }
  0x5c   :  { %700 = vmatpush.msra.mxu0 %v669_v24 }
  0x5e   :  { %701 = vmatpush.msra.mxu0 %v668_v27 }
  0x60   :  { %702 = vmatpush.msra.mxu0 %v667_v30 }
  0x9e   :  { %v571_v20 = vpop.f32.mrf.mxu0 }
  0x9f   :  { %v584_v22 = vpop.f32.mrf.mxu1  ;;  %v572_v34 = vadd.f32 %v1100_v31, %v571_v20 }
  0xa1   :  { %v585_v35 = vadd.f32 %v584_v22, %v572_v34 }
  0xa6   :  { %v597_v25 = vpop.f32.mrf.mxu2  ;;  %v573_v28 = vpop.f32.mrf.mxu0 }
  0xa7   :  { %v610_v26 = vpop.f32.mrf.mxu3  ;;  %v586_v29 = vpop.f32.mrf.mxu1  ;;  %v598_v36 = vadd.f32 %v597_v25, %v585_v35 }
  0xa9   :  { %v611_v37 = vadd.f32 %v610_v26, %v598_v36 }
  0xae   :  { %v599_v32 = vpop.f32.mrf.mxu2 }
  0xaf   :  { %v612_v33 = vpop.f32.mrf.mxu3 }
  0xbe   :  { %v623_v38 = vpop.f32.mrf.mxu0 }
  0xbf   :  { %v636_v39 = vpop.f32.mrf.mxu1  ;;  %v624_v40 = vadd.f32 %v623_v38, %v611_v37 }
  0xc1   :  { %v637_v41 = vadd.f32 %v636_v39, %v624_v40 }
  0xc6   :  { %v649_v42 = vpop.f32.mrf.mxu2  ;;  %v625_v45 = vpop.f32.mrf.mxu0 }
  0xc7   :  { %v662_v43 = vpop.f32.mrf.mxu3  ;;  %v650_v44 = vadd.f32 %v649_v42, %v637_v41  ;;  %v638_v46 = vpop.f32.mrf.mxu1 }
  0xc9   :  { %v663_v47 = vadd.f32 %v662_v43, %v650_v44 }
  0xcb   :  { %v666_v48 = vmax.f32 %v663_v47, 0.0 }
  0xcd   :  { %703 = vmatmul.f32.vlgmr.msra.gmra.mxu0 %v666_v48 }
  0xce   :  { %v651_v49 = vpop.f32.mrf.mxu2 }
  0xcf   :  { %v664_v50 = vpop.f32.mrf.mxu3 }
 0x14a   :  { %v704_v52 = vpop.f32.mrf.mxu0 }
 0x14b   :  { %v705_v54 = vadd.f32 %v1101_v51, %v704_v52 }
 0x14d   :  { %v709_v55 = vsel %vm707_vm0, %v705_v54, -inf  ;;  %708 = vst.msk [vmem:[#allocation2] sm:$0x3] %vm707_vm0, %v705_v54  ;;  %v722_v56 = vmul.f32 %v721_v53, %v705_v54 }
 0x14e   :  { %710 = vmax.xlane.f32.xlu0 %v709_v55  ;;  %755 = dma.vmem_to_hbm [thread:$0]  %s751_s5, 32, %s753_s22, [#allocation3]  }
 0x14f   :  { %v723_v57 = vsel %vm707_vm0, %v722_v56, 0.0 }
 0x150   :  { %724 = vadd.xlane.f32.xlu1 %v723_v57 }
 0x1c1   :  { %v711_v58 = vpop.xlane.xlu0 %710 }
 0x1c2   :  { %v712_v59 = vsub.f32 %v705_v54, %v711_v58 }
 0x1c3   :  { %v725_v6 = vpop.xlane.xlu1 %724 }
 0x1c4   :  { %v713_v60 = vmul.f32 1.442695, %v712_v59 }
 0x1c6   :  { %1102 = vpow2.f32 %v713_v60 }
 0x1c7   :  { %1104 = vrcp.f32 %v1161_v63 }
 0x1cc   :  { %v1103_v61 = vpop.eup %1102 }
 0x1cd   :  { %v715_v62 = vsel %vm707_vm0, %v1103_v61, 0.0  ;;  %v1105_v1 = vpop.eup %1104 }
 0x1ce   :  { %716 = vadd.xlane.f32.xlu0 %v715_v62  ;;  %v736_v4 = vmul.f32 2.0, %v1105_v1  ;;  %vm740_vm2 = vweird.f32 %v1105_v1 }
 0x1d0   :  { %v737_v8 = vsub.f32 1.0, %v736_v4 }
 0x1d2   :  { %v738_v11 = vmul.f32 %v1105_v1, %v737_v8 }
 0x1d4   :  { %v739_v14 = vadd.f32 %v1105_v1, %v738_v11 }
 0x1d6   :  { %v741_v17 = vsel %vm740_vm2, %v1105_v1, %v739_v14 }
 0x241   :  { %v717_v0 = vpop.xlane.xlu0 %716 }
 0x242   :  { %1106 = vlog2.f32 %v717_v0 }
 0x248   :  { %v1107_v2 = vpop.eup %1106 }
 0x249   :  { %v719_v3 = vmul.f32 0.6931472, %v1107_v2 }
 0x24b   :  { %v720_v5 = vadd.f32 %v719_v3, %v711_v58 }
 0x24d   :  { %v726_v7 = vsub.f32 %v720_v5, %v725_v6 }
 0x24f   :  { %v728_v9 = vsel %vm727_vm1, %v726_v7, 0.0 }
 0x250   :  { %v729_v10 = vrot.slane %v728_v9, 4 }
 0x252   :  { %v730_v12 = vadd.f32 %v729_v10, %v728_v9 }
 0x254   :  { %v731_v13 = vrot.slane %v730_v12, 2 }
 0x256   :  { %v732_v15 = vadd.f32 %v731_v13, %v730_v12 }
 0x258   :  { %v733_v16 = vrot.slane %v732_v15, 1 }
 0x25a   :  { %v734_v18 = vadd.f32 %v733_v16, %v732_v15 }
 0x25c   :  { %v742_v19 = vmul.f32 %v741_v17, %v734_v18 }
 0x25e   :  { %744 = vst.msk [vmem:[#allocation4] sm:$0x1] %vm743_vm3, %v742_v19 }
 0x25f   :  { %766 = dma.vmem_to_hbm [thread:$0]  %s762_s24, 16, %s764_s27, [#allocation5]  }
 0x260   :  { %1156 = dma.done.wait [#allocation3], 32  }
 0x261   :  { %1157 = vsyncadd [#allocation3], 4294967264 }
 0x262   :  { %1158 = dma.done.wait [#allocation5], 16  }
 0x263   :  { %1159 = vsyncadd [#allocation5], 4294967280 }
 0x264   :  { %775 = vsyncpa [#allocation3], 1 }
 0x265   :  { %776 = vsyncpa [#allocation5], 1 }

</bundles_post_ra>
